<compile_context>
chip_gen: v7x
topology: tpu7x:2x2x1
jax: 0.10.0
libtpu: 0.0.40
codegen_flags: <defaults>
</compile_context>

<pallas_src>
from functools import partial

import jax
import jax.numpy as jnp
from jax.experimental import pallas as pl
from jax.experimental.pallas import tpu as pltpu


# ---------------------------------------------------------------------------
# Relative-position helpers (plain JAX glue, mirrors the torch helpers).
# ---------------------------------------------------------------------------
def get_rel_pos(q_size, k_size, rel_pos):
    max_rel_dist = int(2 * max(q_size, k_size) - 1)
    # TODO(synk): F.interpolate(mode='linear') resize branch when
    # rel_pos.shape[0] != max_rel_dist is not reimplemented (unused at fixed windows).
    assert rel_pos.shape[0] == max_rel_dist
    q_coords = jnp.arange(q_size)[:, None] * max(k_size / q_size, 1.0)
    k_coords = jnp.arange(k_size)[None, :] * max(q_size / k_size, 1.0)
    rel_coords = (q_coords - k_coords) + (k_size - 1) * max(q_size / k_size, 1.0)
    return rel_pos[rel_coords.astype(jnp.int32)]


def add_decomposed_rel_pos(q, rel_pos_h, rel_pos_w, q_size, k_size):
    """Reference-path helper (matches torch add_decomposed_rel_pos)."""
    q_h, q_w = q_size
    k_h, k_w = k_size
    Rh = get_rel_pos(q_h, k_h, rel_pos_h)          # (q_h, k_h, C)
    Rw = get_rel_pos(q_w, k_w, rel_pos_w)          # (q_w, k_w, C)
    B, _, C = q.shape
    r_q = q.reshape(B, q_h, q_w, C)
    rel_h = jnp.einsum("bhwc,hkc->bhwk", r_q, Rh)
    rel_w = jnp.einsum("bhwc,wkc->bhwk", r_q, Rw)
    rel_h = rel_h.reshape(B, q_h * q_w, k_h, 1)
    rel_w = rel_w.reshape(B, q_h * q_w, 1, k_w)
    return rel_h, rel_w


def _rel_pos_features(q, rel_pos_h, rel_pos_w, num_heads, H, W):
    """Thin per-window rel-pos features: (nh, B, S, k_h + k_w).  O(B*nh*S*(H+W)),
    i.e. much smaller than the (B, nh, S, S) bias the previous version wrote to HBM."""
    B, S, D = q.shape
    dh = D // num_heads
    Rh = get_rel_pos(H, H, rel_pos_h)                       # (H, H, dh)
    Rw = get_rel_pos(W, W, rel_pos_w)                       # (W, W, dh)
    r_q = q.reshape(B, H, W, num_heads, dh)
    rel_h = jnp.einsum("bhwnc,hkc->nbhwk", r_q, Rh).reshape(num_heads, B, S, H)
    rel_w = jnp.einsum("bhwnc,wkc->nbhwk", r_q, Rw).reshape(num_heads, B, S, W)
    return jnp.concatenate([rel_h, rel_w], axis=-1)         # (nh, B, S, H+W)


def _expand_matrix(k_h, k_w, dtype):
    """One-hot (k_h + k_w, S) matrix E so that rel_hw @ E expands the decomposed
    rel-pos features to the full (S, S) additive bias inside the kernel."""
    S = k_h * k_w
    t = jnp.arange(S)
    eh = (t[None, :] // k_w == jnp.arange(k_h)[:, None]).astype(dtype)   # (k_h, S)
    ew = (t[None, :] % k_w == jnp.arange(k_w)[:, None]).astype(dtype)    # (k_w, S)
    return jnp.concatenate([eh, ew], axis=0)                             # (k_h+k_w, S)


# ---------------------------------------------------------------------------
# Fused kernel: QKV matmul -> per-head SDPA (+decomposed rel-pos bias) -> out proj.
# One grid step = G windows; everything stays in VMEM.
# ---------------------------------------------------------------------------
def _beit_attn_kernel(x_ref, wqkv_ref, bqkv_ref, wproj_ref, bproj_ref, *rest,
                      G, S, num_heads, head_dim, scale, has_rel):
    if has_rel:
        relhw_ref, e_ref, o_ref, oacc_ref = rest
    else:
        o_ref, oacc_ref = rest
        relhw_ref = e_ref = None

    D = num_heads * head_dim
    GS = G * S

    # --- 1. QKV projection: ONE wide bf16 matmul over all G windows (M = G*S). ---
    x = x_ref[...].reshape(GS, D)                                      # bf16
    qkv = jnp.dot(x, wqkv_ref[...], preferred_element_type=jnp.float32)
    qkv = qkv + bqkv_ref[...]                                          # (GS, 3D) f32

    # --- 2. Per-head attention, batched over the G windows in this block. ---
    for h in range(num_heads):                                         # small static loop
        qo = h * head_dim
        ko = D + h * head_dim
        vo = 2 * D + h * head_dim
        q = qkv[:, qo:qo + head_dim].reshape(G, S, head_dim)           # f32, unscaled
        k = qkv[:, ko:ko + head_dim].reshape(G, S, head_dim)
        v = qkv[:, vo:vo + head_dim].reshape(G, S, head_dim)

        # scores = (q * scale) @ k^T, bf16 MXU operands, f32 accumulation.
        s = jax.lax.dot_general(
            (q * scale).astype(jnp.bfloat16), k.astype(jnp.bfloat16),
            dimension_numbers=(((2,), (2,)), ((0,), (0,))),
            preferred_element_type=jnp.float32)                        # (G, S, S)

        if relhw_ref is not None:
            # Expand the thin decomposed rel-pos features to (S, S) with a one-hot
            # matmul — the O(S^2) bias never touches HBM.
            rel = relhw_ref[h]                                         # (G, S, k_h+k_w) bf16
            s = s + jax.lax.dot_general(
                rel, e_ref[...],
                dimension_numbers=(((2,), (0,)), ((), ())),
                preferred_element_type=jnp.float32)                    # (G, S, S)

        # Numerically stable softmax in f32 (matches torch SDPA).
        m = jnp.max(s, axis=-1, keepdims=True)
        p = jnp.exp(s - m)
        l = jnp.sum(p, axis=-1, keepdims=True)
        o = jax.lax.dot_general(
            p.astype(jnp.bfloat16), v.astype(jnp.bfloat16),
            dimension_numbers=(((2,), (1,)), ((0,), (0,))),
            preferred_element_type=jnp.float32)                        # (G, S, dh)
        o = o * pl.reciprocal(l, approx=True)                          # EUP, not VPU divide

        # Write this head's output into its lane slice of the VMEM scratch.
        oacc_ref[:, qo:qo + head_dim] = o.reshape(GS, head_dim)

    # --- 3. Output projection with full contraction depth K = D (single matmul). ---
    o_all = oacc_ref[...].astype(jnp.bfloat16)                         # (GS, D)
    y = jnp.dot(o_all, wproj_ref[...], preferred_element_type=jnp.float32)
    y = y + bproj_ref[...]
    o_ref[...] = y.reshape(G, S, D).astype(o_ref.dtype)


def _choose_group(num_windows, seq_len, target_rows=256):
    """Largest G dividing the window count with G*S >= 256 (MXU-filling M)."""
    g = max(1, min(num_windows, target_rows // max(seq_len, 1)))
    while g > 1 and num_windows % g:
        g -= 1
    return g


def _fused_attention(x_bsd, wqkv, bqkv, wproj, bproj, rel_hw, e_mat, *,
                     num_heads, head_dim, scale, group):
    B, S, D = x_bsd.shape
    G = group
    assert B % G == 0
    nb = B // G
    has_rel = rel_hw is not None
    KHW = e_mat.shape[0] if has_rel else 0

    in_specs = [
        pl.BlockSpec((G, S, D), lambda b: (b, 0, 0)),        # x (bf16)
        pl.BlockSpec((D, 3 * D), lambda b: (0, 0)),          # Wqkv (bf16, grid-invariant)
        pl.BlockSpec((1, 3 * D), lambda b: (0, 0)),          # qkv bias [q|0|v] (f32)
        pl.BlockSpec((D, D), lambda b: (0, 0)),              # Wproj (bf16, grid-invariant)
        pl.BlockSpec((1, D), lambda b: (0, 0)),              # proj bias (f32)
    ]
    args = [x_bsd, wqkv, bqkv, wproj, bproj]
    if has_rel:
        in_specs.append(pl.BlockSpec((num_heads, G, S, KHW), lambda b: (0, b, 0, 0)))
        in_specs.append(pl.BlockSpec((KHW, S), lambda b: (0, 0)))
        args += [rel_hw, e_mat]

    kernel = partial(_beit_attn_kernel, G=G, S=S, num_heads=num_heads,
                     head_dim=head_dim, scale=scale, has_rel=has_rel)

    return pl.pallas_call(
        kernel,
        out_shape=jax.ShapeDtypeStruct((B, S, D), jnp.float32),
        grid=(nb,),
        in_specs=in_specs,
        out_specs=pl.BlockSpec((G, S, D), lambda b: (b, 0, 0)),
        scratch_shapes=[pltpu.VMEM((G * S, D), jnp.float32)],   # per-head-written outputs
        compiler_params=pltpu.CompilerParams(
            dimension_semantics=("parallel",),      # v7x: shard the window-group axis over 2 TCs
            vmem_limit_bytes=32 * 1024 * 1024),
    )(*args)


# ---------------------------------------------------------------------------
# Module forward (wrapper) and synthetic parameters.
# ---------------------------------------------------------------------------
def init_params(key, dim=64, num_heads=2, input_size=(8, 8), use_rel_pos=True,
                qkv_bias=True):
    head_dim = dim // num_heads
    ks = jax.random.split(key, 8)
    p = {
        "qkv_w": jax.random.normal(ks[0], (3 * dim, dim), jnp.float32) * 0.1,  # torch (out, in)
        "proj_w": jax.random.normal(ks[1], (dim, dim), jnp.float32) * 0.1,
        "proj_b": jax.random.normal(ks[2], (dim,), jnp.float32) * 0.05,
        "q_bias": jax.random.normal(ks[3], (dim,), jnp.float32) * 0.05 if qkv_bias else None,
        "v_bias": jax.random.normal(ks[4], (dim,), jnp.float32) * 0.05 if qkv_bias else None,
    }
    if use_rel_pos:
        H, W = input_size
        p["rel_pos_h"] = jax.random.normal(ks[5], (2 * H - 1, head_dim), jnp.float32) * 0.1
        p["rel_pos_w"] = jax.random.normal(ks[6], (2 * W - 1, head_dim), jnp.float32) * 0.1
    return p


def _make_qkv_bias(params, dim, dtype):
    if params.get("q_bias") is None:
        return jnp.zeros((3 * dim,), dtype)
    return jnp.concatenate(
        [params["q_bias"], jnp.zeros_like(params["v_bias"]), params["v_bias"]]
    ).astype(dtype)


def attention_for_beit_forward(params, x, *, num_heads, use_rel_pos=False):
    """x: (B, H, W, dim) -> (B, H, W, dim)."""
    B, H, W, D = x.shape
    S = H * W
    head_dim = D // num_heads
    scale = head_dim ** (-0.5)                 # torch SDPA default scale (self.scale unused)

    wqkv = params["qkv_w"].T                   # (D, 3D)
    bqkv = _make_qkv_bias(params, D, jnp.float32)
    wproj = params["proj_w"].T                 # (D, D), head-concat input ordering
    bproj = params["proj_b"]

    x_flat = x.reshape(B, S, D)

    rel_hw = e_mat = None
    if use_rel_pos:
        # Thin decomposed rel-pos features; the O(S^2) bias is built inside the kernel.
        # TODO(synk): fold this q projection into the kernel itself for full fusion.
        q = x_flat @ wqkv[:, :D] + bqkv[:D]                               # (B, S, D) f32
        rel_hw = _rel_pos_features(q, params["rel_pos_h"], params["rel_pos_w"],
                                   num_heads, H, W).astype(jnp.bfloat16)  # (nh, B, S, H+W)
        e_mat = _expand_matrix(H, W, jnp.bfloat16)                        # (H+W, S)
    # TODO(synk): relative_position_bias_table / get_rel_pos_bias path is not
    # reimplemented (get_rel_pos_bias is undefined in the spec).

    G = _choose_group(B, S)
    out = _fused_attention(
        x_flat.astype(jnp.bfloat16), wqkv.astype(jnp.bfloat16),
        bqkv[None, :].astype(jnp.float32), wproj.astype(jnp.bfloat16),
        bproj[None, :].astype(jnp.float32), rel_hw, e_mat,
        num_heads=num_heads, head_dim=head_dim, scale=scale, group=G)
    return out.reshape(B, H, W, D)


# ---------------------------------------------------------------------------
# Pure-JAX f32 reference (mirrors the torch module) for in-script checking.
# ---------------------------------------------------------------------------
def _reference_forward(params, x, *, num_heads, use_rel_pos=False):
    B, H, W, D = x.shape
    S = H * W
    dh = D // num_heads
    wqkv = params["qkv_w"].T
    bqkv = _make_qkv_bias(params, D, jnp.float32)
    qkv = x.reshape(B, S, D) @ wqkv + bqkv
    qkv = qkv.reshape(B, S, 3, num_heads, dh).transpose(2, 0, 3, 1, 4)  # (3,B,nh,S,dh)
    q, k, v = qkv[0], qkv[1], qkv[2]
    bias = None
    if use_rel_pos:
        qf = q.reshape(B * num_heads, S, dh)
        rel_h, rel_w = add_decomposed_rel_pos(
            qf, params["rel_pos_h"], params["rel_pos_w"], (H, W), (H, W))
        bias = (rel_h + rel_w).reshape(B, num_heads, S, S)
    s = jnp.einsum("bnqd,bnkd->bnqk", q, k) * (dh ** (-0.5))
    if bias is not None:
        s = s + bias
    p = jax.nn.softmax(s, axis=-1)
    o = jnp.einsum("bnqk,bnkd->bnqd", p, v)
    o = o.transpose(0, 2, 1, 3).reshape(B, S, D)
    y = o @ params["proj_w"].T + params["proj_b"]
    return y.reshape(B, H, W, D)


def _bf16_round(a):
    # Round to bf16-representable f32 so the bf16-MXU kernel and the f32 reference
    # see identical inputs; remaining deltas are only in-kernel operand casts.
    return a.astype(jnp.bfloat16).astype(jnp.float32)


if __name__ == "__main__":
    key = jax.random.PRNGKey(0)
    kx, kp = jax.random.split(key)

    B, H, W = 32, 8, 8          # 32 windows of S = 64 tokens -> grid of 8 groups (G = 4)
    dim, num_heads = 64, 2      # head_dim = 32

    x = _bf16_round(jax.random.normal(kx, (B, H, W, dim), jnp.float32))
    params = init_params(kp, dim=dim, num_heads=num_heads, input_size=(H, W),
                         use_rel_pos=True, qkv_bias=True)
    params = {k: (_bf16_round(v) if v is not None else None) for k, v in params.items()}

    # Config A: plain BEiT attention (no bias).  Config B: decomposed rel-pos bias.
    out_a = attention_for_beit_forward(params, x, num_heads=num_heads, use_rel_pos=False)
    out_b = attention_for_beit_forward(params, x, num_heads=num_heads, use_rel_pos=True)
    jax.block_until_ready((out_a, out_b))

    assert out_a.shape == (B, H, W, dim)
    assert out_b.shape == (B, H, W, dim)

    ref_a = _reference_forward(params, x, num_heads=num_heads, use_rel_pos=False)
    ref_b = _reference_forward(params, x, num_heads=num_heads, use_rel_pos=True)
    err_a = float(jnp.max(jnp.abs(out_a - ref_a)))
    err_b = float(jnp.max(jnp.abs(out_b - ref_b)))
    assert bool(jnp.allclose(out_a, ref_a, atol=5e-2, rtol=5e-2)), f"mismatch no-bias {err_a}"
    assert bool(jnp.allclose(out_b, ref_b, atol=5e-2, rtol=5e-2)), f"mismatch rel-pos {err_b}"

    print("KERNEL_OK")
</pallas_src>

<mosaic_0001>
module attributes {stable_mosaic.version = 11 : i64} {
  func.func @_beit_attn_kernel(%arg0: i32, %arg1: memref<4x64x64xbf16, #tpu.memory_space<vmem>>, %arg2: memref<64x192xbf16, #tpu.memory_space<vmem>>, %arg3: memref<1x192xf32, #tpu.memory_space<vmem>>, %arg4: memref<64x64xbf16, #tpu.memory_space<vmem>>, %arg5: memref<1x64xf32, #tpu.memory_space<vmem>>, %arg6: memref<4x64x64xf32, #tpu.memory_space<vmem>>, %arg7: memref<256x64xf32, #tpu.memory_space<vmem>>) attributes {dimension_semantics = [#tpu.dimension_semantics<parallel>], iteration_bounds = array<i64: 8>, scalar_prefetch = 0 : i64, scratch_operands = 1 : i64, tpu.core_type = #tpu.core_type<tc>, window_params = [{transform_indices = @transform_0, window_bounds = array<i64: 4, 64, 64>}, {pipeline_mode = #tpu.pipeline_mode<synchronous>, transform_indices = @transform_1, window_bounds = array<i64: 64, 192>}, {pipeline_mode = #tpu.pipeline_mode<synchronous>, transform_indices = @transform_2, window_bounds = array<i64: 1, 192>}, {pipeline_mode = #tpu.pipeline_mode<synchronous>, transform_indices = @transform_3, window_bounds = array<i64: 64, 64>}, {pipeline_mode = #tpu.pipeline_mode<synchronous>, transform_indices = @transform_4, window_bounds = array<i64: 1, 64>}, {transform_indices = @transform_5, window_bounds = array<i64: 4, 64, 64>}]} {
    %c0 = arith.constant 0 : index
    %c0_0 = arith.constant 0 : index
    %c0_1 = arith.constant 0 : index
    %0 = vector.load %arg1[%c0, %c0_0, %c0_1] : memref<4x64x64xbf16, #tpu.memory_space<vmem>>, vector<4x64x64xbf16>
    %1 = vector.shape_cast %0 : vector<4x64x64xbf16> to vector<256x64xbf16>
    %c0_2 = arith.constant 0 : index
    %c0_3 = arith.constant 0 : index
    %2 = vector.load %arg2[%c0_2, %c0_3] : memref<64x192xbf16, #tpu.memory_space<vmem>>, vector<64x192xbf16>
    %cst = arith.constant dense<0.000000e+00> : vector<256x192xf32>
    %3 = tpu.matmul %1, %2, %cst {dimension_numbers = #tpu.dot_dimension_numbers<[1], [0], [0], [1], [0, 0, 1, 1], [], []>} : vector<256x64xbf16>, vector<64x192xbf16>, vector<256x192xf32> -> vector<256x192xf32>
    %c0_4 = arith.constant 0 : index
    %c0_5 = arith.constant 0 : index
    %4 = vector.load %arg3[%c0_4, %c0_5] : memref<1x192xf32, #tpu.memory_space<vmem>>, vector<1x192xf32>
    %5 = vector.broadcast %4 : vector<1x192xf32> to vector<256x192xf32>
    %6 = arith.addf %3, %5 : vector<256x192xf32>
    %7 = vector.extract_strided_slice %6 {offsets = [0, 0], sizes = [256, 32], strides = [1, 1]} : vector<256x192xf32> to vector<256x32xf32>
    %8 = vector.shape_cast %7 : vector<256x32xf32> to vector<4x64x32xf32>
    %9 = vector.extract_strided_slice %6 {offsets = [0, 64], sizes = [256, 32], strides = [1, 1]} : vector<256x192xf32> to vector<256x32xf32>
    %10 = vector.shape_cast %9 : vector<256x32xf32> to vector<4x64x32xf32>
    %11 = vector.extract_strided_slice %6 {offsets = [0, 128], sizes = [256, 32], strides = [1, 1]} : vector<256x192xf32> to vector<256x32xf32>
    %12 = vector.shape_cast %11 : vector<256x32xf32> to vector<4x64x32xf32>
    %cst_6 = arith.constant 0.176776692 : f32
    %13 = vector.broadcast %cst_6 : f32 to vector<4x64x32xf32>
    %14 = arith.mulf %8, %13 : vector<4x64x32xf32>
    %15 = arith.truncf %14 : vector<4x64x32xf32> to vector<4x64x32xbf16>
    %16 = arith.truncf %10 : vector<4x64x32xf32> to vector<4x64x32xbf16>
    %cst_7 = arith.constant dense<0.000000e+00> : vector<4x64x64xf32>
    %17 = tpu.matmul %15, %16, %cst_7 {dimension_numbers = #tpu.dot_dimension_numbers<[2], [2], [1], [1], [0, 0, 0, 1, 1, 1], [0], [0]>} : vector<4x64x32xbf16>, vector<4x64x32xbf16>, vector<4x64x64xf32> -> vector<4x64x64xf32>
    %cst_8 = arith.constant dense<0xFF800000> : vector<4x64xf32>
    %18 = vector.multi_reduction <maximumf>, %17, %cst_8 [2] : vector<4x64x64xf32> to vector<4x64xf32>
    %19 = vector.shape_cast %18 : vector<4x64xf32> to vector<4x64x1xf32>
    %20 = vector.broadcast %19 : vector<4x64x1xf32> to vector<4x64x64xf32>
    %21 = arith.subf %17, %20 : vector<4x64x64xf32>
    %22 = math.exp %21 : vector<4x64x64xf32>
    %cst_9 = arith.constant dense<0.000000e+00> : vector<4x64xf32>
    %23 = vector.multi_reduction <add>, %22, %cst_9 [2] : vector<4x64x64xf32> to vector<4x64xf32>
    %24 = vector.shape_cast %23 : vector<4x64xf32> to vector<4x64x1xf32>
    %25 = arith.truncf %22 : vector<4x64x64xf32> to vector<4x64x64xbf16>
    %26 = arith.truncf %12 : vector<4x64x32xf32> to vector<4x64x32xbf16>
    %cst_10 = arith.constant dense<0.000000e+00> : vector<4x64x32xf32>
    %27 = tpu.matmul %25, %26, %cst_10 {dimension_numbers = #tpu.dot_dimension_numbers<[2], [1], [1], [2], [0, 0, 0, 1, 1, 2], [0], [0]>} : vector<4x64x64xbf16>, vector<4x64x32xbf16>, vector<4x64x32xf32> -> vector<4x64x32xf32>
    %28 = tpu.reciprocal %24 {approx = true} : vector<4x64x1xf32> -> vector<4x64x1xf32>
    %29 = vector.broadcast %28 : vector<4x64x1xf32> to vector<4x64x32xf32>
    %30 = arith.mulf %27, %29 : vector<4x64x32xf32>
    %31 = vector.shape_cast %30 : vector<4x64x32xf32> to vector<256x32xf32>
    %c0_11 = arith.constant 0 : index
    %c0_12 = arith.constant 0 : index
    %32 = vector.load %arg7[%c0_11, %c0_12] : memref<256x64xf32, #tpu.memory_space<vmem>>, vector<256x32xf32>
    tpu.vector_store %arg7[%c0_11, %c0_12], %31 {strides = array<i32>} : memref<256x64xf32, #tpu.memory_space<vmem>>, vector<256x32xf32>,
    %33 = vector.extract_strided_slice %6 {offsets = [0, 32], sizes = [256, 32], strides = [1, 1]} : vector<256x192xf32> to vector<256x32xf32>
    %34 = vector.shape_cast %33 : vector<256x32xf32> to vector<4x64x32xf32>
    %35 = vector.extract_strided_slice %6 {offsets = [0, 96], sizes = [256, 32], strides = [1, 1]} : vector<256x192xf32> to vector<256x32xf32>
    %36 = vector.shape_cast %35 : vector<256x32xf32> to vector<4x64x32xf32>
    %37 = vector.extract_strided_slice %6 {offsets = [0, 160], sizes = [256, 32], strides = [1, 1]} : vector<256x192xf32> to vector<256x32xf32>
    %38 = vector.shape_cast %37 : vector<256x32xf32> to vector<4x64x32xf32>
    %cst_13 = arith.constant 0.176776692 : f32
    %39 = vector.broadcast %cst_13 : f32 to vector<4x64x32xf32>
    %40 = arith.mulf %34, %39 : vector<4x64x32xf32>
    %41 = arith.truncf %40 : vector<4x64x32xf32> to vector<4x64x32xbf16>
    %42 = arith.truncf %36 : vector<4x64x32xf32> to vector<4x64x32xbf16>
    %cst_14 = arith.constant dense<0.000000e+00> : vector<4x64x64xf32>
    %43 = tpu.matmul %41, %42, %cst_14 {dimension_numbers = #tpu.dot_dimension_numbers<[2], [2], [1], [1], [0, 0, 0, 1, 1, 1], [0], [0]>} : vector<4x64x32xbf16>, vector<4x64x32xbf16>, vector<4x64x64xf32> -> vector<4x64x64xf32>
    %cst_15 = arith.constant dense<0xFF800000> : vector<4x64xf32>
    %44 = vector.multi_reduction <maximumf>, %43, %cst_15 [2] : vector<4x64x64xf32> to vector<4x64xf32>
    %45 = vector.shape_cast %44 : vector<4x64xf32> to vector<4x64x1xf32>
    %46 = vector.broadcast %45 : vector<4x64x1xf32> to vector<4x64x64xf32>
    %47 = arith.subf %43, %46 : vector<4x64x64xf32>
    %48 = math.exp %47 : vector<4x64x64xf32>
    %cst_16 = arith.constant dense<0.000000e+00> : vector<4x64xf32>
    %49 = vector.multi_reduction <add>, %48, %cst_16 [2] : vector<4x64x64xf32> to vector<4x64xf32>
    %50 = vector.shape_cast %49 : vector<4x64xf32> to vector<4x64x1xf32>
    %51 = arith.truncf %48 : vector<4x64x64xf32> to vector<4x64x64xbf16>
    %52 = arith.truncf %38 : vector<4x64x32xf32> to vector<4x64x32xbf16>
    %cst_17 = arith.constant dense<0.000000e+00> : vector<4x64x32xf32>
    %53 = tpu.matmul %51, %52, %cst_17 {dimension_numbers = #tpu.dot_dimension_numbers<[2], [1], [1], [2], [0, 0, 0, 1, 1, 2], [0], [0]>} : vector<4x64x64xbf16>, vector<4x64x32xbf16>, vector<4x64x32xf32> -> vector<4x64x32xf32>
    %54 = tpu.reciprocal %50 {approx = true} : vector<4x64x1xf32> -> vector<4x64x1xf32>
    %55 = vector.broadcast %54 : vector<4x64x1xf32> to vector<4x64x32xf32>
    %56 = arith.mulf %53, %55 : vector<4x64x32xf32>
    %57 = vector.shape_cast %56 : vector<4x64x32xf32> to vector<256x32xf32>
    %c0_18 = arith.constant 0 : index
    %c32 = arith.constant 32 : index
    %58 = vector.load %arg7[%c0_18, %c32] : memref<256x64xf32, #tpu.memory_space<vmem>>, vector<256x32xf32>
    tpu.vector_store %arg7[%c0_18, %c32], %57 {strides = array<i32>} : memref<256x64xf32, #tpu.memory_space<vmem>>, vector<256x32xf32>,
    %c0_19 = arith.constant 0 : index
    %c0_20 = arith.constant 0 : index
    %59 = vector.load %arg7[%c0_19, %c0_20] : memref<256x64xf32, #tpu.memory_space<vmem>>, vector<256x64xf32>
    %60 = arith.truncf %59 : vector<256x64xf32> to vector<256x64xbf16>
    %c0_21 = arith.constant 0 : index
    %c0_22 = arith.constant 0 : index
    %61 = vector.load %arg4[%c0_21, %c0_22] : memref<64x64xbf16, #tpu.memory_space<vmem>>, vector<64x64xbf16>
    %cst_23 = arith.constant dense<0.000000e+00> : vector<256x64xf32>
    %62 = tpu.matmul %60, %61, %cst_23 {dimension_numbers = #tpu.dot_dimension_numbers<[1], [0], [0], [1], [0, 0, 1, 1], [], []>} : vector<256x64xbf16>, vector<64x64xbf16>, vector<256x64xf32> -> vector<256x64xf32>
    %c0_24 = arith.constant 0 : index
    %c0_25 = arith.constant 0 : index
    %63 = vector.load %arg5[%c0_24, %c0_25] : memref<1x64xf32, #tpu.memory_space<vmem>>, vector<1x64xf32>
    %64 = vector.broadcast %63 : vector<1x64xf32> to vector<256x64xf32>
    %65 = arith.addf %62, %64 : vector<256x64xf32>
    %66 = vector.shape_cast %65 : vector<256x64xf32> to vector<4x64x64xf32>
    %c0_26 = arith.constant 0 : index
    %c0_27 = arith.constant 0 : index
    %c0_28 = arith.constant 0 : index
    %67 = vector.load %arg6[%c0_26, %c0_27, %c0_28] : memref<4x64x64xf32, #tpu.memory_space<vmem>>, vector<4x64x64xf32>
    tpu.vector_store %arg6[%c0_26, %c0_27, %c0_28], %66 {strides = array<i32>} : memref<4x64x64xf32, #tpu.memory_space<vmem>>, vector<4x64x64xf32>,
    return
  }
  func.func @transform_0(%arg0: i32) -> (i32, i32, i32) {
    %c0_i32 = arith.constant 0 : i32
    %c0_i32_0 = arith.constant 0 : i32
    %c0_i32_1 = arith.constant 0 : i32
    return %arg0, %c0_i32, %c0_i32_0 : i32, i32, i32
  }
  func.func @transform_1(%arg0: i32) -> (i32, i32) {
    %c0_i32 = arith.constant 0 : i32
    %c0_i32_0 = arith.constant 0 : i32
    %c0_i32_1 = arith.constant 0 : i32
    return %c0_i32, %c0_i32_0 : i32, i32
  }
  func.func @transform_2(%arg0: i32) -> (i32, i32) {
    %c0_i32 = arith.constant 0 : i32
    %c0_i32_0 = arith.constant 0 : i32
    %c0_i32_1 = arith.constant 0 : i32
    return %c0_i32, %c0_i32_0 : i32, i32
  }
  func.func @transform_3(%arg0: i32) -> (i32, i32) {
    %c0_i32 = arith.constant 0 : i32
    %c0_i32_0 = arith.constant 0 : i32
    %c0_i32_1 = arith.constant 0 : i32
    return %c0_i32, %c0_i32_0 : i32, i32
  }
  func.func @transform_4(%arg0: i32) -> (i32, i32) {
    %c0_i32 = arith.constant 0 : i32
    %c0_i32_0 = arith.constant 0 : i32
    %c0_i32_1 = arith.constant 0 : i32
    return %c0_i32, %c0_i32_0 : i32, i32
  }
  func.func @transform_5(%arg0: i32) -> (i32, i32, i32) {
    %c0_i32 = arith.constant 0 : i32
    %c0_i32_0 = arith.constant 0 : i32
    %c0_i32_1 = arith.constant 0 : i32
    return %arg0, %c0_i32, %c0_i32_0 : i32, i32, i32
  }
}

</mosaic_0001>

<bundles_post_ra>
// kernel: tpu_custom_call.1
= control target key start
LH: loop header
LB: loop body
LE: loop exit
PB: predicated region body
PF: predicated region fallthrough
CT: control target
= control target key end

     0   :  { %10 = vsyncpa [#allocation4], 0  ;;  %s6611_s0 = inlined_call_operand.hbm [shape: bf16[32,64,64], index: 0, kind: input, shape index: {}]   ;;  %s6612_s1 = inlined_call_operand.hbm [shape: bf16[64,192], index: 1, kind: input, shape index: {}]   ;;  %s6613_s2 = inlined_call_operand.vmem [shape: f32[1,192], index: 2, kind: input, shape index: {}]   ;;  %s6614_s3 = inlined_call_operand.hbm [shape: bf16[64,64], index: 3, kind: input, shape index: {}]   ;;  %s6615_s4 = inlined_call_operand.vmem [shape: f32[1,64], index: 4, kind: input, shape index: {}]   ;;  %s6616_s5 = inlined_call_operand.hbm [shape: f32[32,64,64], index: 5, kind: output, shape index: {}]  }
   0x1   :  { %12 = vsyncpa [#allocation4 + $0x1], 0 }
   0x2   :  { %13 = vsyncpa [#allocation7], 0 }
   0x3   :  { %14 = vsyncpa [#allocation5], 0 }
   0x4   :  { %16 = vsyncpa [#allocation5 + $0x1], 0  ;;  %s4855_s18 = smov 0   ;;  %s4857_s19 = smov 0  }
   0x5   :  { %s4859_s20 = smov 0   ;;  %s4861_s21 = smov 0  }
   0x6 LB: > { %s4876_s22 = sadd.s32 4294967295, %s4809_s21   ;;  %s3655_s23 = sadd.s32 4294967294, %s4809_s21   ;;  %s4809_s21 = sphi %s4861_s21, %s6835_s21   ;;  %s4805_s20 = sphi %s4859_s20, %s6834_s20   ;;  %s4801_s19 = sphi %s4857_s19, %s6833_s19   ;;  %s4797_s18 = sphi %s4855_s18, %s6832_s18  }
   0x7   : > { %p42_p0 = scmp.ne.s32.totalorder %s4801_s19, %s4797_s18  ;;  %p6617_p1 = scmp.eq.s32.totalorder %s4876_s22, 0 }
   0x8   : > { %p156_p3 = scmp.eq.s32.totalorder %s3655_s23, 7  ;;  %p3656_p5 = scmp.ge.s32.totalorder %s4809_s21, 1 }
   0x9   : > { %p4885_p4 = por %p6617_p1, %p42_p0  ;;  %p163_p7 = scmp.lt.s32.totalorder %s4809_s21, 9 }
   0xa   : > { %p4890_p6 = por %p156_p3, %p42_p0  ;;  %s4811_s27 = smov [#allocation6]  }
   0xb   : > { %s6664_s24 = scalar_select %p4885_p4, 1, 0 }
   0xc   : > { %s6665_s25 = scalar_select %p4890_p6, 1, 0 }
   0xd   : > { %p4895_p8 = pnand %p3656_p5, %p163_p7  ;;  %s175_s28 = sshll.u32 %s4811_s27, 4  ;;  %s176_s28 = int_to_ptr.vmem [resolvable:$true] %s175_s28 }
   0xe   : > { %s4812_s30 = smov [#allocation8]   ;;  %s4653_s9 = scalar_lea.hbm %s6612_s1, 1024 }
   0xf   : > { %s6666_s26 = scalar_select %p4895_p8, 1, 0 }
  0x10   : > { %p4300_p9 = pneg %p4895_p8  ;;  %s191_s6 = sshll.u32 %s4812_s30, 4  ;;  %s4907_s6 = int_to_ptr.vmem [resolvable:$true] %s191_s6 }
  0x11   : > { %p4654_p11 = scmp.ne.s32.totalorder %s6612_s1, %s4653_s9  ;;  %p4660_p3 = scmp.lt.u32.totalorder %s4653_s9, %s6612_s1 }
  0x12   : > { %p4903_p10 = pnand %p4300_p9, %p6617_p1 }
  0x14   : > { %p4655_p12 = pneg %p4903_p10 }
  0x16   : > { %p4656_p13 = pnand %p4655_p12, %p4654_p11 }
  0x18   : > { %p4657_p0 = pneg %p4656_p13 }
  0x1a   : > { %p4662_p5 = pnand %p4660_p3, %p4657_p0 }
  0x1c   : > { %4665 = shalt.err (!%p4662_p5)
}
  0x1d   : > { %s4666_s14 = scalar_lea.vmem %s176_s28, 1024  ;;  %p4674_p2 = scmp.lt.s32.totalorder %s176_s28, %s176_s28 }
  0x1e   : > { %p4667_p7 = scmp.ne.s32.totalorder %s176_s28, %s4666_s14  ;;  %p4675_p6 = scmp.lt.s32.totalorder %s4666_s14, %s4666_s14 }
  0x20   : > { %p4669_p9 = pnand %p4667_p7, %p4655_p12  ;;  %p4676_p4 = por %p4675_p6, %p4674_p2 }
  0x22   : > { %p4670_p1 = pneg %p4669_p9 }
  0x24   : > { %p4677_p8 = pnand %p4676_p4, %p4670_p1 }
  0x26   : > { %4680 = shalt.err (!%p4677_p8)
}
  0x27   : > { %s4813_s15 = smov 128   ;;  %s4814_s16 = smov 8  }
  0x28   : > { %4303 = dma.hbm_to_vmem [thread:$0]  (!%p4903_p10), %s6612_s1, 1024, %s176_s28, [#allocation7], %s4813_s15, %s4813_s15, %s4814_s16  }
  0x29   : > { %s4681_s7 = scalar_lea.hbm %s6614_s3, 512 }
  0x2a   : > { %p4682_p11 = scmp.ne.s32.totalorder %s6614_s3, %s4681_s7  ;;  %p4688_p4 = scmp.lt.u32.totalorder %s4681_s7, %s6614_s3 }
  0x2c   : > { %p4684_p1 = pnand %p4682_p11, %p4655_p12 }
  0x2e   : > { %p4685_p2 = pneg %p4684_p1 }
  0x30   : > { %p4690_p6 = pnand %p4688_p4, %p4685_p2 }
  0x32   : > { %4693 = shalt.err (!%p4690_p6)
}
  0x33   : > { %s4694_s28 = scalar_lea.vmem %s4907_s6, 512  ;;  %p4702_p3 = scmp.lt.s32.totalorder %s4907_s6, %s4907_s6 }
  0x34   : > { %p4695_p8 = scmp.ne.s32.totalorder %s4907_s6, %s4694_s28  ;;  %p4703_p5 = scmp.lt.s32.totalorder %s4694_s28, %s4694_s28 }
  0x36   : > { %p4697_p13 = pnand %p4695_p8, %p4655_p12  ;;  %p4704_p7 = por %p4703_p5, %p4702_p3 }
  0x38   : > { %p4698_p0 = pneg %p4697_p13 }
  0x3a   : > { %p4705_p9 = pnand %p4704_p7, %p4698_p0 }
  0x3c   : > { %4708 = shalt.err (!%p4705_p9)
}
  0x3d   : > { %s4815_s12 = smov 64   ;;  %s4816_s13 = smov 4  }
  0x3e   : > { %4306 = dma.hbm_to_vmem [thread:$0]  (!%p4903_p10), %s6614_s3, 512, %s4907_s6, [#allocation7], %s4815_s12, %s4815_s12, %s4816_s13  }
  0x3f   : > { %s4960_s16 = sadd.s32 1, %s4809_s21   ;;  %s29_s23 = sadd.s32 1, %s4805_s20 }
  0x40   : > { %s26_s17 = ssub.s32 %s4809_s21, %s4960_s16  ;;  %p36_p11 = scmp.ne.s32.totalorder %s4805_s20, %s4801_s19 }
  0x41   : > { %p27_p12 = scmp.eq.s32.totalorder %s26_s17, 0  ;;  %p37_p1 = scmp.eq.s32.totalorder %s4809_s21, 0 }
  0x42   : > { %p6668_p4 = scmp.eq.s32.totalorder %s4876_s22, 7  ;;  %p4317_p8 = scmp.lt.s32.totalorder %s4809_s21, 8 }
  0x43   : > { %s4969_s27 = scalar_select %p27_p12, %s4805_s20, %s29_s23  }
  0x44   : > { %p38_p2 = por %p37_p1, %p36_p11  ;;  %p4973_p6 = por %p6668_p4, %p36_p11 }
  0x45   : > { %s208_s30 = sand.u32 1, %s4805_s20   ;;  %s3801_s6 = sshll.u32 %s4809_s21, 11 }
  0x46   : > { %s3660_s7 = sshll.u32 %s208_s30, 7  ;;  %s4983_s10 = scalar_lea.hbm %s6611_s0, %s3801_s6 }
  0x47   : > { %s212_s11 = scalar_lea.vmem [#allocation3], %s3660_s7  ;;  %p4987_p10 = pnand %p4317_p8, %p38_p2 }
  0x48   : > { %s220_s28 = sshll.u32 %s212_s11, 4  ;;  %s4991_s15 = scalar_lea.sflag [#allocation4], %s208_s30  ;;  %s4985_s28 = int_to_ptr.vmem [resolvable:$true] %s220_s28 }
  0x49   : > { %s4709_s17 = scalar_lea.hbm %s4983_s10, 2048  ;;  %p4711_p0 = pneg %p4987_p10 }
  0x4a   : > { %p4710_p13 = scmp.ne.s32.totalorder %s4983_s10, %s4709_s17  ;;  %s4714_s6 = scalar_lea.hbm %s6611_s0, 16384 }
  0x4b   : > { %p4715_p7 = scmp.lt.u32.totalorder %s4983_s10, %s6611_s0  ;;  %p4716_p9 = scmp.lt.u32.totalorder %s4714_s6, %s4709_s17 }
  0x4c   : > { %p4712_p3 = pnand %p4711_p0, %p4710_p13  ;;  %p4718_p11 = scmp.lt.u32.totalorder %s4709_s17, %s4983_s10 }
  0x4d   : > { %p4717_p12 = por %p4716_p9, %p4715_p7 }
  0x4e   : > { %p4713_p5 = pneg %p4712_p3 }
  0x4f   : > { %p4719_p1 = por %p4718_p11, %p4717_p12 }
  0x51   : > { %p4720_p2 = pnand %p4719_p1, %p4713_p5 }
  0x53   : > { %4723 = shalt.err (!%p4720_p2)
}
  0x54   : > { %s4724_s30 = scalar_lea.vmem %s4985_s28, 2048  ;;  %s4817_s11 = smov [#allocation3]  }
  0x55   : > { %p4725_p4 = scmp.ne.s32.totalorder %s4985_s28, %s4724_s30  ;;  %s4729_s23 = sshll.u32 %s4817_s11, 4  ;;  %s4730_s23 = int_to_ptr.vmem [resolvable:$false] %s4729_s23 }
  0x56   : > { %s4731_s7 = scalar_lea.vmem %s4730_s23, 4096  ;;  %p4732_p3 = scmp.lt.s32.totalorder %s4985_s28, %s4730_s23 }
  0x57   : > { %p4727_p8 = pnand %p4725_p4, %p4711_p0  ;;  %p4733_p7 = scmp.lt.s32.totalorder %s4731_s7, %s4724_s30 }
  0x59   : > { %p4728_p13 = pneg %p4727_p8  ;;  %p4734_p9 = por %p4733_p7, %p4732_p3 }
  0x5b   : > { %p4735_p12 = pnand %p4734_p9, %p4728_p13 }
  0x5d   : > { %4738 = shalt.err (!%p4735_p12)
}
  0x5e   : > { %4310 = dma.hbm_to_vmem [thread:$0]  (!%p4987_p10), %s4983_s10, 2048, %s4985_s28, %s4991_s15, %s4815_s12, %s4815_s12, %s4816_s13  }
  0x5f   : > { %p6671_p0 = scmp.ne.s32.totalorder %s6666_s26, 0 }
  0x61   : > { %232 = sbr.rel (%p6671_p0) target bundleno = 2110 (0x83e), region = 40 }
  0x68   : > { %s5025_s17 = sand.u32 1, %s4801_s19   ;;  %p6672_p5 = scmp.ne.s32.totalorder %s6664_s24, 0 }
  0x69   : > { %s3665_s6 = sshll.u32 %s5025_s17, 7  ;;  %s235_s8 = scalar_lea.sflag [#allocation4], %s5025_s17 }
  0x6a   : > { %s5029_s9 = scalar_lea.vmem [#allocation3], %s3665_s6 }
  0x6b   : > { %4784 = dma.done.wait (%p6672_p5), %s235_s8, 2048  }
  0x6c   : > { %4786 = vsyncadd (%p6672_p5), %s235_s8, 4294965248  ;;  %p6673_p10 = scmp.eq.s32.totalorder %s4876_s22, 0 }
  0x6e   : > { %4788 = dma.done.wait (%p6673_p10), [#allocation7], 1536   ;;  %p6674_p11 = pmov %p6673_p10 }
  0x6f   : > { %v4818_v0 = vmov 0   ;;  %v4365_v1 = vld [vmem:[#allocation6 + $0x4] ss:$8 sps:$4 sm:$0xff]   ;;  %v4367_v2 = vld [vmem:[#allocation6] ss:$8 sps:$4 sm:$0xff]   ;;  %v4384_v10 = vld [vmem:[%s5029_s9 + $0x58] sm:$0xff]   ;;  %v318_v25 = vlaneseq }
  0x70   : > { %4790 = vsyncadd (%p6674_p11), [#allocation7], 4294965760  ;;  %529 = vmatprep.mubr.bf16.mxu0 %v4818_v0  ;;  %639 = vmatprep.mubr.bf16.mxu1 %v4818_v0  ;;  %v4368_v3 = vld [vmem:[#allocation6 + $0x14] ss:$8 sps:$4 sm:$0xff]   ;;  %v4370_v4 = vld [vmem:[#allocation6 + $0x10] ss:$8 sps:$4 sm:$0xff]  }
  0x71   : > { %497 = vmatprep.subr.bf16.mxu0 %v4365_v1  ;;  %4248 = vmatprep.subr.bf16.mxu1 %v4365_v1  ;;  %v4371_v5 = vld [vmem:[#allocation6 + $0x24] ss:$8 sps:$4 sm:$0xff]   ;;  %v4373_v6 = vld [vmem:[#allocation6 + $0x20] ss:$8 sps:$4 sm:$0xff]   ;;  %v4374_v7 = vld [vmem:[#allocation6 + $0x34] ss:$8 sps:$4 sm:$0xff]  }
  0x72   : > { %498 = vmatpush1.bf16.msra.mxu0 %v4367_v2  ;;  %4252 = vmatpush1.bf16.msra.mxu1 %v4367_v2  ;;  %v4376_v8 = vld [vmem:[#allocation6 + $0x30] ss:$8 sps:$4 sm:$0xff]   ;;  %v4377_v9 = vld [vmem:[%s5029_s9] sm:$0xff]   ;;  %vm448_vm0 = vcmask 523264   ;;  %v4378_v11 = vld [vmem:[%s5029_s9 + $0x8] sm:$0xff]   ;;  %v319_v26 = vshrl.u32 %v318_v25, 7 }
  0x73   : > { %499 = vmatprep.subr.bf16.mxu0 %v4368_v3  ;;  %4249 = vmatprep.subr.bf16.mxu1 %v4368_v3  ;;  %v4386_v12 = vld [vmem:[%s5029_s9 + $0x60] sm:$0xff]   ;;  %v4379_v13 = vld [vmem:[%s5029_s9 + $0x10] sm:$0xff]   ;;  %v4388_v14 = vld [vmem:[%s5029_s9 + $0x68] sm:$0xff]   ;;  %vm766_vm1 = vcmask 261120   ;;  %s4819_s12 = smov 64   ;;  %s4820_s13 = smov 32  }
  0x74   : > { %v4380_v15 = vld [vmem:[%s5029_s9 + $0x18] sm:$0xff]   ;;  %v4390_v16 = vld [vmem:[%s5029_s9 + $0x70] sm:$0xff]   ;;  %v4381_v17 = vld [vmem:[%s5029_s9 + $0x20] sm:$0xff]   ;;  %v320_v27 = vsub.s32 0, %v319_v26  ;;  %v324_v29 = vsub.s32 1, %v319_v26  ;;  %s4821_s10 = smov 96  }
  0x75   : > { %v4392_v18 = vld [vmem:[%s5029_s9 + $0x78] sm:$0xff]   ;;  %v4382_v19 = vld [vmem:[%s5029_s9 + $0x28] sm:$0xff]   ;;  %v4383_v20 = vld [vmem:[%s5029_s9 + $0x30] sm:$0xff]   ;;  %vm3187_vm2 = vcmask 523520   ;;  %s3668_s28 = sshll.u32 %s5025_s17, 8  ;;  %s3803_s11 = sshll.u32 %s4876_s22, 12 }
  0x76   : > { %500 = vmatpush1.bf16.msra.mxu0 %v4370_v4  ;;  %4253 = vmatpush1.bf16.msra.mxu1 %v4370_v4  ;;  %v4385_v21 = vld [vmem:[%s5029_s9 + $0x38] sm:$0xff]   ;;  %v4387_v22 = vld [vmem:[%s5029_s9 + $0x40] sm:$0xff]   ;;  %v4389_v23 = vld [vmem:[%s5029_s9 + $0x48] sm:$0xff]   ;;  %s6465_s30 = scalar_lea.vmem [#allocation9], %s3668_s28  ;;  %s6559_s8 = scalar_lea.hbm %s6616_s5, %s3803_s11 }
  0x77   : > { %501 = vmatprep.subr.bf16.mxu0 %v4371_v5  ;;  %4250 = vmatprep.subr.bf16.mxu1 %v4371_v5  ;;  %v4391_v24 = vld [vmem:[%s5029_s9 + $0x50] sm:$0xff]   ;;  %v316_v28 = vld [vmem:[%s6613_s2] sm:$0x3]  ;;  %s3563_s23 = sshll.u32 %s6465_s30, 4  ;;  %s3549_s22 = scalar_lea.sflag [#allocation5], %s5025_s17  ;;  %s6561_s23 = int_to_ptr.vmem [resolvable:$true] %s3563_s23 }
  0x78   : > { %v5090_v30 = vrot.slane %v316_v28, %v320_v27  ;;  %v5092_v32 = vrot.slane %v316_v28, %v324_v29  ;;  %s4739_s9 = scalar_lea.vmem %s6561_s23, 4096  ;;  %s4822_s24 = smov [#allocation9]  }
  0x79   : > { %p4740_p1 = scmp.ne.s32.totalorder %s6561_s23, %s4739_s9  ;;  %s4743_s26 = sshll.u32 %s4822_s24, 4  ;;  %s4744_s26 = int_to_ptr.vmem [resolvable:$false] %s4743_s26 }
  0x7a   : > { %502 = vmatpush1.bf16.msra.mxu0 %v4373_v6  ;;  %4254 = vmatpush1.bf16.msra.mxu1 %v4373_v6  ;;  %p4746_p8 = scmp.lt.s32.totalorder %s6561_s23, %s4744_s26 }
  0x7b   : > { %503 = vmatprep.subr.bf16.mxu0 %v4374_v7  ;;  %4251 = vmatprep.subr.bf16.mxu1 %v4374_v7  ;;  %p4741_p2 = pnand %p4740_p1, %p4973_p6 }
  0x7d   : > { %p4742_p4 = pneg %p4741_p2 }
  0x7e   : > { %504 = vmatpush1.bf16.msra.mxu0 %v4376_v8  ;;  %4255 = vmatpush1.bf16.msra.mxu1 %v4376_v8 }
  0x81   : > { %3693 = vmatmul.mubr.msk.bf16.vlgmr.msra.gmra.mrb[0].mxu0 %vm448_vm0, %v4377_v9  ;;  %3704 = vmatmul.mubr.msk.bf16.vlgmr.msra.gmra.mrb[0].mxu1 %vm448_vm0, %v4384_v10 }
  0x82   : > { %539 = vmatprep.mubr.bf16.mxu0 %v4818_v0  ;;  %649 = vmatprep.mubr.bf16.mxu1 %v4818_v0 }
  0x89   : > { %3694 = vmatmul.mubr.msk.bf16.gmra.mrb[4].mxu0 %vm448_vm0, %v4378_v11  ;;  %3705 = vmatmul.mubr.msk.bf16.gmra.mrb[4].mxu1 %vm448_vm0, %v4386_v12 }
  0x8a   : > { %549 = vmatprep.mubr.bf16.mxu0 %v4818_v0  ;;  %659 = vmatprep.mubr.bf16.mxu1 %v4818_v0 }
  0x91   : > { %3695 = vmatmul.mubr.msk.bf16.gmra.mrb[8].mxu0 %vm448_vm0, %v4379_v13  ;;  %3706 = vmatmul.mubr.msk.bf16.gmra.mrb[8].mxu1 %vm448_vm0, %v4388_v14 }
  0x92   : > { %559 = vmatprep.mubr.bf16.mxu0 %v4818_v0  ;;  %669 = vmatprep.mubr.bf16.mxu1 %v4818_v0 }
  0x99   : > { %3696 = vmatmul.mubr.msk.bf16.gmra.mrb[12].mxu0 %vm448_vm0, %v4380_v15  ;;  %3707 = vmatmul.mubr.msk.bf16.gmra.mrb[12].mxu1 %vm448_vm0, %v4390_v16 }
  0x9a   : > { %569 = vmatprep.mubr.bf16.mxu0 %v4818_v0  ;;  %679 = vmatprep.mubr.bf16.mxu1 %v4818_v0 }
  0xa1   : > { %3697 = vmatmul.mubr.msk.bf16.gmra.mrb[16].mxu0 %vm448_vm0, %v4381_v17  ;;  %3708 = vmatmul.mubr.msk.bf16.gmra.mrb[16].mxu1 %vm448_vm0, %v4392_v18 }
  0xa2   : > { %579 = vmatprep.mubr.bf16.mxu0 %v4818_v0 }
  0xa9   : > { %3698 = vmatmul.mubr.msk.bf16.gmra.mrb[20].mxu0 %vm448_vm0, %v4382_v19 }
  0xaa   : > { %589 = vmatprep.mubr.bf16.mxu0 %v4818_v0 }
  0xb1   : > { %3699 = vmatmul.mubr.msk.bf16.gmra.mrb[24].mxu0 %vm448_vm0, %v4383_v20 }
  0xb2   : > { %599 = vmatprep.mubr.bf16.mxu0 %v4818_v0 }
  0xb9   : > { %3700 = vmatmul.mubr.msk.bf16.gmra.mrb[28].mxu0 %vm448_vm0, %v4385_v21 }
  0xba   : > { %609 = vmatprep.mubr.bf16.mxu0 %v4818_v0 }
  0xc1   : > { %3701 = vmatmul.mubr.msk.bf16.gmra.mrb[32].mxu0 %vm448_vm0, %v4387_v22 }
  0xc2   : > { %619 = vmatprep.mubr.bf16.mxu0 %v4818_v0 }
  0xc9   : > { %3702 = vmatmul.mubr.msk.bf16.gmra.mrb[36].mxu0 %vm448_vm0, %v4389_v23 }
  0xca   : > { %629 = vmatprep.mubr.bf16.mxu0 %v4818_v0 }
  0xd1   : > { %3703 = vmatmul.mubr.msk.bf16.gmra.mrb[40].mxu0 %vm448_vm0, %v4391_v24 }
 0x154   : > { %v531_v31 = vpop.f32.mrb[0].mxu0  ;;  %v641_v33 = vpop.f32.mrb[0].mxu1 }
 0x155   : > { %v532_v34 = vadd.f32 %v531_v31, %v5090_v30  ;;  %v533_v35 = vpop.f32.mrb[1].mxu0  ;;  %v642_v36 = vadd.f32 %v641_v33, %v5090_v30  ;;  %v643_v37 = vpop.f32.mrb[1].mxu1 }
 0x156   : > { %v535_v38 = vpop.f32.mrb[2].mxu0  ;;  %v644_v39 = vadd.f32 %v643_v37, %v5092_v32  ;;  %v645_v40 = vpop.f32.mrb[2].mxu1  ;;  %v534_v47 = vadd.f32 %v533_v35, %v5092_v32 }
 0x157   : > { %v536_v41 = vadd.f32 %v535_v38, %v5090_v30  ;;  %v537_v42 = vpop.f32.mrb[3].mxu0  ;;  %v712_v43 = vmul.f32 0.17677669, %v642_v36  ;;  %v646_v44 = vadd.f32 %v645_v40, %v5090_v30  ;;  %v647_v45 = vpop.f32.mrb[3].mxu1  ;;  %v690_v46 = vmul.f32 0.17677669, %v532_v34 }
 0x158   : > { %v538_v48 = vadd.f32 %v537_v42, %v5092_v32  ;;  %v648_v49 = vadd.f32 %v647_v45, %v5092_v32 }
 0x159   : > { %v691_v50 = vmul.f32 0.17677669, %v536_v41  ;;  %v5102_v51 = vpack.c.bf16 %v536_v41, %v532_v34  ;;  %v713_v52 = vmul.f32 0.17677669, %v646_v44  ;;  %v5104_v53 = vpack.c.bf16 %v646_v44, %v642_v36 }
 0x15a   : > { %v5106_v54 = vpack.c.bf16 %v538_v48, %v534_v47  ;;  %v5108_v55 = vpack.c.bf16 %v648_v49, %v644_v39 }
 0x15b   : > { %v5110_v56 = vpack.c.bf16 %v691_v50, %v690_v46  ;;  %758 = vrot.lane.b32.xlu0 %v5102_v51, %s4819_s12  ;;  %v5114_v57 = vpack.c.bf16 %v713_v52, %v712_v43 }
 0x15c   : > { %6675 = vst [vmem:[#allocation13_spill] sm:$0xff] %v5106_v54  ;;  %v541_v58 = vpop.f32.mrb[4].mxu0  ;;  %4016 = vmatprep.subr.bf16.mxu0 %v5106_v54  ;;  %v651_v59 = vpop.f32.mrb[4].mxu1 }
 0x15d   : > { %6676 = vst [vmem:[#allocation14_spill] sm:$0xff] %v5114_v57  ;;  %v542_v60 = vadd.f32 %v541_v58, %v5090_v30  ;;  %v543_v61 = vpop.f32.mrb[5].mxu0  ;;  %3960 = vmatprep.mubr.msk.bf16.mxu1 %vm766_vm1, %v5110_v56  ;;  %4017 = vmatpush3.bf16.msra.mxu0 %v5106_v54  ;;  %v652_v62 = vadd.f32 %v651_v59, %v5090_v30  ;;  %v653_v63 = vpop.f32.mrb[5].mxu1 }
 0x15e   : > { %v545_v0 = vpop.f32.mrb[6].mxu0  ;;  %v654_v1 = vadd.f32 %v653_v63, %v5092_v32  ;;  %v655_v2 = vpop.f32.mrb[6].mxu1  ;;  %v544_v9 = vadd.f32 %v543_v61, %v5092_v32 }
 0x15f   : > { %v546_v3 = vadd.f32 %v545_v0, %v5090_v30  ;;  %v547_v4 = vpop.f32.mrb[7].mxu0  ;;  %v714_v5 = vmul.f32 0.17677669, %v652_v62  ;;  %v656_v6 = vadd.f32 %v655_v2, %v5090_v30  ;;  %v657_v7 = vpop.f32.mrb[7].mxu1  ;;  %v692_v8 = vmul.f32 0.17677669, %v542_v60 }
 0x160   : > { %v548_v10 = vadd.f32 %v547_v4, %v5092_v32  ;;  %v658_v11 = vadd.f32 %v657_v7, %v5092_v32 }
 0x161   : > { %v693_v12 = vmul.f32 0.17677669, %v546_v3  ;;  %v5128_v13 = vpack.c.bf16 %v546_v3, %v542_v60  ;;  %v715_v14 = vmul.f32 0.17677669, %v656_v6  ;;  %v5130_v15 = vpack.c.bf16 %v656_v6, %v652_v62 }
 0x162   : > { %v5132_v16 = vpack.c.bf16 %v548_v10, %v544_v9  ;;  %v5134_v17 = vpack.c.bf16 %v658_v11, %v654_v1 }
 0x163   : > { %760 = vrot.lane.b32.xlu0 %v5128_v13, %s4819_s12  ;;  %v5138_v18 = vpack.c.bf16 %v715_v14, %v714_v5  ;;  %v5140_v19 = vpack.c.bf16 %v693_v12, %v692_v8 }
 0x164   : > { %6677 = vst [vmem:[#allocation15_spill] sm:$0xff] %v5132_v16  ;;  %v551_v20 = vpop.f32.mrb[8].mxu0  ;;  %4018 = vmatprep.subr.bf16.mxu0 %v5132_v16  ;;  %v661_v21 = vpop.f32.mrb[8].mxu1 }
 0x165   : > { %6678 = vst [vmem:[#allocation16_spill] sm:$0xff] %v5138_v18  ;;  %v552_v22 = vadd.f32 %v551_v20, %v5090_v30  ;;  %v553_v23 = vpop.f32.mrb[9].mxu0  ;;  %4019 = vmatpush3.bf16.msra.mxu0 %v5132_v16  ;;  %v662_v24 = vadd.f32 %v661_v21, %v5090_v30  ;;  %v663_v25 = vpop.f32.mrb[9].mxu1 }
 0x166   : > { %v555_v26 = vpop.f32.mrb[10].mxu0  ;;  %v664_v27 = vadd.f32 %v663_v25, %v5092_v32  ;;  %v665_v28 = vpop.f32.mrb[10].mxu1  ;;  %v554_v37 = vadd.f32 %v553_v23, %v5092_v32 }
 0x167   : > { %v556_v29 = vadd.f32 %v555_v26, %v5090_v30  ;;  %v557_v31 = vpop.f32.mrb[11].mxu0  ;;  %v716_v33 = vmul.f32 0.17677669, %v662_v24  ;;  %v666_v34 = vadd.f32 %v665_v28, %v5090_v30  ;;  %v667_v35 = vpop.f32.mrb[11].mxu1  ;;  %v694_v36 = vmul.f32 0.17677669, %v552_v22 }
 0x168   : > { %v558_v38 = vadd.f32 %v557_v31, %v5092_v32  ;;  %v668_v39 = vadd.f32 %v667_v35, %v5092_v32 }
 0x169   : > { %v695_v40 = vmul.f32 0.17677669, %v556_v29  ;;  %v5152_v41 = vpack.c.bf16 %v556_v29, %v552_v22  ;;  %v717_v42 = vmul.f32 0.17677669, %v666_v34  ;;  %v5154_v43 = vpack.c.bf16 %v666_v34, %v662_v24 }
 0x16a   : > { %v5156_v44 = vpack.c.bf16 %v558_v38, %v554_v37  ;;  %v5158_v45 = vpack.c.bf16 %v668_v39, %v664_v27 }
 0x16b   : > { %v5160_v46 = vpack.c.bf16 %v695_v40, %v694_v36  ;;  %762 = vrot.lane.b32.xlu1 %v5152_v41, %s4819_s12  ;;  %v5164_v47 = vpack.c.bf16 %v717_v42, %v716_v33 }
 0x16c   : > { %6679 = vst [vmem:[#allocation17_spill] sm:$0xff] %v5156_v44  ;;  %v561_v48 = vpop.f32.mrb[12].mxu0  ;;  %4020 = vmatprep.subr.bf16.mxu0 %v5156_v44  ;;  %v671_v49 = vpop.f32.mrb[12].mxu1 }
 0x16d   : > { %v562_v50 = vadd.f32 %v561_v48, %v5090_v30  ;;  %v563_v52 = vpop.f32.mrb[13].mxu0  ;;  %4021 = vmatpush3.bf16.msra.mxu0 %v5156_v44  ;;  %v672_v58 = vadd.f32 %v671_v49, %v5090_v30  ;;  %v673_v59 = vpop.f32.mrb[13].mxu1 }
 0x16e   : > { %v565_v60 = vpop.f32.mrb[14].mxu0  ;;  %v674_v61 = vadd.f32 %v673_v59, %v5092_v32  ;;  %v675_v62 = vpop.f32.mrb[14].mxu1  ;;  %v564_v5 = vadd.f32 %v563_v52, %v5092_v32 }
 0x16f   : > { %v566_v63 = vadd.f32 %v565_v60, %v5090_v30  ;;  %v567_v0 = vpop.f32.mrb[15].mxu0  ;;  %v718_v1 = vmul.f32 0.17677669, %v672_v58  ;;  %v676_v2 = vadd.f32 %v675_v62, %v5090_v30  ;;  %v677_v3 = vpop.f32.mrb[15].mxu1  ;;  %v696_v4 = vmul.f32 0.17677669, %v562_v50 }
 0x170   : > { %v568_v6 = vadd.f32 %v567_v0, %v5092_v32  ;;  %v678_v7 = vadd.f32 %v677_v3, %v5092_v32 }
 0x171   : > { %v697_v8 = vmul.f32 0.17677669, %v566_v63  ;;  %v5176_v9 = vpack.c.bf16 %v566_v63, %v562_v50  ;;  %v719_v10 = vmul.f32 0.17677669, %v676_v2  ;;  %v5178_v11 = vpack.c.bf16 %v676_v2, %v672_v58 }
 0x172   : > { %v5180_v12 = vpack.c.bf16 %v568_v6, %v564_v5  ;;  %v5182_v14 = vpack.c.bf16 %v678_v7, %v674_v61 }
 0x173   : > { %6680 = vst [vmem:[#allocation18_spill] sm:$0xff] %v5178_v11  ;;  %v5184_v20 = vpack.c.bf16 %v697_v8, %v696_v4  ;;  %764 = vrot.lane.b32.xlu1 %v5176_v9, %s4819_s12  ;;  %v5188_v21 = vpack.c.bf16 %v719_v10, %v718_v1 }
 0x174   : > { %6681 = vst [vmem:[#allocation19_spill] sm:$0xff] %v5180_v12  ;;  %v571_v22 = vpop.f32.mrb[16].mxu0  ;;  %4022 = vmatprep.subr.bf16.mxu0 %v5180_v12  ;;  %v681_v23 = vpop.f32.mrb[16].mxu1 }
 0x175   : > { %6682 = vst [vmem:[#allocation20_spill] sm:$0xff] %v5188_v21  ;;  %v572_v24 = vadd.f32 %v571_v22, %v5090_v30  ;;  %v573_v25 = vpop.f32.mrb[17].mxu0  ;;  %4023 = vmatpush3.bf16.msra.mxu0 %v5180_v12  ;;  %v682_v26 = vadd.f32 %v681_v23, %v5090_v30  ;;  %v683_v27 = vpop.f32.mrb[17].mxu1 }
 0x176   : > { %v575_v28 = vpop.f32.mrb[18].mxu0  ;;  %v684_v29 = vadd.f32 %v683_v27, %v5092_v32  ;;  %v685_v31 = vpop.f32.mrb[18].mxu1  ;;  %v574_v39 = vadd.f32 %v573_v25, %v5092_v32 }
 0x177   : > { %v576_v33 = vadd.f32 %v575_v28, %v5090_v30  ;;  %v577_v34 = vpop.f32.mrb[19].mxu0  ;;  %v720_v35 = vmul.f32 0.17677669, %v682_v26  ;;  %v686_v36 = vadd.f32 %v685_v31, %v5090_v30  ;;  %v687_v37 = vpop.f32.mrb[19].mxu1  ;;  %v698_v38 = vmul.f32 0.17677669, %v572_v24 }
 0x178   : > { %v578_v40 = vadd.f32 %v577_v34, %v5092_v32  ;;  %v688_v42 = vadd.f32 %v687_v37, %v5092_v32 }
 0x179   : > { %v699_v48 = vmul.f32 0.17677669, %v576_v33  ;;  %v5200_v49 = vpack.c.bf16 %v576_v33, %v572_v24  ;;  %v721_v50 = vmul.f32 0.17677669, %v686_v36  ;;  %v5202_v52 = vpack.c.bf16 %v686_v36, %v682_v26 }
 0x17a   : > { %v5204_v58 = vpack.c.bf16 %v578_v40, %v574_v39  ;;  %v5206_v59 = vpack.c.bf16 %v688_v42, %v684_v29 }
 0x17b   : > { %v5208_v60 = vpack.c.bf16 %v699_v48, %v698_v38  ;;  %860 = vrot.lane.b32.xlu0 %v5200_v49, %s4819_s12  ;;  %v5212_v61 = vpack.c.bf16 %v721_v50, %v720_v35 }
 0x17c   : > { %6683 = vst [vmem:[#allocation21_spill] sm:$0xff] %v5204_v58  ;;  %v581_v62 = vpop.f32.mrb[20].mxu0 }
 0x17d   : > { %v582_v63 = vadd.f32 %v581_v62, %v5090_v30  ;;  %v583_v0 = vpop.f32.mrb[21].mxu0 }
 0x17e   : > { %v585_v1 = vpop.f32.mrb[22].mxu0  ;;  %v584_v4 = vadd.f32 %v583_v0, %v5092_v32 }
 0x17f   : > { %v586_v2 = vadd.f32 %v585_v1, %v5090_v30  ;;  %v587_v3 = vpop.f32.mrb[23].mxu0  ;;  %v700_v6 = vmul.f32 0.17677669, %v582_v63 }
 0x180   : > { %v588_v5 = vadd.f32 %v587_v3, %v5092_v32 }
 0x181   : > { %v701_v7 = vmul.f32 0.17677669, %v586_v2  ;;  %v5218_v8 = vpack.c.bf16 %v586_v2, %v582_v63 }
 0x182   : > { %v5220_v10 = vpack.c.bf16 %v588_v5, %v584_v4 }
 0x183   : > { %v5222_v22 = vpack.c.bf16 %v701_v7, %v700_v6  ;;  %862 = vrot.lane.b32.xlu1 %v5218_v8, %s4819_s12 }
 0x184   : > { %6684 = vst [vmem:[#allocation22_spill] sm:$0xff] %v5220_v10  ;;  %v591_v23 = vpop.f32.mrb[24].mxu0 }
 0x185   : > { %v592_v24 = vadd.f32 %v591_v23, %v5090_v30  ;;  %v593_v25 = vpop.f32.mrb[25].mxu0 }
 0x186   : > { %v595_v26 = vpop.f32.mrb[26].mxu0  ;;  %v594_v29 = vadd.f32 %v593_v25, %v5092_v32 }
 0x187   : > { %v596_v27 = vadd.f32 %v595_v26, %v5090_v30  ;;  %v597_v28 = vpop.f32.mrb[27].mxu0  ;;  %v702_v33 = vmul.f32 0.17677669, %v592_v24 }
 0x188   : > { %v598_v31 = vadd.f32 %v597_v28, %v5092_v32 }
 0x189   : > { %v703_v34 = vmul.f32 0.17677669, %v596_v27  ;;  %v5230_v35 = vpack.c.bf16 %v596_v27, %v592_v24 }
 0x18a   : > { %v5232_v36 = vpack.c.bf16 %v598_v31, %v594_v29 }
 0x18b   : > { %v5234_v37 = vpack.c.bf16 %v703_v34, %v702_v33  ;;  %864 = vrot.lane.b32.xlu0 %v5230_v35, %s4819_s12 }
 0x18c   : > { %6685 = vst [vmem:[#allocation23_spill] sm:$0xff] %v5232_v36  ;;  %v601_v38 = vpop.f32.mrb[28].mxu0 }
 0x18d   : > { %v602_v39 = vadd.f32 %v601_v38, %v5090_v30  ;;  %v603_v40 = vpop.f32.mrb[29].mxu0 }
 0x18e   : > { %v605_v42 = vpop.f32.mrb[30].mxu0  ;;  %v604_v62 = vadd.f32 %v603_v40, %v5092_v32 }
 0x18f   : > { %v606_v48 = vadd.f32 %v605_v42, %v5090_v30  ;;  %v607_v50 = vpop.f32.mrb[31].mxu0  ;;  %v704_v0 = vmul.f32 0.17677669, %v602_v39 }
 0x190   : > { %v608_v63 = vadd.f32 %v607_v50, %v5092_v32 }
 0x191   : > { %v705_v1 = vmul.f32 0.17677669, %v606_v48  ;;  %v5242_v2 = vpack.c.bf16 %v606_v48, %v602_v39 }
 0x192   : > { %v5244_v3 = vpack.c.bf16 %v608_v63, %v604_v62 }
 0x193   : > { %v5246_v4 = vpack.c.bf16 %v705_v1, %v704_v0  ;;  %866 = vrot.lane.b32.xlu1 %v5242_v2, %s4819_s12 }
 0x194   : > { %6686 = vst [vmem:[#allocation24_spill] sm:$0xff] %v5244_v3  ;;  %v611_v5 = vpop.f32.mrb[32].mxu0 }
 0x195   : > { %v612_v6 = vadd.f32 %v611_v5, %v5090_v30  ;;  %v613_v7 = vpop.f32.mrb[33].mxu0 }
 0x196   : > { %v615_v23 = vpop.f32.mrb[34].mxu0  ;;  %v614_v26 = vadd.f32 %v613_v7, %v5092_v32 }
 0x197   : > { %v616_v24 = vadd.f32 %v615_v23, %v5090_v30  ;;  %v617_v25 = vpop.f32.mrb[35].mxu0  ;;  %v706_v28 = vmul.f32 0.17677669, %v612_v6 }
 0x198   : > { %v618_v27 = vadd.f32 %v617_v25, %v5092_v32 }
 0x199   : > { %v707_v29 = vmul.f32 0.17677669, %v616_v24  ;;  %v5254_v31 = vpack.c.bf16 %v616_v24, %v612_v6 }
 0x19a   : > { %v5256_v33 = vpack.c.bf16 %v618_v27, %v614_v26 }
 0x19b   : > { %v5258_v34 = vpack.c.bf16 %v707_v29, %v706_v28  ;;  %961 = vrot.lane.b32.xlu0 %v5254_v31, %s4819_s12 }
 0x19c   : > { %v621_v38 = vpop.f32.mrb[36].mxu0  ;;  %4048 = vmatprep.subr.bf16.mxu0 %v5256_v33 }
 0x19d   : > { %v622_v39 = vadd.f32 %v621_v38, %v5090_v30  ;;  %v623_v40 = vpop.f32.mrb[37].mxu0 }
 0x19e   : > { %v625_v42 = vpop.f32.mrb[38].mxu0  ;;  %v624_v62 = vadd.f32 %v623_v40, %v5092_v32 }
 0x19f   : > { %v626_v48 = vadd.f32 %v625_v42, %v5090_v30  ;;  %v627_v50 = vpop.f32.mrb[39].mxu0  ;;  %v708_v0 = vmul.f32 0.17677669, %v622_v39 }
 0x1a0   : > { %v628_v63 = vadd.f32 %v627_v50, %v5092_v32 }
 0x1a1   : > { %v709_v1 = vmul.f32 0.17677669, %v626_v48  ;;  %v5267_v5 = vpack.c.bf16 %v626_v48, %v622_v39 }
 0x1a2   : > { %v5269_v6 = vpack.c.bf16 %v628_v63, %v624_v62 }
 0x1a3   : > { %v5271_v7 = vpack.c.bf16 %v709_v1, %v708_v0  ;;  %963 = vrot.lane.b32.xlu1 %v5267_v5, %s4819_s12 }
 0x1a4   : > { %v631_v23 = vpop.f32.mrb[40].mxu0 }
 0x1a5   : > { %v632_v24 = vadd.f32 %v631_v23, %v5090_v30  ;;  %v633_v25 = vpop.f32.mrb[41].mxu0 }
 0x1a6   : > { %v635_v26 = vpop.f32.mrb[42].mxu0  ;;  %v634_v29 = vadd.f32 %v633_v25, %v5092_v32 }
 0x1a7   : > { %v636_v27 = vadd.f32 %v635_v26, %v5090_v30  ;;  %967 = vrot.lane.b32.xlu1 %v5104_v53, %s4819_s12  ;;  %v637_v28 = vpop.f32.mrb[43].mxu0  ;;  %v710_v39 = vmul.f32 0.17677669, %v632_v24 }
 0x1a8   : > { %v638_v38 = vadd.f32 %v637_v28, %v5092_v32 }
 0x1a9   : > { %v711_v40 = vmul.f32 0.17677669, %v636_v27  ;;  %v5281_v42 = vpack.c.bf16 %v636_v27, %v632_v24 }
 0x1aa   : > { %v5283_v48 = vpack.c.bf16 %v638_v38, %v634_v29 }
 0x1ab   : > { %v5285_v50 = vpack.c.bf16 %v711_v40, %v710_v39  ;;  %1064 = vrot.lane.b32.xlu1 %v5154_v43, %s4819_s12  ;;  %965 = vrot.lane.b32.xlu0 %v5281_v42, %s4819_s12 }
 0x1af   : > { %1068 = vrot.lane.b32.xlu1 %v5202_v52, %s4819_s12  ;;  %1062 = vrot.lane.b32.xlu0 %v5130_v15, %s4819_s12 }
 0x1b3   : > { %1895 = vrot.lane.b32.xlu1 %v5102_v51, %s4820_s13  ;;  %1066 = vrot.lane.b32.xlu0 %v5178_v11, %s4819_s12  ;;  %s4745_s12 = scalar_lea.vmem %s4744_s26, 8192 }
 0x1b4   : > { %p4747_p13 = scmp.lt.s32.totalorder %s4745_s12, %s4739_s9 }
 0x1b6   : > { %p4748_p3 = por %p4747_p13, %p4746_p8 }
 0x1b7   : > { %1899 = vrot.lane.b32.xlu1 %v5152_v41, %s4820_s13  ;;  %1897 = vrot.lane.b32.xlu0 %v5128_v13, %s4820_s13 }
 0x1b8   : > { %p4749_p7 = pnand %p4748_p3, %p4742_p4 }
 0x1bb   : > { %1901 = vrot.lane.b32.xlu1 %v5176_v9, %s4820_s13  ;;  %2004 = vrot.lane.b32.xlu0 %v5200_v49, %s4820_s13 }
 0x1bf   : > { %2006 = vrot.lane.b32.xlu1 %v5218_v8, %s4820_s13 }
 0x1c3   : > { %1887 = vrot.lane.b32.xlu1 %v5110_v56, %s4821_s10 }
 0x1c7   : > { %1889 = vrot.lane.b32.xlu1 %v5140_v19, %s4821_s10 }
 0x1cd   : > { %v759_v30 = vpop.permute.xlu0 %758 }
 0x1ce   : > { %4256 = vmatprep.subr.msk.bf16.mxu1 %vm766_vm1, %v759_v30  ;;  %v780_v32 = vsel %vm766_vm1, %v759_v30, 0 }
 0x1cf   : > { %3953 = vmatpush3.bf16.xpose.msra.mxu1 %v780_v32 }
 0x1d5   : > { %v761_v51 = vpop.permute.xlu0 %760 }
 0x1d6   : > { %4257 = vmatprep.subr.msk.bf16.mxu1 %vm766_vm1, %v761_v51  ;;  %v783_v13 = vsel %vm766_vm1, %v761_v51, 0 }
 0x1d7   : > { %3955 = vmatpush3.bf16.xpose.msra.mxu1 %v783_v13 }
 0x1dd   : > { %v763_v41 = vpop.permute.xlu1 %762 }
 0x1de   : > { %4258 = vmatprep.subr.msk.bf16.mxu1 %vm766_vm1, %v763_v41  ;;  %v786_v56 = vsel %vm766_vm1, %v763_v41, 0 }
 0x1df   : > { %3957 = vmatpush3.bf16.xpose.msra.mxu1 %v786_v56 }
 0x1e5   : > { %v765_v9 = vpop.permute.xlu1 %764 }
 0x1e6   : > { %4259 = vmatprep.subr.msk.bf16.mxu1 %vm766_vm1, %v765_v9  ;;  %v789_v49 = vsel %vm766_vm1, %v765_v9, 0 }
 0x1e7   : > { %3959 = vmatpush3.bf16.xpose.msra.mxu1 %v789_v49 }
 0x1ed   : > { %v861_v8 = vpop.permute.xlu0 %860 }
 0x1ee   : > { %3961 = vmatmul.mubr.msk.bf16.vlgmr.msra.gmra.mrb[20].mxu1 %vm766_vm1, %v5140_v19  ;;  %4260 = vmatprep.subr.msk.bf16.mxu1 %vm766_vm1, %v861_v8  ;;  %v881_v62 = vsel %vm766_vm1, %v861_v8, 0 }
 0x1ef   : > { %3964 = vmatprep.mubr.msk.bf16.mxu1 %vm766_vm1, %v5160_v46  ;;  %3969 = vmatpush3.bf16.xpose.msra.mxu1 %v881_v62 }
 0x1f5   : > { %v863_v63 = vpop.permute.xlu1 %862 }
 0x1f6   : > { %3965 = vmatmul.mubr.msk.bf16.gmra.mrb[24].mxu1 %vm766_vm1, %v5184_v20  ;;  %4261 = vmatprep.subr.msk.bf16.mxu1 %vm766_vm1, %v863_v63  ;;  %v884_v0 = vsel %vm766_vm1, %v863_v63, 0 }
 0x1f7   : > { %3971 = vmatpush3.bf16.xpose.msra.mxu1 %v884_v0  ;;  %3976 = vmatprep.mubr.msk.bf16.mxu1 %vm766_vm1, %v5208_v60 }
 0x1fd   : > { %v865_v19 = vpop.permute.xlu0 %864 }
 0x1fe   : > { %4262 = vmatprep.subr.msk.bf16.mxu1 %vm766_vm1, %v865_v19  ;;  %v887_v1 = vsel %vm766_vm1, %v865_v19, 0 }
 0x1ff   : > { %3973 = vmatpush3.bf16.xpose.msra.mxu1 %v887_v1 }
 0x205   : > { %v867_v23 = vpop.permute.xlu1 %866 }
 0x206   : > { %4263 = vmatprep.subr.msk.bf16.mxu1 %vm766_vm1, %v867_v23  ;;  %v890_v24 = vsel %vm766_vm1, %v867_v23, 0 }
 0x207   : > { %3975 = vmatpush3.bf16.xpose.msra.mxu1 %v890_v24 }
 0x20d   : > { %v962_v25 = vpop.permute.xlu0 %961 }
 0x20e   : > { %3977 = vmatmul.mubr.msk.bf16.vlgmr.msra.gmra.mrb[28].mxu1 %vm766_vm1, %v5222_v22  ;;  %4264 = vmatprep.subr.msk.bf16.mxu1 %vm766_vm1, %v962_v25  ;;  %v982_v26 = vsel %vm766_vm1, %v962_v25, 0 }
 0x20f   : > { %3980 = vmatprep.mubr.msk.bf16.mxu1 %vm766_vm1, %v5234_v37  ;;  %3985 = vmatpush3.bf16.xpose.msra.mxu1 %v982_v26 }
 0x215   : > { %v964_v27 = vpop.permute.xlu1 %963 }
 0x216   : > { %3981 = vmatmul.mubr.msk.bf16.gmra.mrb[32].mxu1 %vm766_vm1, %v5246_v4  ;;  %4265 = vmatprep.subr.msk.bf16.mxu1 %vm766_vm1, %v964_v27  ;;  %v985_v28 = vsel %vm766_vm1, %v964_v27, 0 }
 0x217   : > { %3987 = vmatpush3.bf16.xpose.msra.mxu1 %v985_v28  ;;  %3992 = vmatprep.mubr.msk.bf16.mxu1 %vm766_vm1, %v5258_v34 }
 0x219   : > { %v968_v39 = vpop.permute.xlu1 %967 }
 0x21a   : > { %v991_v40 = vsel %vm766_vm1, %v968_v39, 0 }
 0x21d   : > { %v966_v29 = vpop.permute.xlu0 %965  ;;  %v1065_v51 = vpop.permute.xlu1 %1064 }
 0x21e   : > { %4266 = vmatprep.subr.msk.bf16.mxu1 %vm766_vm1, %v966_v29  ;;  %v988_v38 = vsel %vm766_vm1, %v966_v29, 0  ;;  %v1086_v13 = vsel %vm766_vm1, %v1065_v51, 0 }
 0x21f   : > { %3989 = vmatpush3.bf16.xpose.msra.mxu1 %v988_v38 }
 0x220   : > { %4267 = vmatprep.subr.msk.bf16.mxu1 %vm766_vm1, %v968_v39 }
 0x221   : > { %v1063_v30 = vpop.permute.xlu0 %1062  ;;  %v1069_v9 = vpop.permute.xlu1 %1068 }
 0x222   : > { %v1083_v32 = vsel %vm766_vm1, %v1063_v30, 0  ;;  %v1092_v49 = vsel %vm766_vm1, %v1069_v9, 0 }
 0x225   : > { %v1067_v41 = vpop.permute.xlu0 %1066 }
 0x226   : > { %v1089_v56 = vsel %vm766_vm1, %v1067_v41, 0 }
 0x227   : > { %3991 = vmatpush3.bf16.xpose.msra.mxu1 %v991_v40 }
 0x228   : > { %4268 = vmatprep.subr.msk.bf16.mxu1 %vm766_vm1, %v1063_v30 }
 0x22e   : > { %3993 = vmatmul.mubr.msk.bf16.vlgmr.msra.gmra.mrb[36].mxu1 %vm766_vm1, %v5271_v7 }
 0x22f   : > { %3996 = vmatprep.mubr.msk.bf16.mxu1 %vm766_vm1, %v5285_v50  ;;  %4001 = vmatpush3.bf16.xpose.msra.mxu1 %v1083_v32 }
 0x230   : > { %4269 = vmatprep.subr.msk.bf16.mxu1 %vm766_vm1, %v1065_v51 }
 0x236   : > { %3997 = vmatmul.mubr.msk.bf16.gmra.mrb[40].mxu1 %vm766_vm1, %v5114_v57 }
 0x237   : > { %4003 = vmatpush3.bf16.xpose.msra.mxu1 %v1086_v13  ;;  %4008 = vmatprep.mubr.msk.bf16.mxu1 %vm766_vm1, %v5138_v18 }
 0x238   : > { %4270 = vmatprep.subr.msk.bf16.mxu1 %vm766_vm1, %v1067_v41 }
 0x23f   : > { %4005 = vmatpush3.bf16.xpose.msra.mxu1 %v1089_v56 }
 0x240   : > { %4271 = vmatprep.subr.msk.bf16.mxu1 %vm766_vm1, %v1069_v9 }
 0x247   : > { %4007 = vmatpush3.bf16.xpose.msra.mxu1 %v1092_v49 }
 0x248   : > { %4032 = vmatprep.subr.bf16.mxu1 %v5204_v58 }
 0x24e   : > { %4009 = vmatmul.mubr.msk.bf16.vlgmr.msra.gmra.mrb[44].mxu1 %vm766_vm1, %v5164_v47 }
 0x24f   : > { %4012 = vmatprep.mubr.msk.bf16.mxu1 %vm766_vm1, %v5188_v21  ;;  %4033 = vmatpush3.bf16.msra.mxu1 %v5204_v58 }
 0x250   : > { %4034 = vmatprep.subr.bf16.mxu1 %v5220_v10 }
 0x253   : > { %4035 = vmatpush3.bf16.msra.mxu1 %v5220_v10 }
 0x254   : > { %4036 = vmatprep.subr.bf16.mxu1 %v5232_v36 }
 0x256   : > { %4013 = vmatmul.mubr.msk.bf16.gmra.mrb[48].mxu1 %vm766_vm1, %v5212_v61 }
 0x257   : > { %4037 = vmatpush3.bf16.msra.mxu1 %v5232_v36 }
 0x258   : > { %4038 = vmatprep.subr.bf16.mxu1 %v5244_v3 }
 0x25b   : > { %4039 = vmatpush3.bf16.msra.mxu1 %v5244_v3 }
 0x25c   : > { %4064 = vmatprep.subr.bf16.mxu1 %v5134_v17 }
 0x2c1   : > { %v5384_v8 = vpop.f32.mrb[20].mxu1 }
 0x2c2   : > { %v5386_v62 = vpop.f32.mrb[21].mxu1  ;;  %v1165_v63 = vsel %vm448_vm0, %v5384_v8, -inf }
 0x2c3   : > { %1166 = vmax.xlane.f32.xlu0 %v1165_v63  ;;  %v5390_v0 = vpop.f32.mrb[22].mxu1  ;;  %v1159_v23 = vsel %vm448_vm0, %v5386_v62, -inf }
 0x2c4   : > { %v5392_v19 = vpop.f32.mrb[23].mxu1  ;;  %v1168_v26 = vsel %vm448_vm0, %v5390_v0, -inf }
 0x2c5   : > { %v1162_v1 = vsel %vm448_vm0, %v5392_v19, -inf }
 0x2c6   : > { %1163 = vmax.xlane.f32.xlu1 %v1162_v1 }
 0x2c7   : > { %1160 = vmax.xlane.f32.xlu0 %v1159_v23 }
 0x2c9   : > { %v5398_v24 = vpop.f32.mrb[24].mxu1 }
 0x2ca   : > { %v5400_v25 = vpop.f32.mrb[25].mxu1  ;;  %v1177_v27 = vsel %vm448_vm0, %v5398_v24, -inf }
 0x2cb   : > { %1169 = vmax.xlane.f32.xlu0 %v1168_v26  ;;  %1178 = vmax.xlane.f32.xlu1 %v1177_v27  ;;  %v5406_v28 = vpop.f32.mrb[26].mxu1  ;;  %v1171_v38 = vsel %vm448_vm0, %v5400_v25, -inf }
 0x2cc   : > { %v5408_v29 = vpop.f32.mrb[27].mxu1  ;;  %v1180_v39 = vsel %vm448_vm0, %v5406_v28, -inf }
 0x2cd   : > { %v1174_v40 = vsel %vm448_vm0, %v5408_v29, -inf }
 0x2cf   : > { %1172 = vmax.xlane.f32.xlu1 %v1171_v38  ;;  %1181 = vmax.xlane.f32.xlu0 %v1180_v39 }
 0x2d3   : > { %1175 = vmax.xlane.f32.xlu0 %v1174_v40 }
 0x2e1   : > { %v5416_v30 = vpop.f32.mrb[28].mxu1 }
 0x2e2   : > { %v5418_v32 = vpop.f32.mrb[29].mxu1  ;;  %v1189_v51 = vsel %vm448_vm0, %v5416_v30, -inf }
 0x2e3   : > { %1190 = vmax.xlane.f32.xlu1 %v1189_v51  ;;  %v5422_v13 = vpop.f32.mrb[30].mxu1  ;;  %v1183_v9 = vsel %vm448_vm0, %v5418_v32, -inf }
 0x2e4   : > { %v5424_v41 = vpop.f32.mrb[31].mxu1  ;;  %v1192_v56 = vsel %vm448_vm0, %v5422_v13, -inf }
 0x2e5   : > { %1193 = vmax.xlane.f32.xlu0 %v1192_v56  ;;  %v1186_v49 = vsel %vm448_vm0, %v5424_v41, -inf }
 0x2e7   : > { %1184 = vmax.xlane.f32.xlu1 %v1183_v9 }
 0x2e9   : > { %1187 = vmax.xlane.f32.xlu0 %v1186_v49  ;;  %v5432_v63 = vpop.f32.mrb[32].mxu1 }
 0x2ea   : > { %v5434_v1 = vpop.f32.mrb[33].mxu1  ;;  %v1201_v23 = vsel %vm448_vm0, %v5432_v63, -inf }
 0x2eb   : > { %1202 = vmax.xlane.f32.xlu1 %v1201_v23  ;;  %v5438_v26 = vpop.f32.mrb[34].mxu1  ;;  %v1195_v39 = vsel %vm448_vm0, %v5434_v1, -inf }
 0x2ec   : > { %v5440_v27 = vpop.f32.mrb[35].mxu1  ;;  %v1204_v38 = vsel %vm448_vm0, %v5438_v26, -inf }
 0x2ed   : > { %1205 = vmax.xlane.f32.xlu0 %v1204_v38  ;;  %v1198_v40 = vsel %vm448_vm0, %v5440_v27, -inf }
 0x2ef   : > { %1196 = vmax.xlane.f32.xlu1 %v1195_v39 }
 0x2f1   : > { %1199 = vmax.xlane.f32.xlu0 %v1198_v40 }
 0x301   : > { %v5448_v51 = vpop.f32.mrb[36].mxu1 }
 0x302   : > { %v5450_v56 = vpop.f32.mrb[37].mxu1  ;;  %v1213_v9 = vsel %vm448_vm0, %v5448_v51, -inf }
 0x303   : > { %1214 = vmax.xlane.f32.xlu1 %v1213_v9  ;;  %v5454_v49 = vpop.f32.mrb[38].mxu1  ;;  %v1207_v39 = vsel %vm448_vm0, %v5450_v56, -inf }
 0x304   : > { %v5456_v23 = vpop.f32.mrb[39].mxu1  ;;  %v1216_v38 = vsel %vm448_vm0, %v5454_v49, -inf }
 0x305   : > { %6687 = vst [vmem:[#allocation25_spill] sm:$0xff] %v5456_v23  ;;  %1217 = vmax.xlane.f32.xlu0 %v1216_v38  ;;  %v1210_v40 = vsel %vm448_vm0, %v5456_v23, -inf }
 0x307   : > { %1208 = vmax.xlane.f32.xlu1 %v1207_v39 }
 0x309   : > { %1211 = vmax.xlane.f32.xlu0 %v1210_v40  ;;  %v5464_v36 = vpop.f32.mrb[40].mxu1 }
 0x30a   : > { %6688 = vst [vmem:[#allocation26_spill] sm:$0xff] %v5464_v36  ;;  %v5466_v58 = vpop.f32.mrb[41].mxu1  ;;  %v1225_v9 = vsel %vm448_vm0, %v5464_v36, -inf }
 0x30b   : > { %6689 = vst [vmem:[#allocation27_spill] sm:$0xff] %v5466_v58  ;;  %1226 = vmax.xlane.f32.xlu1 %v1225_v9  ;;  %v5470_v3 = vpop.f32.mrb[42].mxu1  ;;  %v1219_v39 = vsel %vm448_vm0, %v5466_v58, -inf  ;;  %v5504_v58 = vpop.permute.xlu1 %1895 }
 0x30c   : > { %6690 = vst [vmem:[#allocation28_spill] sm:$0xff] %v5470_v3  ;;  %v5472_v16 = vpop.f32.mrb[43].mxu1  ;;  %v1228_v38 = vsel %vm448_vm0, %v5470_v3, -inf }
 0x30d   : > { %6691 = vst [vmem:[#allocation29_spill] sm:$0xff] %v5472_v16  ;;  %1229 = vmax.xlane.f32.xlu0 %v1228_v38  ;;  %v1222_v40 = vsel %vm448_vm0, %v5472_v16, -inf }
 0x30f   : > { %1220 = vmax.xlane.f32.xlu1 %v1219_v39 }
 0x311   : > { %1223 = vmax.xlane.f32.xlu0 %v1222_v40 }
 0x321   : > { %v5480_v10 = vpop.f32.mrb[44].mxu1 }
 0x322   : > { %6692 = vst [vmem:[#allocation30_spill] sm:$0xff] %v5480_v10  ;;  %v5482_v21 = vpop.f32.mrb[45].mxu1  ;;  %v1237_v9 = vsel %vm448_vm0, %v5480_v10, -inf }
 0x323   : > { %6693 = vst [vmem:[#allocation31_spill] sm:$0xff] %v5482_v21  ;;  %1238 = vmax.xlane.f32.xlu1 %v1237_v9  ;;  %v5486_v12 = vpop.f32.mrb[46].mxu1  ;;  %v1231_v39 = vsel %vm448_vm0, %v5482_v21, -inf }
 0x324   : > { %6694 = vst [vmem:[#allocation32_spill] sm:$0xff] %v5486_v12  ;;  %v5488_v18 = vpop.f32.mrb[47].mxu1  ;;  %v1240_v38 = vsel %vm448_vm0, %v5486_v12, -inf  ;;  %v5506_v12 = vpop.permute.xlu1 %1899 }
 0x325   : > { %6695 = vst [vmem:[#allocation33_spill] sm:$0xff] %v5488_v18  ;;  %1241 = vmax.xlane.f32.xlu0 %v1240_v38  ;;  %v1234_v40 = vsel %vm448_vm0, %v5488_v18, -inf  ;;  %6696 = vst [vmem:[#allocation34_spill] sm:$0xff] %v5506_v12 }
 0x327   : > { %1232 = vmax.xlane.f32.xlu1 %v1231_v39 }
 0x328   : > { %v5510_v38 = vpop.permute.xlu1 %1901 }
 0x329   : > { %1235 = vmax.xlane.f32.xlu0 %v1234_v40  ;;  %v5496_v16 = vpop.f32.mrb[48].mxu1  ;;  %6697 = vst [vmem:[#allocation35_spill] sm:$0xff] %v5510_v38  ;;  %v5516_v40 = vpop.permute.xlu0 %1897 }
 0x32a   : > { %v5498_v10 = vpop.f32.mrb[49].mxu1  ;;  %6699 = vst [vmem:[#allocation37_spill] sm:$0xff] %v5516_v40 }
 0x32b   : > { %v5500_v9 = vpop.f32.mrb[50].mxu1 }
 0x32c   : > { %v5502_v44 = vpop.f32.mrb[51].mxu1  ;;  %v5514_v39 = vpop.permute.xlu1 %2006 }
 0x32d   : > { %6698 = vst [vmem:[#allocation36_spill] sm:$0xff] %v5514_v39  ;;  %v5520_v21 = vpop.permute.xlu0 %2004 }
 0x32e   : > { %6701 = vst [vmem:[#allocation39_spill] sm:$0xff] %v5520_v21 }
 0x330   : > { %v5518_v18 = vpop.permute.xlu1 %1887 }
 0x331   : > { %6700 = vst [vmem:[#allocation38_spill] sm:$0xff] %v5518_v18 }
 0x334   : > { %v5522_v57 = vpop.permute.xlu1 %1889 }
 0x335   : > { %6702 = vst [vmem:[#allocation40_spill] sm:$0xff] %v5522_v57 }
 0x338   : > { %2113 = vrot.lane.b32.xlu1 %v5254_v31, %s4820_s13 }
 0x33f   : > { %2008 = vrot.lane.b32.xlu0 %v5230_v35, %s4820_s13 }
 0x350   : > { %v1167_v3 = vpop.xlane.xlu0 %1166 }
 0x351   : > { %v1257_v54 = vsub.f32 %v5384_v8, %v1167_v3  ;;  %v1249_v3 = vsel %vm448_vm0, %v5496_v16, -inf }
 0x353   : > { %v1164_v12 = vpop.xlane.xlu1 %1163  ;;  %v1291_v39 = vmul.f32 1.442695, %v1257_v54 }
 0x354   : > { %v1256_v31 = vsub.f32 %v5392_v19, %v1164_v12  ;;  %v1161_v38 = vpop.xlane.xlu0 %1160 }
 0x355   : > { %v1255_v36 = vsub.f32 %v5386_v62, %v1161_v38 }
 0x356   : > { %v1289_v35 = vmul.f32 1.442695, %v1256_v31 }
 0x357   : > { %v1287_v11 = vmul.f32 1.442695, %v1255_v36  ;;  %v1243_v36 = vsel %vm448_vm0, %v5498_v10, -inf }
 0x358   : > { %4397 = vpow2.f32 %v1289_v35  ;;  %v1170_v40 = vpop.xlane.xlu0 %1169  ;;  %v1179_v23 = vpop.xlane.xlu1 %1178 }
 0x359   : > { %4399 = vpow2.f32 %v1287_v11  ;;  %v1258_v18 = vsub.f32 %v5390_v0, %v1170_v40  ;;  %v1261_v57 = vsub.f32 %v5398_v24, %v1179_v23  ;;  %v1252_v23 = vsel %vm448_vm0, %v5500_v9, -inf }
 0x35a   : > { %4401 = vpow2.f32 %v1291_v39 }
 0x35b   : > { %v1293_v21 = vmul.f32 1.442695, %v1258_v18  ;;  %v1299_v54 = vmul.f32 1.442695, %v1261_v57 }
 0x35c   : > { %v1173_v12 = vpop.xlane.xlu1 %1172  ;;  %v1182_v8 = vpop.xlane.xlu0 %1181  ;;  %1250 = vmax.xlane.f32.xlu1 %v1249_v3 }
 0x35d   : > { %4403 = vpow2.f32 %v1293_v21  ;;  %v1259_v62 = vsub.f32 %v5400_v25, %v1173_v12  ;;  %v1262_v11 = vsub.f32 %v5406_v28, %v1182_v8  ;;  %v1246_v28 = vsel %vm448_vm0, %v5502_v44, -inf }
 0x35e   : > { %1244 = vmax.xlane.f32.xlu0 %v1243_v36  ;;  %4405 = vpow2.f32 %v1299_v54 }
 0x35f   : > { %v1301_v0 = vmul.f32 1.442695, %v1262_v11  ;;  %v1295_v19 = vmul.f32 1.442695, %v1259_v62 }
 0x360   : > { %v1176_v18 = vpop.xlane.xlu0 %1175 }
 0x361   : > { %v1260_v24 = vsub.f32 %v5408_v29, %v1176_v18  ;;  %4407 = vpow2.f32 %v1301_v0 }
 0x362   : > { %v5538_v38 = vpop.eup %4397  ;;  %1253 = vmax.xlane.f32.xlu0 %v1252_v23  ;;  %4409 = vpow2.f32 %v1295_v19 }
 0x363   : > { %v5540_v21 = vpop.eup %4399  ;;  %v1297_v57 = vmul.f32 1.442695, %v1260_v24 }
 0x364   : > { %v1447_v25 = vpack.c.bf16 %v5538_v38, %v5540_v21  ;;  %v5546_v39 = vpop.eup %4401 }
 0x365   : > { %4411 = vpow2.f32 %v1297_v57 }
 0x366   : > { %4024 = vmatprep.mubr.msk.bf16.mxu0 %vm448_vm0, %v1447_v25  ;;  %1247 = vmax.xlane.f32.xlu0 %v1246_v28 }
 0x367   : > { %v5549_v29 = vpop.eup %4403 }
 0x368   : > { %v1448_v40 = vpack.c.bf16 %v5549_v29, %v5546_v39  ;;  %v5554_v31 = vpop.eup %4405 }
 0x36a   : > { %4025 = vmatmul.mubr.msk.bf16.vlgmr.msra.gmra.mrb[44].mxu0 %vm448_vm0, %v1448_v40 }
 0x36b   : > { %4049 = vmatpush3.bf16.msra.mxu0 %v5256_v33  ;;  %v5557_v35 = vpop.eup %4407 }
 0x36c   : > { %4050 = vmatprep.subr.bf16.mxu0 %v5269_v6  ;;  %v1450_v3 = vpack.c.bf16 %v5557_v35, %v5554_v31  ;;  %v5564_v12 = vpop.eup %4409 }
 0x36d   : > { %1893 = vrot.lane.b32.xlu1 %v5184_v20, %s4821_s10 }
 0x36f   : > { %v5566_v8 = vpop.eup %4411  ;;  %4051 = vmatpush3.bf16.msra.mxu0 %v5269_v6 }
 0x370   : > { %4052 = vmatprep.subr.bf16.mxu0 %v5283_v48  ;;  %v1191_v36 = vpop.xlane.xlu1 %1190  ;;  %v1449_v54 = vpack.c.bf16 %v5566_v8, %v5564_v12 }
 0x371   : > { %v1265_v62 = vsub.f32 %v5416_v30, %v1191_v36  ;;  %2115 = vrot.lane.b32.xlu1 %v5267_v5, %s4820_s13 }
 0x372   : > { %4028 = vmatprep.mubr.msk.bf16.mxu0 %vm448_vm0, %v1449_v54  ;;  %v1194_v20 = vpop.xlane.xlu0 %1193 }
 0x373   : > { %v1307_v11 = vmul.f32 1.442695, %v1265_v62  ;;  %4053 = vmatpush3.bf16.msra.mxu0 %v5283_v48  ;;  %v1266_v0 = vsub.f32 %v5422_v13, %v1194_v20 }
 0x374   : > { %4029 = vmatmul.mubr.msk.bf16.gmra.mrb[48].mxu0 %vm448_vm0, %v1450_v3  ;;  %4054 = vmatprep.subr.bf16.mxu0 %v5108_v55  ;;  %v1185_v19 = vpop.xlane.xlu1 %1184 }
 0x375   : > { %v1309_v18 = vmul.f32 1.442695, %v1266_v0  ;;  %v1263_v24 = vsub.f32 %v5418_v32, %v1185_v19  ;;  %1998 = vrot.lane.b32.xlu1 %v5222_v22, %s4821_s10  ;;  %4413 = vpow2.f32 %v1307_v11 }
 0x376   : > { %v1188_v5 = vpop.xlane.xlu0 %1187 }
 0x377   : > { %4415 = vpow2.f32 %v1309_v18  ;;  %v1303_v30 = vmul.f32 1.442695, %v1263_v24  ;;  %4055 = vmatpush3.bf16.msra.mxu0 %v5108_v55  ;;  %v1264_v23 = vsub.f32 %v5424_v41, %v1188_v5  ;;  %v6705_v24 = vld [vmem:[#allocation39_spill] sm:$0xff] }
 0x378   : > { %4272 = vmatprep.subr.msk.bf16.mxu0 %vm766_vm1, %v5504_v58  ;;  %v1203_v13 = vpop.xlane.xlu1 %1202 }
 0x379   : > { %v1305_v57 = vmul.f32 1.442695, %v1264_v23  ;;  %v1269_v25 = vsub.f32 %v5432_v63, %v1203_v13  ;;  %2222 = vrot.lane.b32.xlu1 %v5130_v15, %s4820_s13  ;;  %4417 = vpow2.f32 %v1303_v30 }
 0x37a   : > { %v1206_v22 = vpop.xlane.xlu0 %1205 }
 0x37b   : > { %4419 = vpow2.f32 %v1305_v57  ;;  %v1315_v32 = vmul.f32 1.442695, %v1269_v25  ;;  %v1270_v28 = vsub.f32 %v5438_v26, %v1206_v22  ;;  %v6710_v22 = vld [vmem:[#allocation28_spill] sm:$0xff] }
 0x37c   : > { %v1197_v40 = vpop.xlane.xlu1 %1196  ;;  %1891 = vrot.lane.b32.xlu0 %v5160_v46, %s4821_s10 }
 0x37d   : > { %v1317_v41 = vmul.f32 1.442695, %v1270_v28  ;;  %v1267_v3 = vsub.f32 %v5434_v1, %v1197_v40  ;;  %2002 = vrot.lane.b32.xlu1 %v5246_v4, %s4821_s10  ;;  %4421 = vpow2.f32 %v1315_v32  ;;  %v6711_v40 = vld [vmem:[#allocation14_spill] sm:$0xff] }
 0x37e   : > { %v1200_v63 = vpop.xlane.xlu0 %1199 }
 0x37f   : > { %4423 = vpow2.f32 %v1317_v41  ;;  %v1311_v15 = vmul.f32 1.442695, %v1267_v3  ;;  %v1268_v36 = vsub.f32 %v5440_v27, %v1200_v63  ;;  %v5597_v54 = vpop.eup %4413  ;;  %v6712_v3 = vld [vmem:[#allocation27_spill] sm:$0xff] }
 0x380   : > { %2010 = vrot.lane.b32.xlu0 %v5242_v2, %s4820_s13 }
 0x381   : > { %v5601_v26 = vpop.eup %4415  ;;  %v1313_v46 = vmul.f32 1.442695, %v1268_v36  ;;  %2224 = vrot.lane.b32.xlu1 %v5154_v43, %s4820_s13  ;;  %4425 = vpow2.f32 %v1311_v15  ;;  %v6713_v15 = vld [vmem:[#allocation17_spill] sm:$0xff] }
 0x382   : > { %v1452_v4 = vpack.c.bf16 %v5601_v26, %v5597_v54 }
 0x383   : > { %4427 = vpow2.f32 %v1313_v46  ;;  %v5607_v1 = vpop.eup %4417 }
 0x384   : > { %1996 = vrot.lane.b32.xlu0 %v5208_v60, %s4821_s10 }
 0x385   : > { %v5611_v27 = vpop.eup %4419  ;;  %2107 = vrot.lane.b32.xlu1 %v5271_v7, %s4821_s10 }
 0x386   : > { %v1451_v2 = vpack.c.bf16 %v5611_v27, %v5607_v1 }
 0x387   : > { %v5617_v62 = vpop.eup %4421 }
 0x388   : > { %6703 = vst [vmem:[#allocation41_spill] sm:$0xff] %v5617_v62  ;;  %4040 = vmatprep.mubr.msk.bf16.mxu1 %vm448_vm0, %v1451_v2  ;;  %2117 = vrot.lane.b32.xlu0 %v5281_v42, %s4820_s13 }
 0x389   : > { %v5622_v43 = vpop.eup %4423  ;;  %4041 = vmatmul.mubr.msk.bf16.vlgmr.msra.gmra.mrb[52].mxu1 %vm448_vm0, %v1452_v4  ;;  %2109 = vrot.lane.b32.xlu1 %v5285_v50, %s4821_s10  ;;  %v6714_v4 = vld [vmem:[#allocation29_spill] sm:$0xff] }
 0x38a   : > { %4065 = vmatpush3.bf16.msra.mxu1 %v5134_v17  ;;  %v1454_v60 = vpack.c.bf16 %v5622_v43, %v5617_v62 }
 0x38b   : > { %4066 = vmatprep.subr.bf16.mxu1 %v5158_v45  ;;  %v5631_v7 = vpop.eup %4425 }
 0x38c   : > { %6704 = vst [vmem:[#allocation42_spill] sm:$0xff] %v5631_v7  ;;  %2000 = vrot.lane.b32.xlu0 %v5234_v37, %s4821_s10 }
 0x38d   : > { %v5635_v42 = vpop.eup %4427  ;;  %2228 = vrot.lane.b32.xlu1 %v5202_v52, %s4820_s13 }
 0x38e   : > { %4067 = vmatpush3.bf16.msra.mxu1 %v5158_v45  ;;  %v1453_v50 = vpack.c.bf16 %v5635_v42, %v5631_v7 }
 0x38f   : > { %4068 = vmatprep.subr.bf16.mxu1 %v5182_v14 }
 0x390   : > { %4044 = vmatprep.mubr.msk.bf16.mxu1 %vm448_vm0, %v1453_v50  ;;  %v1215_v20 = vpop.xlane.xlu1 %1214  ;;  %2119 = vrot.lane.b32.xlu0 %v5104_v53, %s4820_s13  ;;  %v6715_v50 = vld [vmem:[#allocation16_spill] sm:$0xff] }
 0x391   : > { %v1273_v37 = vsub.f32 %v5448_v51, %v1215_v20  ;;  %4045 = vmatmul.mubr.msk.bf16.gmra.mrb[56].mxu1 %vm448_vm0, %v1454_v60  ;;  %2216 = vrot.lane.b32.xlu1 %v5164_v47, %s4821_s10 }
 0x392   : > { %4069 = vmatpush3.bf16.msra.mxu1 %v5182_v14  ;;  %v1218_v52 = vpop.xlane.xlu0 %1217 }
 0x393   : > { %v1323_v11 = vmul.f32 1.442695, %v1273_v37  ;;  %4070 = vmatprep.subr.bf16.mxu1 %v5206_v59  ;;  %v1274_v0 = vsub.f32 %v5454_v49, %v1218_v52  ;;  %v6706_v49 = vld [vmem:[#allocation25_spill] sm:$0xff]  ;;  %v6716_v52 = vld [vmem:[#allocation19_spill] sm:$0xff] }
 0x394   : > { %v1209_v19 = vpop.xlane.xlu1 %1208  ;;  %2105 = vrot.lane.b32.xlu0 %v5258_v34, %s4821_s10  ;;  %v6707_v34 = vld [vmem:[#allocation18_spill] sm:$0xff] }
 0x395   : > { %v1325_v53 = vmul.f32 1.442695, %v1274_v0  ;;  %v1271_v51 = vsub.f32 %v5450_v56, %v1209_v19  ;;  %2220 = vrot.lane.b32.xlu1 %v5212_v61, %s4821_s10  ;;  %4429 = vpow2.f32 %v1323_v11  ;;  %v6708_v56 = vld [vmem:[#allocation26_spill] sm:$0xff]  ;;  %v6709_v61 = vld [vmem:[#allocation13_spill] sm:$0xff]  ;;  %v6717_v19 = vld [vmem:[#allocation20_spill] sm:$0xff] }
 0x396   : > { %4071 = vmatpush3.bf16.msra.mxu1 %v5206_v59  ;;  %v1212_v47 = vpop.xlane.xlu0 %1211 }
 0x397   : > { %4431 = vpow2.f32 %v1325_v53  ;;  %v1319_v18 = vmul.f32 1.442695, %v1271_v51  ;;  %4276 = vmatprep.subr.msk.bf16.mxu1 %vm766_vm1, %v6705_v24  ;;  %v1272_v5 = vsub.f32 %v6706_v49, %v1212_v47  ;;  %v6719_v51 = vld [vmem:[#allocation22_spill] sm:$0xff]  ;;  %v6720_v49 = vld [vmem:[#allocation15_spill] sm:$0xff] }
 0x398   : > { %v1227_v30 = vpop.xlane.xlu1 %1226  ;;  %2226 = vrot.lane.b32.xlu0 %v6707_v34, %s4820_s13  ;;  %v6721_v34 = vld [vmem:[#allocation24_spill] sm:$0xff] }
 0x399   : > { %v1321_v23 = vmul.f32 1.442695, %v1272_v5  ;;  %v1277_v13 = vsub.f32 %v6708_v56, %v1227_v30  ;;  %2627 = vrot.lane.b32.xlu1 %v6709_v61, %s4821_s10  ;;  %4433 = vpow2.f32 %v1319_v18  ;;  %v1916_v30 = vsel %vm766_vm1, %v5504_v58, 0  ;;  %v6722_v56 = vld [vmem:[#allocation37_spill] sm:$0xff] }
 0x39a   : > { %v1230_v57 = vpop.xlane.xlu0 %1229  ;;  %v6723_v61 = vld [vmem:[#allocation21_spill] sm:$0xff] }
 0x39b   : > { %4435 = vpow2.f32 %v1321_v23  ;;  %v1331_v25 = vmul.f32 1.442695, %v1277_v13  ;;  %v1278_v32 = vsub.f32 %v6710_v22, %v1230_v57  ;;  %v6725_v22 = vld [vmem:[#allocation23_spill] sm:$0xff] }
 0x39c   : > { %v1221_v28 = vpop.xlane.xlu1 %1220  ;;  %2111 = vrot.lane.b32.xlu0 %v6711_v40, %s4821_s10  ;;  %v1919_v40 = vsel %vm766_vm1, %v6722_v56, 0 }
 0x39d   : > { %v1333_v41 = vmul.f32 1.442695, %v1278_v32  ;;  %v1275_v63 = vsub.f32 %v6712_v3, %v1221_v28  ;;  %2631 = vrot.lane.b32.xlu1 %v6713_v15, %s4821_s10  ;;  %4437 = vpow2.f32 %v1331_v25  ;;  %v6726_v32 = vld [vmem:[#allocation30_spill] sm:$0xff]  ;;  %v6729_v15 = vld [vmem:[#allocation32_spill] sm:$0xff] }
 0x39e   : > { %v1224_v36 = vpop.xlane.xlu0 %1223 }
 0x39f   : > { %4439 = vpow2.f32 %v1333_v41  ;;  %v1327_v46 = vmul.f32 1.442695, %v1275_v63  ;;  %v1276_v2 = vsub.f32 %v6714_v4, %v1224_v36  ;;  %v5674_v60 = vpop.eup %4429  ;;  %v6728_v63 = vld [vmem:[#allocation34_spill] sm:$0xff] }
 0x3a0   : > { %2214 = vrot.lane.b32.xlu0 %v6715_v50, %s4821_s10 }
 0x3a1   : > { %v5678_v20 = vpop.eup %4431  ;;  %v1329_v37 = vmul.f32 1.442695, %v1276_v2  ;;  %2633 = vrot.lane.b32.xlu1 %v6716_v52, %s4821_s10  ;;  %4441 = vpow2.f32 %v1327_v46  ;;  %v6730_v2 = vld [vmem:[#allocation31_spill] sm:$0xff]  ;;  %v6731_v52 = vld [vmem:[#allocation33_spill] sm:$0xff] }
 0x3a2   : > { %v1456_v11 = vpack.c.bf16 %v5678_v20, %v5674_v60 }
 0x3a3   : > { %4443 = vpow2.f32 %v1329_v37  ;;  %v5684_v0 = vpop.eup %4433 }
 0x3a4   : > { %2218 = vrot.lane.b32.xlu0 %v6717_v19, %s4821_s10 }
 0x3a5   : > { %v5688_v53 = vpop.eup %4435  ;;  %2722 = vrot.lane.b32.xlu1 %v6719_v51, %s4821_s10  ;;  %v1922_v51 = vsel %vm766_vm1, %v6728_v63, 0 }
 0x3a6   : > { %6718 = vst [vmem:[#allocation39_spill] sm:$0xff] %v5688_v53  ;;  %v1455_v47 = vpack.c.bf16 %v5688_v53, %v5684_v0 }
 0x3a7   : > { %v5694_v18 = vpop.eup %4437 }
 0x3a8   : > { %4056 = vmatprep.mubr.msk.bf16.mxu0 %vm448_vm0, %v1455_v47  ;;  %2629 = vrot.lane.b32.xlu0 %v6720_v49, %s4821_s10 }
 0x3a9   : > { %v5699_v5 = vpop.eup %4439  ;;  %4057 = vmatmul.mubr.msk.bf16.vlgmr.msra.gmra.mrb[52].mxu0 %vm448_vm0, %v1456_v11  ;;  %2726 = vrot.lane.b32.xlu1 %v6721_v34, %s4821_s10 }
 0x3aa   : > { %4081 = vmatpush3.bf16.xpose.msra.mxu0 %v1916_v30  ;;  %v1458_v23 = vpack.c.bf16 %v5699_v5, %v5694_v18 }
 0x3ab   : > { %4273 = vmatprep.subr.msk.bf16.mxu0 %vm766_vm1, %v6722_v56  ;;  %v5710_v13 = vpop.eup %4441 }
 0x3ac   : > { %2720 = vrot.lane.b32.xlu0 %v6723_v61, %s4821_s10 }
 0x3ad   : > { %v5714_v57 = vpop.eup %4443  ;;  %2815 = vrot.lane.b32.xlu1 %v5269_v6, %s4821_s10  ;;  %v6727_v6 = vld [vmem:[#allocation38_spill] sm:$0xff] }
 0x3ae   : > { %6724 = vst [vmem:[#allocation25_spill] sm:$0xff] %v5714_v57  ;;  %v1457_v58 = vpack.c.bf16 %v5714_v57, %v5710_v13 }
 0x3b0   : > { %4060 = vmatprep.mubr.msk.bf16.mxu0 %vm448_vm0, %v1457_v58  ;;  %v1239_v25 = vpop.xlane.xlu1 %1238  ;;  %2724 = vrot.lane.b32.xlu0 %v6725_v22, %s4821_s10  ;;  %v6734_v58 = vld [vmem:[#allocation40_spill] sm:$0xff] }
 0x3b1   : > { %v1281_v28 = vsub.f32 %v6726_v32, %v1239_v25  ;;  %4061 = vmatmul.mubr.msk.bf16.gmra.mrb[56].mxu0 %vm448_vm0, %v1458_v23  ;;  %2819 = vrot.lane.b32.xlu1 %v5108_v55, %s4821_s10  ;;  %v2025_v25 = vsel %vm766_vm1, %v6705_v24, 0  ;;  %v6735_v32 = vld [vmem:[#allocation36_spill] sm:$0xff] }
 0x3b2   : > { %4083 = vmatpush3.bf16.xpose.msra.mxu0 %v1919_v40  ;;  %4088 = vmatprep.mubr.msk.bf16.mxu0 %vm766_vm1, %v6727_v6  ;;  %v1242_v41 = vpop.xlane.xlu0 %1241 }
 0x3b3   : > { %v1339_v3 = vmul.f32 1.442695, %v1281_v28  ;;  %4274 = vmatprep.subr.msk.bf16.mxu0 %vm766_vm1, %v6728_v63  ;;  %v1282_v36 = vsub.f32 %v6729_v15, %v1242_v41  ;;  %v2028_v28 = vsel %vm766_vm1, %v6735_v32, 0 }
 0x3b4   : > { %v1233_v46 = vpop.xlane.xlu1 %1232  ;;  %2813 = vrot.lane.b32.xlu0 %v5256_v33, %s4821_s10  ;;  %v6732_v33 = vld [vmem:[#allocation35_spill] sm:$0xff] }
 0x3b5   : > { %v1341_v4 = vmul.f32 1.442695, %v1282_v36  ;;  %v1279_v50 = vsub.f32 %v6730_v2, %v1233_v46  ;;  %4445 = vpow2.f32 %v1339_v3  ;;  %v1925_v30 = vsel %vm766_vm1, %v6732_v33, 0 }
 0x3b6   : > { %v1236_v55 = vpop.xlane.xlu0 %1235 }
 0x3b7   : > { %4447 = vpow2.f32 %v1341_v4  ;;  %v1335_v37 = vmul.f32 1.442695, %v1279_v50  ;;  %v1280_v11 = vsub.f32 %v6731_v52, %v1236_v55 }
 0x3b8   : > { %2817 = vrot.lane.b32.xlu0 %v5283_v48, %s4821_s10  ;;  %v2114_v34 = vpop.permute.xlu1 %2113 }
 0x3b9   : > { %v1337_v19 = vmul.f32 1.442695, %v1280_v11  ;;  %4449 = vpow2.f32 %v1335_v37  ;;  %v2134_v22 = vsel %vm766_vm1, %v2114_v34, 0 }
 0x3ba   : > { %4085 = vmatpush3.bf16.xpose.msra.mxu0 %v1922_v51  ;;  %v2009_v40 = vpop.permute.xlu0 %2008 }
 0x3bb   : > { %4451 = vpow2.f32 %v1337_v19  ;;  %4275 = vmatprep.subr.msk.bf16.mxu0 %vm766_vm1, %v6732_v33  ;;  %v2031_v6 = vsel %vm766_vm1, %v2009_v40, 0 }
 0x3bf   : > { %v5744_v47 = vpop.eup %4445 }
 0x3c1   : > { %v5746_v49 = vpop.eup %4447 }
 0x3c2   : > { %v1460_v48 = vpack.c.bf16 %v5746_v49, %v5744_v47  ;;  %4087 = vmatpush3.bf16.xpose.msra.mxu0 %v1925_v30 }
 0x3c3   : > { %4280 = vmatprep.subr.msk.bf16.mxu0 %vm766_vm1, %v2114_v34  ;;  %v5753_v23 = vpop.eup %4449 }
 0x3c5   : > { %v5755_v56 = vpop.eup %4451 }
 0x3c6   : > { %6733 = vst [vmem:[#allocation18_spill] sm:$0xff] %v5755_v56  ;;  %v1459_v61 = vpack.c.bf16 %v5755_v56, %v5753_v23 }
 0x3c8   : > { %4072 = vmatprep.mubr.msk.bf16.mxu1 %vm448_vm0, %v1459_v61 }
 0x3c9   : > { %4089 = vmatmul.mubr.msk.bf16.vlgmr.msra.gmra.mrb[60].mxu0 %vm766_vm1, %v6734_v58  ;;  %4073 = vmatmul.mubr.msk.bf16.vlgmr.msra.gmra.mrb[60].mxu1 %vm448_vm0, %v1460_v48 }
 0x3ca   : > { %4097 = vmatpush3.bf16.xpose.msra.mxu1 %v2025_v25  ;;  %4113 = vmatpush3.bf16.xpose.msra.mxu0 %v2134_v22 }
 0x3cb   : > { %4277 = vmatprep.subr.msk.bf16.mxu1 %vm766_vm1, %v6735_v32 }
 0x3d2   : > { %4099 = vmatpush3.bf16.xpose.msra.mxu1 %v2028_v28 }
 0x3d3   : > { %4278 = vmatprep.subr.msk.bf16.mxu1 %vm766_vm1, %v2009_v40 }
 0x3da   : > { %4101 = vmatpush3.bf16.xpose.msra.mxu1 %v2031_v6 }
 0x3e9   : > { %v1251_v41 = vpop.xlane.xlu1 %1250 }
 0x3ea   : > { %v1285_v24 = vsub.f32 %v5496_v16, %v1251_v41 }
 0x3eb   : > { %v1245_v3 = vpop.xlane.xlu0 %1244 }
 0x3ec   : > { %v1347_v15 = vmul.f32 1.442695, %v1285_v24  ;;  %v1283_v36 = vsub.f32 %v5498_v10, %v1245_v3 }
 0x3ed   : > { %v1894_v63 = vpop.permute.xlu1 %1893 }
 0x3ee   : > { %4453 = vpow2.f32 %v1347_v15  ;;  %v1343_v37 = vmul.f32 1.442695, %v1283_v36 }
 0x3ef   : > { %v1254_v46 = vpop.xlane.xlu0 %1253 }
 0x3f0   : > { %v1286_v4 = vsub.f32 %v5500_v9, %v1254_v46 }
 0x3f1   : > { %v2116_v2 = vpop.permute.xlu1 %2115 }
 0x3f2   : > { %v1349_v50 = vmul.f32 1.442695, %v1286_v4  ;;  %4281 = vmatprep.subr.msk.bf16.mxu0 %vm766_vm1, %v2116_v2  ;;  %v2137_v55 = vsel %vm766_vm1, %v2116_v2, 0 }
 0x3f3   : > { %4115 = vmatpush3.bf16.xpose.msra.mxu0 %v2137_v55  ;;  %v1248_v52 = vpop.xlane.xlu0 %1247 }
 0x3f4   : > { %4455 = vpow2.f32 %v1349_v50  ;;  %v1284_v16 = vsub.f32 %v5502_v44, %v1248_v52 }
 0x3f5   : > { %v1999_v11 = vpop.permute.xlu1 %1998  ;;  %4457 = vpow2.f32 %v1343_v37 }
 0x3f6   : > { %v1345_v19 = vmul.f32 1.442695, %v1284_v16 }
 0x3f7   : > { %v1892_v10 = vpop.permute.xlu0 %1891 }
 0x3f8   : > { %4459 = vpow2.f32 %v1345_v19  ;;  %4092 = vmatprep.mubr.msk.bf16.mxu0 %vm766_vm1, %v1892_v10  ;;  %v5782_v30 = vpop.eup %4453 }
 0x3f9   : > { %v2223_v9 = vpop.permute.xlu1 %2222  ;;  %4093 = vmatmul.mubr.msk.bf16.gmra.mrb[64].mxu0 %vm766_vm1, %v1894_v63  ;;  %6736 = vst [vmem:[#allocation26_spill] sm:$0xff] %v5782_v30 }
 0x3fa   : > { %v2243_v36 = vsel %vm766_vm1, %v2223_v9, 0 }
 0x3fb   : > { %v2011_v51 = vpop.permute.xlu0 %2010 }
 0x3fc   : > { %4279 = vmatprep.subr.msk.bf16.mxu1 %vm766_vm1, %v2011_v51  ;;  %v2034_v33 = vsel %vm766_vm1, %v2011_v51, 0 }
 0x3fd   : > { %v2003_v48 = vpop.permute.xlu1 %2002  ;;  %4103 = vmatpush3.bf16.xpose.msra.mxu1 %v2034_v33 }
 0x3fe   : > { %v5784_v44 = vpop.eup %4455  ;;  %4284 = vmatprep.subr.msk.bf16.mxu1 %vm766_vm1, %v2223_v9 }
 0x3ff   : > { %6737 = vst [vmem:[#allocation13_spill] sm:$0xff] %v5784_v44  ;;  %v1997_v34 = vpop.permute.xlu0 %1996  ;;  %v1462_v61 = vpack.c.bf16 %v5784_v44, %v5782_v30  ;;  %v5789_v58 = vpop.eup %4457 }
 0x400   : > { %6738 = vst [vmem:[#allocation28_spill] sm:$0xff] %v5789_v58 }
 0x401   : > { %v2225_v25 = vpop.permute.xlu1 %2224 }
 0x402   : > { %v5791_v22 = vpop.eup %4459  ;;  %v2246_v55 = vsel %vm766_vm1, %v2225_v25, 0 }
 0x403   : > { %6739 = vst [vmem:[#allocation14_spill] sm:$0xff] %v5791_v22  ;;  %v2118_v32 = vpop.permute.xlu0 %2117  ;;  %v1461_v28 = vpack.c.bf16 %v5791_v22, %v5789_v58 }
 0x404   : > { %4282 = vmatprep.subr.msk.bf16.mxu0 %vm766_vm1, %v2118_v32  ;;  %v2140_v40 = vsel %vm766_vm1, %v2118_v32, 0 }
 0x405   : > { %v2108_v6 = vpop.permute.xlu1 %2107  ;;  %4076 = vmatprep.mubr.msk.bf16.mxu1 %vm448_vm0, %v1461_v28  ;;  %4117 = vmatpush3.bf16.xpose.msra.mxu0 %v2140_v40 }
 0x406   : > { %4077 = vmatmul.mubr.msk.bf16.gmra.mrb[64].mxu1 %vm448_vm0, %v1462_v61 }
 0x407   : > { %4104 = vmatprep.mubr.msk.bf16.mxu1 %vm766_vm1, %v1997_v34  ;;  %v2001_v41 = vpop.permute.xlu0 %2000 }
 0x409   : > { %v2110_v24 = vpop.permute.xlu1 %2109 }
 0x40b   : > { %v2120_v3 = vpop.permute.xlu0 %2119 }
 0x40c   : > { %4283 = vmatprep.subr.msk.bf16.mxu0 %vm766_vm1, %v2120_v3  ;;  %v2143_v63 = vsel %vm766_vm1, %v2120_v3, 0 }
 0x40d   : > { %v2229_v15 = vpop.permute.xlu1 %2228  ;;  %4119 = vmatpush3.bf16.xpose.msra.mxu0 %v2143_v63 }
 0x40e   : > { %4105 = vmatmul.mubr.msk.bf16.vlgmr.msra.gmra.mrb[68].mxu1 %vm766_vm1, %v1999_v11  ;;  %v2252_v51 = vsel %vm766_vm1, %v2229_v15, 0 }
 0x40f   : > { %4129 = vmatpush3.bf16.xpose.msra.mxu1 %v2243_v36  ;;  %4108 = vmatprep.mubr.msk.bf16.mxu1 %vm766_vm1, %v2001_v41  ;;  %v2106_v46 = vpop.permute.xlu0 %2105 }
 0x410   : > { %4285 = vmatprep.subr.msk.bf16.mxu1 %vm766_vm1, %v2225_v25  ;;  %4120 = vmatprep.mubr.msk.bf16.mxu0 %vm766_vm1, %v2106_v46 }
 0x411   : > { %v2217_v4 = vpop.permute.xlu1 %2216 }
 0x413   : > { %v2227_v2 = vpop.permute.xlu0 %2226 }
 0x414   : > { %4121 = vmatmul.mubr.msk.bf16.vlgmr.msra.gmra.mrb[68].mxu0 %vm766_vm1, %v2108_v6  ;;  %v2249_v11 = vsel %vm766_vm1, %v2227_v2, 0 }
 0x415   : > { %v2221_v50 = vpop.permute.xlu1 %2220  ;;  %4124 = vmatprep.mubr.msk.bf16.mxu0 %vm766_vm1, %v2110_v24 }
 0x416   : > { %4109 = vmatmul.mubr.msk.bf16.gmra.mrb[72].mxu1 %vm766_vm1, %v2003_v48 }
 0x417   : > { %4131 = vmatpush3.bf16.xpose.msra.mxu1 %v2246_v55  ;;  %v2112_v37 = vpop.permute.xlu0 %2111 }
 0x418   : > { %4286 = vmatprep.subr.msk.bf16.mxu1 %vm766_vm1, %v2227_v2 }
 0x419   : > { %v2628_v52 = vpop.permute.xlu1 %2627 }
 0x41a   : > { %4144 = vmatprep.subr.bf16.mxu0 %v2628_v52 }
 0x41b   : > { %4145 = vmatpush3.bf16.msra.mxu0 %v2628_v52  ;;  %v2215_v16 = vpop.permute.xlu0 %2214 }
 0x41c   : > { %4125 = vmatmul.mubr.msk.bf16.gmra.mrb[72].mxu0 %vm766_vm1, %v2112_v37  ;;  %4136 = vmatprep.mubr.msk.bf16.mxu1 %vm766_vm1, %v2215_v16 }
 0x41d   : > { %v2632_v10 = vpop.permute.xlu1 %2631 }
 0x41f   : > { %4133 = vmatpush3.bf16.xpose.msra.mxu1 %v2249_v11  ;;  %v2219_v19 = vpop.permute.xlu0 %2218 }
 0x420   : > { %4287 = vmatprep.subr.msk.bf16.mxu1 %vm766_vm1, %v2229_v15 }
 0x421   : > { %v2634_v48 = vpop.permute.xlu1 %2633 }
 0x423   : > { %v2630_v9 = vpop.permute.xlu0 %2629 }
 0x424   : > { %4146 = vmatprep.subr.bf16.mxu0 %v2630_v9 }
 0x425   : > { %4147 = vmatpush3.bf16.msra.mxu0 %v2630_v9  ;;  %v2723_v61 = vpop.permute.xlu1 %2722 }
 0x426   : > { %4148 = vmatprep.subr.bf16.mxu0 %v2632_v10 }
 0x427   : > { %4135 = vmatpush3.bf16.xpose.msra.mxu1 %v2252_v51  ;;  %v2721_v33 = vpop.permute.xlu0 %2720 }
 0x428   : > { %4160 = vmatprep.subr.bf16.mxu1 %v2721_v33 }
 0x429   : > { %4149 = vmatpush3.bf16.msra.mxu0 %v2632_v10  ;;  %v2727_v32 = vpop.permute.xlu1 %2726 }
 0x42a   : > { %4150 = vmatprep.subr.bf16.mxu0 %v2634_v48 }
 0x42b   : > { %v2725_v34 = vpop.permute.xlu0 %2724 }
 0x42d   : > { %4151 = vmatpush3.bf16.msra.mxu0 %v2634_v48 }
 0x42e   : > { %4137 = vmatmul.mubr.msk.bf16.vlgmr.msra.gmra.mrb[76].mxu1 %vm766_vm1, %v2217_v4 }
 0x42f   : > { %4140 = vmatprep.mubr.msk.bf16.mxu1 %vm766_vm1, %v2219_v19  ;;  %4161 = vmatpush3.bf16.msra.mxu1 %v2721_v33  ;;  %v5819_v25 = vpop.permute.xlu0 %2813 }
 0x430   : > { %4162 = vmatprep.subr.bf16.mxu1 %v2723_v61  ;;  %4176 = vmatprep.subr.bf16.mxu0 %v5819_v25 }
 0x433   : > { %4163 = vmatpush3.bf16.msra.mxu1 %v2723_v61 }
 0x434   : > { %4164 = vmatprep.subr.bf16.mxu1 %v2725_v34 }
 0x436   : > { %4141 = vmatmul.mubr.msk.bf16.gmra.mrb[80].mxu1 %vm766_vm1, %v2221_v50 }
 0x437   : > { %4165 = vmatpush3.bf16.msra.mxu1 %v2725_v34 }
 0x438   : > { %4166 = vmatprep.subr.bf16.mxu1 %v2727_v32 }
 0x43b   : > { %4167 = vmatpush3.bf16.msra.mxu1 %v2727_v32 }
 0x43d   : > { %v5823_v28 = vpop.f32.mrb[44].mxu0 }
 0x43e   : > { %6740 = vst [vmem:[#allocation27_spill] sm:$0xff] %v5823_v28  ;;  %v5825_v40 = vpop.f32.mrb[45].mxu0 }
 0x43f   : > { %6741 = vst [vmem:[#allocation17_spill] sm:$0xff] %v5825_v40  ;;  %v5827_v6 = vpop.f32.mrb[46].mxu0 }
 0x440   : > { %6742 = vst [vmem:[#allocation29_spill] sm:$0xff] %v5827_v6  ;;  %v5829_v41 = vpop.f32.mrb[47].mxu0 }
 0x441   : > { %6743 = vst [vmem:[#allocation16_spill] sm:$0xff] %v5829_v41 }
 0x447   : > { %v5831_v24 = vpop.f32.mrb[48].mxu0 }
 0x448   : > { %6744 = vst [vmem:[#allocation19_spill] sm:$0xff] %v5831_v24  ;;  %v5833_v3 = vpop.f32.mrb[49].mxu0 }
 0x449   : > { %6745 = vst [vmem:[#allocation20_spill] sm:$0xff] %v5833_v3  ;;  %v5835_v63 = vpop.f32.mrb[50].mxu0 }
 0x44a   : > { %6746 = vst [vmem:[#allocation22_spill] sm:$0xff] %v5835_v63  ;;  %v5837_v15 = vpop.f32.mrb[51].mxu0 }
 0x44b   : > { %6747 = vst [vmem:[#allocation15_spill] sm:$0xff] %v5837_v15 }
 0x45c   : > { %v5839_v36 = vpop.f32.mrb[52].mxu1 }
 0x45d   : > { %6748 = vst [vmem:[#allocation24_spill] sm:$0xff] %v5839_v36  ;;  %v5841_v46 = vpop.f32.mrb[53].mxu1 }
 0x45e   : > { %6749 = vst [vmem:[#allocation37_spill] sm:$0xff] %v5841_v46  ;;  %v5843_v4 = vpop.f32.mrb[54].mxu1 }
 0x45f   : > { %6750 = vst [vmem:[#allocation21_spill] sm:$0xff] %v5843_v4  ;;  %v5845_v2 = vpop.f32.mrb[55].mxu1 }
 0x460   : > { %6751 = vst [vmem:[#allocation23_spill] sm:$0xff] %v5845_v2 }
 0x464   : > { %v5847_v50 = vpop.f32.mrb[56].mxu1 }
 0x465   : > { %6752 = vst [vmem:[#allocation30_spill] sm:$0xff] %v5847_v50  ;;  %v5849_v55 = vpop.f32.mrb[57].mxu1 }
 0x466   : > { %6753 = vst [vmem:[#allocation38_spill] sm:$0xff] %v5849_v55  ;;  %v5851_v37 = vpop.f32.mrb[58].mxu1 }
 0x467   : > { %6754 = vst [vmem:[#allocation34_spill] sm:$0xff] %v5851_v37  ;;  %v5853_v52 = vpop.f32.mrb[59].mxu1 }
 0x468   : > { %6755 = vst [vmem:[#allocation32_spill] sm:$0xff] %v5853_v52 }
 0x47c   : > { %v5855_v16 = vpop.f32.mrb[52].mxu0 }
 0x47d   : > { %6756 = vst [vmem:[#allocation31_spill] sm:$0xff] %v5855_v16  ;;  %v5857_v11 = vpop.f32.mrb[53].mxu0 }
 0x47e   : > { %6757 = vst [vmem:[#allocation33_spill] sm:$0xff] %v5857_v11  ;;  %v5859_v19 = vpop.f32.mrb[54].mxu0 }
 0x47f   : > { %6758 = vst [vmem:[#allocation35_spill] sm:$0xff] %v5859_v19  ;;  %v5861_v10 = vpop.f32.mrb[55].mxu0 }
 0x480   : > { %6759 = vst [vmem:[#allocation40_spill] sm:$0xff] %v5861_v10 }
 0x484   : > { %v5863_v9 = vpop.f32.mrb[56].mxu0 }
 0x485   : > { %6760 = vst [vmem:[#allocation36_spill] sm:$0xff] %v5863_v9  ;;  %v5865_v51 = vpop.f32.mrb[57].mxu0 }
 0x486   : > { %6761 = vst [vmem:[#allocation43_spill] sm:$0xff] %v5865_v51  ;;  %v5867_v33 = vpop.f32.mrb[58].mxu0 }
 0x487   : > { %6762 = vst [vmem:[#allocation44_spill] sm:$0xff] %v5867_v33  ;;  %v5869_v48 = vpop.f32.mrb[59].mxu0 }
 0x488   : > { %6763 = vst [vmem:[#allocation45_spill] sm:$0xff] %v5869_v48 }
 0x49c   : > { %v5871_v34 = vpop.f32.mrb[60].mxu0  ;;  %v5873_v61 = vpop.f32.mrb[60].mxu1 }
 0x49d   : > { %6764 = vst [vmem:[#allocation46_spill] sm:$0xff] %v5873_v61  ;;  %v5875_v32 = vpop.f32.mrb[61].mxu0  ;;  %v5877_v44 = vpop.f32.mrb[61].mxu1  ;;  %v2325_v50 = vsel %vm448_vm0, %v5871_v34, -inf }
 0x49e   : > { %6765 = vst [vmem:[#allocation47_spill] sm:$0xff] %v5877_v44  ;;  %v5881_v10 = vpop.f32.mrb[62].mxu0  ;;  %2326 = vmax.xlane.f32.xlu0 %v2325_v50  ;;  %v5883_v55 = vpop.f32.mrb[62].mxu1  ;;  %v2319_v61 = vsel %vm448_vm0, %v5875_v32, -inf }
 0x49f   : > { %6766 = vst [vmem:[#allocation48_spill] sm:$0xff] %v5883_v55  ;;  %v5885_v36 = vpop.f32.mrb[63].mxu0  ;;  %v5887_v46 = vpop.f32.mrb[63].mxu1  ;;  %v2328_v24 = vsel %vm448_vm0, %v5881_v10, -inf }
 0x4a0   : > { %6767 = vst [vmem:[#allocation49_spill] sm:$0xff] %v5887_v46  ;;  %v2322_v48 = vsel %vm448_vm0, %v5885_v36, -inf }
 0x4a1   : > { %2323 = vmax.xlane.f32.xlu1 %v2322_v48 }
 0x4a2   : > { %2320 = vmax.xlane.f32.xlu0 %v2319_v61 }
 0x4a6   : > { %2329 = vmax.xlane.f32.xlu0 %v2328_v24 }
 0x4cc   : > { %v5895_v44 = vpop.f32.mrb[64].mxu0 }
 0x4cd   : > { %v5897_v50 = vpop.f32.mrb[65].mxu0  ;;  %v2337_v55 = vsel %vm448_vm0, %v5895_v44, -inf }
 0x4ce   : > { %2338 = vmax.xlane.f32.xlu1 %v2337_v55  ;;  %v5901_v46 = vpop.f32.mrb[66].mxu0  ;;  %v2331_v61 = vsel %vm448_vm0, %v5897_v50, -inf }
 0x4cf   : > { %v5903_v3 = vpop.f32.mrb[67].mxu0  ;;  %v2340_v48 = vsel %vm448_vm0, %v5901_v46, -inf }
 0x4d0   : > { %2341 = vmax.xlane.f32.xlu0 %v2340_v48  ;;  %v2334_v24 = vsel %vm448_vm0, %v5903_v3, -inf }
 0x4d2   : > { %2332 = vmax.xlane.f32.xlu1 %v2331_v61 }
 0x4d4   : > { %2335 = vmax.xlane.f32.xlu0 %v2334_v24 }
 0x4d9   : > { %v5911_v33 = vpop.f32.mrb[64].mxu1 }
 0x4da   : > { %6768 = vst [vmem:[#allocation50_spill] sm:$0xff] %v5911_v33  ;;  %v5913_v28 = vpop.f32.mrb[65].mxu1 }
 0x4db   : > { %6769 = vst [vmem:[#allocation51_spill] sm:$0xff] %v5913_v28  ;;  %v5915_v55 = vpop.f32.mrb[66].mxu1 }
 0x4dc   : > { %6770 = vst [vmem:[#allocation52_spill] sm:$0xff] %v5915_v55  ;;  %v5917_v9 = vpop.f32.mrb[67].mxu1 }
 0x4dd   : > { %6771 = vst [vmem:[#allocation53_spill] sm:$0xff] %v5917_v9 }
 0x4e1   : > { %v5919_v40 = vpop.f32.mrb[68].mxu1 }
 0x4e2   : > { %v5921_v51 = vpop.f32.mrb[69].mxu1  ;;  %v2349_v48 = vsel %vm448_vm0, %v5919_v40, -inf }
 0x4e3   : > { %2350 = vmax.xlane.f32.xlu0 %v2349_v48  ;;  %v5925_v61 = vpop.f32.mrb[70].mxu1  ;;  %v2343_v24 = vsel %vm448_vm0, %v5921_v51, -inf }
 0x4e4   : > { %2344 = vmax.xlane.f32.xlu1 %v2343_v24  ;;  %v5929_v33 = vpop.f32.mrb[71].mxu1  ;;  %v2352_v15 = vsel %vm448_vm0, %v5925_v61, -inf }
 0x4e7   : > { %v5931_v28 = vpop.f32.mrb[68].mxu0 }
 0x4e8   : > { %v5933_v55 = vpop.f32.mrb[69].mxu0  ;;  %v2373_v9 = vsel %vm448_vm0, %v5931_v28, -inf }
 0x4e9   : > { %v5937_v19 = vpop.f32.mrb[72].mxu1  ;;  %2374 = vmax.xlane.f32.xlu0 %v2373_v9  ;;  %v5939_v16 = vpop.f32.mrb[70].mxu0  ;;  %v2367_v4 = vsel %vm448_vm0, %v5933_v55, -inf }
 0x4ea   : > { %v5941_v48 = vpop.f32.mrb[73].mxu1  ;;  %v5943_v11 = vpop.f32.mrb[71].mxu0  ;;  %v2376_v24 = vsel %vm448_vm0, %v5939_v16, -inf  ;;  %v2361_v22 = vsel %vm448_vm0, %v5937_v19, -inf }
 0x4eb   : > { %6772 = vst [vmem:[#allocation54_spill] sm:$0xff] %v5941_v48  ;;  %v5947_v37 = vpop.f32.mrb[74].mxu1  ;;  %2377 = vmax.xlane.f32.xlu1 %v2376_v24  ;;  %v2370_v9 = vsel %vm448_vm0, %v5943_v11, -inf  ;;  %v2355_v41 = vsel %vm448_vm0, %v5941_v48, -inf }
 0x4ec   : > { %6773 = vst [vmem:[#allocation55_spill] sm:$0xff] %v5947_v37  ;;  %v5949_v52 = vpop.f32.mrb[75].mxu1 }
 0x4ed   : > { %6774 = vst [vmem:[#allocation56_spill] sm:$0xff] %v5949_v52  ;;  %2368 = vmax.xlane.f32.xlu0 %v2367_v4  ;;  %v2346_v4 = vsel %vm448_vm0, %v5929_v33, -inf }
 0x4ef   : > { %2371 = vmax.xlane.f32.xlu1 %v2370_v9  ;;  %v5955_v2 = vpop.f32.mrb[72].mxu0 }
 0x4f0   : > { %v5957_v63 = vpop.f32.mrb[73].mxu0  ;;  %v2385_v56 = vsel %vm448_vm0, %v5955_v2, -inf }
 0x4f1   : > { %2353 = vmax.xlane.f32.xlu0 %v2352_v15  ;;  %v5961_v6 = vpop.f32.mrb[74].mxu0 }
 0x4f2   : > { %v5963_v24 = vpop.f32.mrb[75].mxu0  ;;  %v2388_v9 = vsel %vm448_vm0, %v5961_v6, -inf }
 0x4f3   : > { %2356 = vmax.xlane.f32.xlu1 %v2355_v41  ;;  %v2382_v15 = vsel %vm448_vm0, %v5963_v24, -inf  ;;  %v2379_v41 = vsel %vm448_vm0, %v5957_v63, -inf }
 0x4f5   : > { %2347 = vmax.xlane.f32.xlu0 %v2346_v4 }
 0x4f7   : > { %2389 = vmax.xlane.f32.xlu1 %v2388_v9 }
 0x4f9   : > { %2362 = vmax.xlane.f32.xlu0 %v2361_v22 }
 0x4fb   : > { %2383 = vmax.xlane.f32.xlu1 %v2382_v15  ;;  %v2364_v15 = vsel %vm448_vm0, %v5947_v37, -inf }
 0x4fd   : > { %2386 = vmax.xlane.f32.xlu0 %v2385_v56 }
 0x501   : > { %v5979_v4 = vpop.f32.mrb[76].mxu1  ;;  %2380 = vmax.xlane.f32.xlu0 %v2379_v41  ;;  %v2358_v41 = vsel %vm448_vm0, %v5949_v52, -inf }
 0x502   : > { %6775 = vst [vmem:[#allocation57_spill] sm:$0xff] %v5979_v4  ;;  %v5981_v57 = vpop.f32.mrb[77].mxu1 }
 0x503   : > { %6776 = vst [vmem:[#allocation58_spill] sm:$0xff] %v5981_v57  ;;  %v5983_v9 = vpop.f32.mrb[78].mxu1 }
 0x504   : > { %6777 = vst [vmem:[#allocation59_spill] sm:$0xff] %v5983_v9  ;;  %v5985_v53 = vpop.f32.mrb[79].mxu1  ;;  %v2400_v22 = vsel %vm448_vm0, %v5983_v9, -inf }
 0x505   : > { %6778 = vst [vmem:[#allocation60_spill] sm:$0xff] %v5985_v53  ;;  %2401 = vmax.xlane.f32.xlu1 %v2400_v22  ;;  %2365 = vmax.xlane.f32.xlu0 %v2364_v15  ;;  %v2394_v56 = vsel %vm448_vm0, %v5985_v53, -inf  ;;  %v2397_v22 = vsel %vm448_vm0, %v5979_v4, -inf  ;;  %v2391_v15 = vsel %vm448_vm0, %v5981_v57, -inf  ;;  %v2816_v4 = vpop.permute.xlu1 %2815 }
 0x509   : > { %2395 = vmax.xlane.f32.xlu1 %v2394_v56  ;;  %v5995_v62 = vpop.f32.mrb[80].mxu1  ;;  %2359 = vmax.xlane.f32.xlu0 %v2358_v41  ;;  %v2820_v53 = vpop.permute.xlu1 %2819 }
 0x50a   : > { %6779 = vst [vmem:[#allocation61_spill] sm:$0xff] %v5995_v62  ;;  %v5997_v30 = vpop.f32.mrb[81].mxu1  ;;  %v2409_v56 = vsel %vm448_vm0, %v5995_v62, -inf }
 0x50b   : > { %6780 = vst [vmem:[#allocation62_spill] sm:$0xff] %v5997_v30  ;;  %v5999_v48 = vpop.f32.mrb[82].mxu1  ;;  %v2403_v41 = vsel %vm448_vm0, %v5997_v30, -inf }
 0x50c   : > { %v6001_v9 = vpop.f32.mrb[83].mxu1 }
 0x50d   : > { %2398 = vmax.xlane.f32.xlu0 %v2397_v22  ;;  %v2818_v22 = vpop.permute.xlu0 %2817 }
 0x511   : > { %2392 = vmax.xlane.f32.xlu0 %v2391_v15 }
 0x515   : > { %2410 = vmax.xlane.f32.xlu0 %v2409_v56 }
 0x519   : > { %2404 = vmax.xlane.f32.xlu0 %v2403_v41 }
 0x51a   : > { %2908 = vrot.lane.b32.xlu1 %v5158_v45, %s4821_s10 }
 0x51e   : > { %2910 = vrot.lane.b32.xlu1 %v5182_v14, %s4821_s10 }
 0x52b   : > { %v2327_v52 = vpop.xlane.xlu0 %2326 }
 0x52c   : > { %v2417_v15 = vsub.f32 %v5871_v34, %v2327_v52  ;;  %v1366_v34 = vsel %vm448_vm0, %v5566_v8, 0.0 }
 0x52e   : > { %v2324_v57 = vpop.xlane.xlu1 %2323  ;;  %v2451_v37 = vmul.f32 1.442695, %v2417_v15 }
 0x52f   : > { %v2416_v62 = vsub.f32 %v5885_v36, %v2324_v57  ;;  %v2321_v56 = vpop.xlane.xlu0 %2320  ;;  %2906 = vrot.lane.b32.xlu0 %v5134_v17, %s4821_s10 }
 0x530   : > { %v2415_v41 = vsub.f32 %v5875_v32, %v2321_v56 }
 0x531   : > { %v2449_v30 = vmul.f32 1.442695, %v2416_v62  ;;  %v2412_v62 = vsel %vm448_vm0, %v5999_v48, -inf }
 0x532   : > { %v2447_v45 = vmul.f32 1.442695, %v2415_v41 }
 0x533   : > { %4461 = vpow2.f32 %v2449_v30  ;;  %v2330_v14 = vpop.xlane.xlu0 %2329 }
 0x534   : > { %4463 = vpow2.f32 %v2447_v45  ;;  %v2418_v7 = vsub.f32 %v5881_v10, %v2330_v14  ;;  %v1360_v10 = vsel %vm448_vm0, %v5549_v29, 0.0  ;;  %v1378_v29 = vsel %vm448_vm0, %v5611_v27, 0.0 }
 0x535   : > { %4465 = vpow2.f32 %v2451_v37  ;;  %v1354_v37 = vsel %vm448_vm0, %v5538_v38, 0.0  ;;  %v1390_v27 = vsel %vm448_vm0, %v5635_v42, 0.0 }
 0x536   : > { %v2453_v58 = vmul.f32 1.442695, %v2418_v7 }
 0x538   : > { %4467 = vpow2.f32 %v2453_v58  ;;  %v2406_v58 = vsel %vm448_vm0, %v6001_v9, -inf }
 0x53d   : > { %v6021_v52 = vpop.eup %4461 }
 0x53e   : > { %v6023_v57 = vpop.eup %4463 }
 0x53f   : > { %v2607_v17 = vpack.c.bf16 %v6021_v52, %v6023_v57  ;;  %v6027_v36 = vpop.eup %4465 }
 0x541   : > { %4152 = vmatprep.mubr.msk.bf16.mxu0 %vm448_vm0, %v2607_v17 }
 0x542   : > { %v6032_v30 = vpop.eup %4467  ;;  %2413 = vmax.xlane.f32.xlu1 %v2412_v62  ;;  %v1405_v62 = vsel %vm448_vm0, %v5674_v60, 0.0 }
 0x543   : > { %v2608_v7 = vpack.c.bf16 %v6032_v30, %v6027_v36 }
 0x545   : > { %4153 = vmatmul.mubr.msk.bf16.vlgmr.msra.gmra.mrb[76].mxu0 %vm448_vm0, %v2608_v7 }
 0x546   : > { %4177 = vmatpush3.bf16.msra.mxu0 %v5819_v25  ;;  %2407 = vmax.xlane.f32.xlu1 %v2406_v58  ;;  %v1372_v25 = vsel %vm448_vm0, %v5557_v35, 0.0  ;;  %v1384_v35 = vsel %vm448_vm0, %v5601_v26, 0.0  ;;  %v1399_v26 = vsel %vm448_vm0, %v5684_v0, 0.0  ;;  %v1408_v0 = vsel %vm448_vm0, %v5678_v20, 0.0 }
 0x547   : > { %4178 = vmatprep.subr.bf16.mxu0 %v2816_v4 }
 0x54a   : > { %4179 = vmatpush3.bf16.msra.mxu0 %v2816_v4 }
 0x54b   : > { %4180 = vmatprep.subr.bf16.mxu0 %v2818_v22 }
 0x54e   : > { %4181 = vmatpush3.bf16.msra.mxu0 %v2818_v22  ;;  %1355 = vadd.xlane.f32.xlu0 %v1354_v37 }
 0x54f   : > { %4182 = vmatprep.subr.bf16.mxu0 %v2820_v53 }
 0x552   : > { %4183 = vmatpush3.bf16.msra.mxu0 %v2820_v53  ;;  %1361 = vadd.xlane.f32.xlu0 %v1360_v10 }
 0x556   : > { %1367 = vadd.xlane.f32.xlu0 %v1366_v34 }
 0x557   : > { %2912 = vrot.lane.b32.xlu1 %v5206_v59, %s4821_s10 }
 0x55a   : > { %1373 = vadd.xlane.f32.xlu0 %v1372_v25 }
 0x55b   : > { %v2339_v38 = vpop.xlane.xlu1 %2338 }
 0x55c   : > { %v2421_v32 = vsub.f32 %v5895_v44, %v2339_v38  ;;  %v1411_v38 = vsel %vm448_vm0, %v5710_v13, 0.0  ;;  %v1417_v13 = vsel %vm448_vm0, %v5694_v18, 0.0  ;;  %v1420_v18 = vsel %vm448_vm0, %v5699_v5, 0.0 }
 0x55d   : > { %v2342_v4 = vpop.xlane.xlu0 %2341 }
 0x55e   : > { %v2459_v53 = vmul.f32 1.442695, %v2421_v32  ;;  %v2422_v22 = vsub.f32 %v5901_v46, %v2342_v4  ;;  %1379 = vadd.xlane.f32.xlu0 %v1378_v29  ;;  %v1396_v46 = vsel %vm448_vm0, %v5622_v43, 0.0  ;;  %v1351_v4 = vsel %vm448_vm0, %v5540_v21, 0.0 }
 0x55f   : > { %v2333_v8 = vpop.xlane.xlu1 %2332  ;;  %v1357_v21 = vsel %vm448_vm0, %v5546_v39, 0.0 }
 0x560   : > { %v2461_v15 = vmul.f32 1.442695, %v2422_v22  ;;  %v2419_v56 = vsub.f32 %v5897_v50, %v2333_v8  ;;  %4469 = vpow2.f32 %v2459_v53 }
 0x561   : > { %v2336_v59 = vpop.xlane.xlu0 %2335 }
 0x562   : > { %4471 = vpow2.f32 %v2461_v15  ;;  %v2455_v41 = vmul.f32 1.442695, %v2419_v56  ;;  %v2420_v44 = vsub.f32 %v5903_v3, %v2336_v59  ;;  %1385 = vadd.xlane.f32.xlu0 %v1384_v35 }
 0x564   : > { %v2457_v45 = vmul.f32 1.442695, %v2420_v44  ;;  %4473 = vpow2.f32 %v2455_v41 }
 0x566   : > { %4475 = vpow2.f32 %v2457_v45  ;;  %1391 = vadd.xlane.f32.xlu0 %v1390_v27  ;;  %v1423_v45 = vsel %vm448_vm0, %v5753_v23, 0.0  ;;  %v1429_v23 = vsel %vm448_vm0, %v5744_v47, 0.0 }
 0x56a   : > { %1397 = vadd.xlane.f32.xlu0 %v1396_v46  ;;  %v6062_v50 = vpop.eup %4469  ;;  %v1369_v46 = vsel %vm448_vm0, %v5554_v31, 0.0  ;;  %v1375_v31 = vsel %vm448_vm0, %v5607_v1, 0.0 }
 0x56c   : > { %v6064_v14 = vpop.eup %4471 }
 0x56d   : > { %v2610_v3 = vpack.c.bf16 %v6064_v14, %v6062_v50 }
 0x56e   : > { %1400 = vadd.xlane.f32.xlu0 %v1399_v26  ;;  %v6070_v17 = vpop.eup %4473 }
 0x570   : > { %v6072_v42 = vpop.eup %4475  ;;  %v2351_v7 = vpop.xlane.xlu0 %2350 }
 0x571   : > { %v2609_v43 = vpack.c.bf16 %v6072_v42, %v6070_v17  ;;  %v2345_v58 = vpop.xlane.xlu1 %2344  ;;  %v2425_v32 = vsub.f32 %v5919_v40, %v2351_v7 }
 0x572   : > { %1406 = vadd.xlane.f32.xlu0 %v1405_v62  ;;  %v2423_v40 = vsub.f32 %v5921_v51, %v2345_v58  ;;  %v1363_v51 = vsel %vm448_vm0, %v5564_v12, 0.0 }
 0x573   : > { %4156 = vmatprep.mubr.msk.bf16.mxu0 %vm448_vm0, %v2609_v43  ;;  %v2467_v8 = vmul.f32 1.442695, %v2425_v32 }
 0x574   : > { %4157 = vmatmul.mubr.msk.bf16.gmra.mrb[80].mxu0 %vm448_vm0, %v2610_v3  ;;  %v2463_v35 = vmul.f32 1.442695, %v2423_v40  ;;  %v6784_v40 = vld [vmem:[#allocation55_spill] sm:$0xff] }
 0x576   : > { %1409 = vadd.xlane.f32.xlu0 %v1408_v0  ;;  %v2375_v37 = vpop.xlane.xlu0 %2374 }
 0x577   : > { %v2433_v10 = vsub.f32 %v5931_v28, %v2375_v37 }
 0x578   : > { %v2378_v34 = vpop.xlane.xlu1 %2377 }
 0x579   : > { %v2483_v25 = vmul.f32 1.442695, %v2433_v10  ;;  %v2434_v60 = vsub.f32 %v5939_v16, %v2378_v34 }
 0x57a   : > { %1412 = vadd.xlane.f32.xlu0 %v1411_v38  ;;  %v2369_v29 = vpop.xlane.xlu0 %2368 }
 0x57b   : > { %v2485_v53 = vmul.f32 1.442695, %v2434_v60  ;;  %1352 = vadd.xlane.f32.xlu1 %v1351_v4  ;;  %v2431_v20 = vsub.f32 %v5933_v55, %v2369_v29  ;;  %4477 = vpow2.f32 %v2483_v25 }
 0x57c   : > { %v2372_v28 = vpop.xlane.xlu1 %2371 }
 0x57d   : > { %4479 = vpow2.f32 %v2485_v53  ;;  %v2479_v22 = vmul.f32 1.442695, %v2431_v20  ;;  %v2432_v16 = vsub.f32 %v5943_v11, %v2372_v28  ;;  %v6781_v53 = vld [vmem:[#allocation28_spill] sm:$0xff]  ;;  %v6782_v28 = vld [vmem:[#allocation42_spill] sm:$0xff] }
 0x57e   : > { %1418 = vadd.xlane.f32.xlu0 %v1417_v13  ;;  %v2354_v15 = vpop.xlane.xlu0 %2353  ;;  %v1435_v20 = vsel %vm448_vm0, %v6781_v53, 0.0 }
 0x57f   : > { %v2481_v56 = vmul.f32 1.442695, %v2432_v16  ;;  %1358 = vadd.xlane.f32.xlu1 %v1357_v21  ;;  %v2426_v55 = vsub.f32 %v5925_v61, %v2354_v15  ;;  %4481 = vpow2.f32 %v2479_v22  ;;  %v6783_v16 = vld [vmem:[#allocation54_spill] sm:$0xff] }
 0x580   : > { %v6097_v59 = vpop.xlane.xlu1 %2356 }
 0x581   : > { %4483 = vpow2.f32 %v2481_v56  ;;  %v2469_v11 = vmul.f32 1.442695, %v2426_v55  ;;  %v2427_v13 = vsub.f32 %v6783_v16, %v6097_v59  ;;  %v6785_v56 = vld [vmem:[#allocation26_spill] sm:$0xff] }
 0x582   : > { %4485 = vpow2.f32 %v2467_v8  ;;  %1421 = vadd.xlane.f32.xlu0 %v1420_v18  ;;  %v2348_v39 = vpop.xlane.xlu0 %2347  ;;  %v1441_v55 = vsel %vm448_vm0, %v6785_v56, 0.0 }
 0x583   : > { %4487 = vpow2.f32 %v2469_v11  ;;  %1364 = vadd.xlane.f32.xlu1 %v1363_v51  ;;  %v2424_v41 = vsub.f32 %v5929_v33, %v2348_v39  ;;  %v6786_v11 = vld [vmem:[#allocation59_spill] sm:$0xff]  ;;  %v2471_v39 = vmul.f32 1.442695, %v2427_v13 }
 0x584   : > { %v2390_v61 = vpop.xlane.xlu1 %2389  ;;  %4489 = vpow2.f32 %v2463_v35  ;;  %v6787_v35 = vld [vmem:[#allocation41_spill] sm:$0xff] }
 0x585   : > { %v2465_v44 = vmul.f32 1.442695, %v2424_v41  ;;  %v6106_v27 = vpop.eup %4477  ;;  %v2438_v5 = vsub.f32 %v5961_v6, %v2390_v61  ;;  %v1393_v51 = vsel %vm448_vm0, %v6787_v35, 0.0  ;;  %v6788_v61 = vld [vmem:[#allocation56_spill] sm:$0xff] }
 0x586   : > { %1424 = vadd.xlane.f32.xlu0 %v1423_v45  ;;  %v2363_v12 = vpop.xlane.xlu0 %2362 }
 0x587   : > { %v6111_v26 = vpop.eup %4479  ;;  %4491 = vpow2.f32 %v2465_v44  ;;  %1370 = vadd.xlane.f32.xlu1 %v1369_v46  ;;  %v2493_v43 = vmul.f32 1.442695, %v2438_v5  ;;  %v2429_v38 = vsub.f32 %v5937_v19, %v2363_v12  ;;  %v1387_v19 = vsel %vm448_vm0, %v6782_v28, 0.0 }
 0x588   : > { %v2616_v33 = vpack.c.bf16 %v6111_v26, %v6106_v27  ;;  %v2384_v3 = vpop.xlane.xlu1 %2383  ;;  %v2520_v12 = vsel %vm448_vm0, %v6032_v30, 0.0 }
 0x589   : > { %v6117_v62 = vpop.eup %4481  ;;  %v2436_v6 = vsub.f32 %v5963_v24, %v2384_v3  ;;  %v1432_v24 = vsel %vm448_vm0, %v5746_v49, 0.0  ;;  %4493 = vpow2.f32 %v2493_v43  ;;  %v2475_v8 = vmul.f32 1.442695, %v2429_v38  ;;  %v6789_v3 = vld [vmem:[#allocation60_spill] sm:$0xff]  ;;  %v6790_v43 = vld [vmem:[#allocation39_spill] sm:$0xff] }
 0x58a   : > { %1430 = vadd.xlane.f32.xlu0 %v1429_v23  ;;  %v2387_v7 = vpop.xlane.xlu0 %2386 }
 0x58b   : > { %v6122_v58 = vpop.eup %4483  ;;  %1376 = vadd.xlane.f32.xlu1 %v1375_v31  ;;  %v2437_v0 = vsub.f32 %v5955_v2, %v2387_v7  ;;  %v2489_v25 = vmul.f32 1.442695, %v2436_v6  ;;  %v1381_v2 = vsel %vm448_vm0, %v5597_v54, 0.0  ;;  %v1402_v6 = vsel %vm448_vm0, %v6790_v43, 0.0  ;;  %v6796_v43 = vld [vmem:[#allocation61_spill] sm:$0xff] }
 0x58c   : > { %v6125_v37 = vpop.eup %4485  ;;  %v2615_v47 = vpack.c.bf16 %v6122_v58, %v6117_v62 }
 0x58d   : > { %v6129_v10 = vpop.eup %4487  ;;  %v2491_v34 = vmul.f32 1.442695, %v2437_v0  ;;  %v6791_v0 = vld [vmem:[#allocation57_spill] sm:$0xff] }
 0x58e   : > { %v2612_v1 = vpack.c.bf16 %v6129_v10, %v6125_v37  ;;  %1433 = vadd.xlane.f32.xlu0 %v1432_v24  ;;  %4184 = vmatprep.mubr.msk.bf16.mxu0 %vm448_vm0, %v2615_v47  ;;  %v2381_v60 = vpop.xlane.xlu0 %2380  ;;  %v6141_v49 = vpop.eup %4489 }
 0x58f   : > { %4495 = vpow2.f32 %v2491_v34  ;;  %1382 = vadd.xlane.f32.xlu1 %v1381_v2  ;;  %v2435_v32 = vsub.f32 %v5957_v63, %v2381_v60  ;;  %4185 = vmatmul.mubr.msk.bf16.vlgmr.msra.gmra.mrb[84].mxu0 %vm448_vm0, %v2616_v33  ;;  %v6792_v2 = vld [vmem:[#allocation25_spill] sm:$0xff] }
 0x590   : > { %4497 = vpow2.f32 %v2489_v25  ;;  %v1414_v60 = vsel %vm448_vm0, %v6792_v2, 0.0 }
 0x591   : > { %v6143_v4 = vpop.eup %4491  ;;  %v2487_v29 = vmul.f32 1.442695, %v2435_v32 }
 0x592   : > { %v2402_v54 = vpop.xlane.xlu1 %2401  ;;  %1436 = vadd.xlane.f32.xlu0 %v1435_v20  ;;  %v2366_v22 = vpop.xlane.xlu0 %2365  ;;  %v2611_v63 = vpack.c.bf16 %v6143_v4, %v6141_v49 }
 0x593   : > { %4499 = vpow2.f32 %v2487_v29  ;;  %1388 = vadd.xlane.f32.xlu1 %v1387_v19  ;;  %v2430_v21 = vsub.f32 %v6784_v40, %v2366_v22  ;;  %v2442_v18 = vsub.f32 %v6786_v11, %v2402_v54  ;;  %v6162_v45 = vpop.eup %4493  ;;  %v6793_v29 = vld [vmem:[#allocation58_spill] sm:$0xff] }
 0x594   : > { %4168 = vmatprep.mubr.msk.bf16.mxu1 %vm448_vm0, %v2611_v63  ;;  %4501 = vpow2.f32 %v2475_v8  ;;  %v6794_v19 = vld [vmem:[#allocation18_spill] sm:$0xff]  ;;  %v2526_v8 = vsel %vm448_vm0, %v6072_v42, 0.0 }
 0x595   : > { %v2477_v15 = vmul.f32 1.442695, %v2430_v21  ;;  %4169 = vmatmul.mubr.msk.bf16.vlgmr.msra.gmra.mrb[84].mxu1 %vm448_vm0, %v2612_v1  ;;  %v2501_v33 = vmul.f32 1.442695, %v2442_v18  ;;  %v2514_v1 = vsel %vm448_vm0, %v6021_v52, 0.0  ;;  %v2532_v52 = vsel %vm448_vm0, %v6064_v14, 0.0 }
 0x596   : > { %1442 = vadd.xlane.f32.xlu0 %v1441_v55  ;;  %v2360_v59 = vpop.xlane.xlu0 %2359  ;;  %v2396_v41 = vpop.xlane.xlu1 %2395  ;;  %v1426_v22 = vsel %vm448_vm0, %v6794_v19, 0.0  ;;  %v6795_v21 = vld [vmem:[#allocation14_spill] sm:$0xff]  ;;  %v2544_v18 = vsel %vm448_vm0, %v6129_v10, 0.0  ;;  %v2568_v10 = vsel %vm448_vm0, %v6111_v26, 0.0  ;;  %v2523_v26 = vsel %vm448_vm0, %v6070_v17, 0.0 }
 0x597   : > { %1394 = vadd.xlane.f32.xlu1 %v1393_v51  ;;  %v2428_v44 = vsub.f32 %v6788_v61, %v2360_v59  ;;  %4503 = vpow2.f32 %v2477_v15  ;;  %v2440_v23 = vsub.f32 %v6789_v3, %v2396_v41  ;;  %v1438_v14 = vsel %vm448_vm0, %v6795_v21, 0.0  ;;  %v6798_v21 = vld [vmem:[#allocation16_spill] sm:$0xff] }
 0x598   : > { %4505 = vpow2.f32 %v2471_v39  ;;  %v2517_v51 = vsel %vm448_vm0, %v6027_v36, 0.0  ;;  %v2511_v61 = vsel %vm448_vm0, %v6023_v57, 0.0  ;;  %v2562_v57 = vsel %vm448_vm0, %v6122_v58, 0.0 }
 0x599   : > { %v6164_v5 = vpop.eup %4495  ;;  %v2473_v46 = vmul.f32 1.442695, %v2428_v44  ;;  %v2497_v25 = vmul.f32 1.442695, %v2440_v23  ;;  %v2541_v3 = vsel %vm448_vm0, %v6125_v37, 0.0  ;;  %v2535_v17 = vsel %vm448_vm0, %v6141_v49, 0.0 }
 0x59a   : > { %2521 = vadd.xlane.f32.xlu0 %v2520_v12  ;;  %v2399_v31 = vpop.xlane.xlu0 %2398  ;;  %v2618_v7 = vpack.c.bf16 %v6162_v45, %v6164_v5  ;;  %v6174_v34 = vpop.eup %4497  ;;  %v2529_v12 = vsel %vm448_vm0, %v6062_v50, 0.0  ;;  %v2580_v50 = vsel %vm448_vm0, %v6162_v45, 0.0  ;;  %v2559_v23 = vsel %vm448_vm0, %v6117_v62, 0.0 }
 0x59b   : > { %1403 = vadd.xlane.f32.xlu1 %v1402_v6  ;;  %v2441_v47 = vsub.f32 %v6791_v0, %v2399_v31  ;;  %4507 = vpow2.f32 %v2473_v46  ;;  %v2909_v42 = vpop.permute.xlu1 %2908  ;;  %v2538_v46 = vsel %vm448_vm0, %v6143_v4, 0.0  ;;  %v2565_v4 = vsel %vm448_vm0, %v6106_v27, 0.0 }
 0x59c   : > { %4509 = vpow2.f32 %v2501_v33  ;;  %v2574_v37 = vsel %vm448_vm0, %v6174_v34, 0.0  ;;  %v2577_v31 = vsel %vm448_vm0, %v6164_v5, 0.0 }
 0x59d   : > { %v6176_v24 = vpop.eup %4499  ;;  %v2499_v30 = vmul.f32 1.442695, %v2441_v47 }
 0x59e   : > { %2515 = vadd.xlane.f32.xlu0 %v2514_v1  ;;  %v2393_v38 = vpop.xlane.xlu0 %2392  ;;  %v2617_v32 = vpack.c.bf16 %v6174_v34, %v6176_v24  ;;  %v6186_v20 = vpop.eup %4501 }
 0x59f   : > { %4511 = vpow2.f32 %v2499_v30  ;;  %1415 = vadd.xlane.f32.xlu1 %v1414_v60  ;;  %v2439_v53 = vsub.f32 %v6793_v29, %v2393_v38  ;;  %v2911_v36 = vpop.permute.xlu1 %2910  ;;  %v2553_v45 = vsel %vm448_vm0, %v6186_v20, 0.0  ;;  %v2571_v38 = vsel %vm448_vm0, %v6176_v24, 0.0 }
 0x5a0   : > { %4188 = vmatprep.mubr.msk.bf16.mxu0 %vm448_vm0, %v2617_v32  ;;  %4513 = vpow2.f32 %v2497_v25 }
 0x5a1   : > { %v2495_v54 = vmul.f32 1.442695, %v2439_v53  ;;  %4189 = vmatmul.mubr.msk.bf16.gmra.mrb[88].mxu0 %vm448_vm0, %v2618_v7  ;;  %v4504_v28 = vpop.eup %4503  ;;  %v6797_v7 = vld [vmem:[#allocation62_spill] sm:$0xff] }
 0x5a2   : > { %2533 = vadd.xlane.f32.xlu0 %v2532_v52  ;;  %v6193_v63 = vpop.xlane.xlu0 %2410  ;;  %v2614_v16 = vpack.c.bf16 %v4504_v28, %v6186_v20  ;;  %v6196_v13 = vpop.eup %4505  ;;  %v2556_v33 = vsel %vm448_vm0, %v4504_v28, 0.0 }
 0x5a3   : > { %4515 = vpow2.f32 %v2495_v54  ;;  %1427 = vadd.xlane.f32.xlu1 %v1426_v22  ;;  %v2445_v49 = vsub.f32 %v6796_v43, %v6193_v63  ;;  %v2547_v1 = vsel %vm448_vm0, %v6196_v13, 0.0 }
 0x5a5   : > { %v4508_v40 = vpop.eup %4507  ;;  %v2507_v62 = vmul.f32 1.442695, %v2445_v49  ;;  %v6806_v49 = vld [vmem:[#allocation33_spill] sm:$0xff] }
 0x5a6   : > { %2527 = vadd.xlane.f32.xlu0 %v2526_v8  ;;  %v6202_v15 = vpop.xlane.xlu0 %2404  ;;  %v2613_v56 = vpack.c.bf16 %v4508_v40, %v6196_v13  ;;  %v6205_v55 = vpop.eup %4509  ;;  %v2550_v58 = vsel %vm448_vm0, %v4508_v40, 0.0 }
 0x5a7   : > { %1439 = vadd.xlane.f32.xlu1 %v1438_v14  ;;  %v2592_v27 = vsel %vm448_vm0, %v6205_v55, 0.0  ;;  %v2443_v0 = vsub.f32 %v6797_v7, %v6202_v15  ;;  %4517 = vpow2.f32 %v2507_v62 }
 0x5a8   : > { %4172 = vmatprep.mubr.msk.bf16.mxu1 %vm448_vm0, %v2613_v56 }
 0x5a9   : > { %v6207_v11 = vpop.eup %4511  ;;  %4173 = vmatmul.mubr.msk.bf16.gmra.mrb[88].mxu1 %vm448_vm0, %v2614_v16  ;;  %v2503_v25 = vmul.f32 1.442695, %v2443_v0  ;;  %v6807_v0 = vld [vmem:[#allocation31_spill] sm:$0xff] }
 0x5aa   : > { %v2620_v35 = vpack.c.bf16 %v6205_v55, %v6207_v11  ;;  %2545 = vadd.xlane.f32.xlu0 %v2544_v18  ;;  %v2907_v59 = vpop.permute.xlu0 %2906  ;;  %v4514_v39 = vpop.eup %4513  ;;  %v6799_v55 = vld [vmem:[#allocation29_spill] sm:$0xff] }
 0x5ab   : > { %2518 = vadd.xlane.f32.xlu1 %v2517_v51  ;;  %4192 = vmatprep.subr.bf16.mxu1 %v2907_v59  ;;  %v2586_v6 = vsel %vm448_vm0, %v4514_v39, 0.0 }
 0x5ac   : > { %4193 = vmatpush3.bf16.msra.mxu1 %v2907_v59 }
 0x5ad   : > { %v6217_v41 = vpop.eup %4515  ;;  %4194 = vmatprep.subr.bf16.mxu1 %v2909_v42 }
 0x5ae   : > { %2569 = vadd.xlane.f32.xlu0 %v2568_v10  ;;  %v2619_v44 = vpack.c.bf16 %v4514_v39, %v6217_v41  ;;  %v2583_v24 = vsel %vm448_vm0, %v6217_v41, 0.0  ;;  %v6801_v41 = vld [vmem:[#allocation22_spill] sm:$0xff] }
 0x5af   : > { %2512 = vadd.xlane.f32.xlu1 %v2511_v61 }
 0x5b0   : > { %4195 = vmatpush3.bf16.msra.mxu1 %v2909_v42  ;;  %4200 = vmatprep.mubr.msk.bf16.mxu1 %vm448_vm0, %v2619_v44 }
 0x5b1   : > { %4196 = vmatprep.subr.bf16.mxu1 %v2911_v36 }
 0x5b2   : > { %2539 = vadd.xlane.f32.xlu0 %v2538_v46 }
 0x5b3   : > { %2530 = vadd.xlane.f32.xlu1 %v2529_v12 }
 0x5b4   : > { %4197 = vmatpush3.bf16.msra.mxu1 %v2911_v36  ;;  %v6802_v36 = vld [vmem:[#allocation23_spill] sm:$0xff] }
 0x5b6   : > { %2563 = vadd.xlane.f32.xlu0 %v2562_v57 }
 0x5b7   : > { %2524 = vadd.xlane.f32.xlu1 %v2523_v26  ;;  %v6803_v26 = vld [vmem:[#allocation21_spill] sm:$0xff] }
 0x5ba   : > { %2557 = vadd.xlane.f32.xlu0 %v2556_v33 }
 0x5bb   : > { %2542 = vadd.xlane.f32.xlu1 %v2541_v3 }
 0x5be   : > { %2581 = vadd.xlane.f32.xlu0 %v2580_v50 }
 0x5bf   : > { %2566 = vadd.xlane.f32.xlu1 %v2565_v4  ;;  %v6804_v4 = vld [vmem:[#allocation32_spill] sm:$0xff] }
 0x5c2   : > { %2551 = vadd.xlane.f32.xlu0 %v2550_v58 }
 0x5c3   : > { %2536 = vadd.xlane.f32.xlu1 %v2535_v17 }
 0x5c6   : > { %2575 = vadd.xlane.f32.xlu0 %v2574_v37 }
 0x5c7   : > { %2560 = vadd.xlane.f32.xlu1 %v2559_v23  ;;  %v6805_v23 = vld [vmem:[#allocation34_spill] sm:$0xff] }
 0x5ca   : > { %2593 = vadd.xlane.f32.xlu0 %v2592_v27 }
 0x5cb   : > { %2554 = vadd.xlane.f32.xlu1 %v2553_v45 }
 0x5ce   : > { %2587 = vadd.xlane.f32.xlu0 %v2586_v6 }
 0x5cf   : > { %v2414_v47 = vpop.xlane.xlu1 %2413  ;;  %2578 = vadd.xlane.f32.xlu1 %v2577_v31 }
 0x5d0   : > { %v2446_v34 = vsub.f32 %v5999_v48, %v2414_v47  ;;  %v2589_v48 = vsel %vm448_vm0, %v6207_v11, 0.0 }
 0x5d2   : > { %v2509_v30 = vmul.f32 1.442695, %v2446_v34 }
 0x5d3   : > { %v2408_v2 = vpop.xlane.xlu1 %2407  ;;  %2548 = vadd.xlane.f32.xlu1 %v2547_v1 }
 0x5d4   : > { %4519 = vpow2.f32 %v2509_v30  ;;  %v2444_v5 = vsub.f32 %v6001_v9, %v2408_v2  ;;  %v4518_v9 = vpop.eup %4517 }
 0x5d5   : > { %4521 = vpow2.f32 %v2503_v25  ;;  %v2601_v22 = vsel %vm448_vm0, %v4518_v9, 0.0  ;;  %v6808_v25 = vld [vmem:[#allocation35_spill] sm:$0xff] }
 0x5d6   : > { %v2505_v60 = vmul.f32 1.442695, %v2444_v5 }
 0x5d7   : > { %v2913_v32 = vpop.permute.xlu1 %2912  ;;  %2572 = vadd.xlane.f32.xlu1 %v2571_v38 }
 0x5d8   : > { %4523 = vpow2.f32 %v2505_v60  ;;  %4198 = vmatprep.subr.bf16.mxu1 %v2913_v32 }
 0x5d9   : > { %4199 = vmatpush3.bf16.msra.mxu1 %v2913_v32 }
 0x5db   : > { %2590 = vadd.xlane.f32.xlu1 %v2589_v48  ;;  %v1356_v29 = vpop.xlane.xlu0 %1355  ;;  %v6809_v48 = vld [vmem:[#allocation43_spill] sm:$0xff] }
 0x5dc   : > { %4201 = vmatmul.mubr.msk.bf16.vlgmr.msra.gmra.mrb[92].mxu1 %vm448_vm0, %v2620_v35  ;;  %4525 = vrcp.f32 %v1356_v29  ;;  %v6800_v35 = vld [vmem:[#allocation15_spill] sm:$0xff] }
 0x5de   : > { %v4520_v53 = vpop.eup %4519 }
 0x5df   : > { %2584 = vadd.xlane.f32.xlu1 %v2583_v24  ;;  %v2604_v20 = vsel %vm448_vm0, %v4520_v53, 0.0  ;;  %v1362_v54 = vpop.xlane.xlu0 %1361  ;;  %v2622_v52 = vpack.c.bf16 %v4520_v53, %v4518_v9  ;;  %v4522_v28 = vpop.eup %4521  ;;  %v6810_v53 = vld [vmem:[#allocation17_spill] sm:$0xff] }
 0x5e0   : > { %2605 = vadd.xlane.f32.xlu0 %v2604_v20  ;;  %4527 = vrcp.f32 %v1362_v54  ;;  %v2595_v40 = vsel %vm448_vm0, %v4522_v28, 0.0 }
 0x5e2   : > { %v4524_v19 = vpop.eup %4523 }
 0x5e3   : > { %2602 = vadd.xlane.f32.xlu1 %v2601_v22  ;;  %v2598_v63 = vsel %vm448_vm0, %v4524_v19, 0.0  ;;  %v1368_v16 = vpop.xlane.xlu0 %1367  ;;  %v2621_v13 = vpack.c.bf16 %v4524_v19, %v4522_v28  ;;  %v6811_v28 = vld [vmem:[#allocation36_spill] sm:$0xff] }
 0x5e4   : > { %2599 = vadd.xlane.f32.xlu0 %v2598_v63  ;;  %4529 = vrcp.f32 %v1368_v16  ;;  %v6812_v63 = vld [vmem:[#allocation27_spill] sm:$0xff] }
 0x5e5   : > { %4204 = vmatprep.mubr.msk.bf16.mxu1 %vm448_vm0, %v2621_v13 }
 0x5e6   : > { %v4526_v8 = vpop.eup %4525  ;;  %4205 = vmatmul.mubr.msk.bf16.gmra.mrb[96].mxu1 %vm448_vm0, %v2622_v52 }
 0x5e7   : > { %v1820_v14 = vmul.f32 %v4526_v8, %v6798_v21  ;;  %2596 = vadd.xlane.f32.xlu1 %v2595_v40  ;;  %v1374_v15 = vpop.xlane.xlu0 %1373 }
 0x5e8   : > { %4531 = vrcp.f32 %v1374_v15 }
 0x5e9   : > { %1852 = vst.msk [vmem:[#allocation2 + $0x8] sm:$0xff] %vm766_vm1, %v1820_v14 }
 0x5ea   : > { %v4528_v56 = vpop.eup %4527 }
 0x5eb   : > { %v1822_v11 = vmul.f32 %v4528_v56, %v6799_v55  ;;  %v1380_v18 = vpop.xlane.xlu0 %1379  ;;  %v6813_v56 = vld [vmem:[#allocation44_spill] sm:$0xff] }
 0x5ec   : > { %4533 = vrcp.f32 %v1380_v18 }
 0x5ed   : > { %1854 = vst.msk [vmem:[#allocation2 + $0x18] sm:$0xff] %vm766_vm1, %v1822_v11 }
 0x5ee   : > { %v4530_v42 = vpop.eup %4529 }
 0x5ef   : > { %v1824_v51 = vmul.f32 %v4530_v42, %v6800_v35  ;;  %v1386_v59 = vpop.xlane.xlu0 %1385  ;;  %v6814_v42 = vld [vmem:[#allocation20_spill] sm:$0xff] }
 0x5f0   : > { %4535 = vrcp.f32 %v1386_v59 }
 0x5f1   : > { %1856 = vst.msk [vmem:[#allocation2 + $0x28] sm:$0xff] %vm766_vm1, %v1824_v51 }
 0x5f2   : > { %v4532_v39 = vpop.eup %4531 }
 0x5f3   : > { %v1826_v10 = vmul.f32 %v4532_v39, %v6801_v41  ;;  %v1392_v61 = vpop.xlane.xlu0 %1391  ;;  %v6815_v41 = vld [vmem:[#allocation47_spill] sm:$0xff] }
 0x5f4   : > { %4537 = vrcp.f32 %v1392_v61 }
 0x5f5   : > { %1858 = vst.msk [vmem:[#allocation2 + $0x38] sm:$0xff] %vm766_vm1, %v1826_v10 }
 0x5f6   : > { %v4534_v44 = vpop.eup %4533 }
 0x5f7   : > { %v1828_v46 = vmul.f32 %v4534_v44, %v6802_v36  ;;  %v1398_v12 = vpop.xlane.xlu0 %1397  ;;  %v6816_v44 = vld [vmem:[#allocation19_spill] sm:$0xff] }
 0x5f8   : > { %4539 = vrcp.f32 %v1398_v12 }
 0x5f9   : > { %1860 = vst.msk [vmem:[#allocation2 + $0x48] sm:$0xff] %vm766_vm1, %v1828_v46 }
 0x5fa   : > { %v4536_v57 = vpop.eup %4535 }
 0x5fb   : > { %v1830_v33 = vmul.f32 %v4536_v57, %v6803_v26  ;;  %v1401_v3 = vpop.xlane.xlu0 %1400  ;;  %v6817_v26 = vld [vmem:[#allocation46_spill] sm:$0xff] }
 0x5fc   : > { %4541 = vrcp.f32 %v1401_v3 }
 0x5fd   : > { %1862 = vst.msk [vmem:[#allocation2 + $0x58] sm:$0xff] %vm766_vm1, %v1830_v33 }
 0x5fe   : > { %v4538_v50 = vpop.eup %4537 }
 0x5ff   : > { %v1832_v58 = vmul.f32 %v4538_v50, %v6804_v4  ;;  %v1407_v17 = vpop.xlane.xlu0 %1406  ;;  %v6818_v50 = vld [vmem:[#allocation37_spill] sm:$0xff] }
 0x600   : > { %4543 = vrcp.f32 %v1407_v17 }
 0x601   : > { %1864 = vst.msk [vmem:[#allocation2 + $0x68] sm:$0xff] %vm766_vm1, %v1832_v58 }
 0x602   : > { %v4540_v37 = vpop.eup %4539 }
 0x603   : > { %v1834_v27 = vmul.f32 %v4540_v37, %v6805_v23  ;;  %v1410_v45 = vpop.xlane.xlu0 %1409  ;;  %v6819_v23 = vld [vmem:[#allocation48_spill] sm:$0xff] }
 0x604   : > { %4545 = vrcp.f32 %v1410_v45 }
 0x605   : > { %1866 = vst.msk [vmem:[#allocation2 + $0x78] sm:$0xff] %vm766_vm1, %v1834_v27 }
 0x606   : > { %v4542_v43 = vpop.eup %4541 }
 0x607   : > { %v1835_v6 = vmul.f32 %v4542_v43, %v6806_v49  ;;  %v1413_v31 = vpop.xlane.xlu0 %1412  ;;  %v6820_v43 = vld [vmem:[#allocation24_spill] sm:$0xff] }
 0x608   : > { %v1353_v62 = vpop.xlane.xlu1 %1352  ;;  %4547 = vrcp.f32 %v1413_v31 }
 0x609   : > { %1867 = vst.msk [vmem:[#allocation2 + $0x80] sm:$0xff] %vm766_vm1, %v1835_v6  ;;  %4549 = vrcp.f32 %v1353_v62 }
 0x60a   : > { %v4544_v7 = vpop.eup %4543 }
 0x60b   : > { %v1837_v47 = vmul.f32 %v4544_v7, %v6807_v0  ;;  %v1419_v34 = vpop.xlane.xlu0 %1418  ;;  %v6821_v7 = vld [vmem:[#allocation51_spill] sm:$0xff] }
 0x60c   : > { %v1359_v30 = vpop.xlane.xlu1 %1358  ;;  %4551 = vrcp.f32 %v1419_v34  ;;  %v6822_v34 = vld [vmem:[#allocation38_spill] sm:$0xff] }
 0x60d   : > { %1869 = vst.msk [vmem:[#allocation2 + $0x90] sm:$0xff] %vm766_vm1, %v1837_v47  ;;  %4553 = vrcp.f32 %v1359_v30 }
 0x60e   : > { %v4546_v1 = vpop.eup %4545 }
 0x60f   : > { %v1838_v2 = vmul.f32 %v4546_v1, %v6808_v25  ;;  %v1422_v5 = vpop.xlane.xlu0 %1421 }
 0x610   : > { %v1365_v60 = vpop.xlane.xlu1 %1364  ;;  %4555 = vrcp.f32 %v1422_v5  ;;  %v6823_v5 = vld [vmem:[#allocation50_spill] sm:$0xff] }
 0x611   : > { %1870 = vst.msk [vmem:[#allocation2 + $0x98] sm:$0xff] %vm766_vm1, %v1838_v2  ;;  %4557 = vrcp.f32 %v1365_v60 }
 0x612   : > { %v4548_v38 = vpop.eup %4547 }
 0x613   : > { %v4550_v32 = vpop.eup %4549  ;;  %v1839_v29 = vmul.f32 %v4548_v38, %v6809_v48  ;;  %v1425_v9 = vpop.xlane.xlu0 %1424  ;;  %v6824_v38 = vld [vmem:[#allocation30_spill] sm:$0xff] }
 0x614   : > { %v1819_v24 = vmul.f32 %v4550_v32, %v6810_v53  ;;  %v1371_v20 = vpop.xlane.xlu1 %1370  ;;  %4559 = vrcp.f32 %v1425_v9  ;;  %v6825_v9 = vld [vmem:[#allocation40_spill] sm:$0xff] }
 0x615   : > { %1871 = vst.msk [vmem:[#allocation2 + $0xa0] sm:$0xff] %vm766_vm1, %v1839_v29  ;;  %4561 = vrcp.f32 %v1371_v20 }
 0x616   : > { %v4552_v54 = vpop.eup %4551  ;;  %1851 = vst.msk [vmem:[#allocation2] sm:$0xff] %vm766_vm1, %v1819_v24 }
 0x617   : > { %v4554_v52 = vpop.eup %4553  ;;  %v1841_v19 = vmul.f32 %v4552_v54, %v6811_v28  ;;  %v1431_v22 = vpop.xlane.xlu0 %1430 }
 0x618   : > { %v1821_v16 = vmul.f32 %v4554_v52, %v6812_v63  ;;  %v1377_v13 = vpop.xlane.xlu1 %1376  ;;  %v6306_v8 = vpop.f32.mrb[76].mxu0  ;;  %4563 = vrcp.f32 %v1431_v22 }
 0x619   : > { %1873 = vst.msk [vmem:[#allocation2 + $0xb0] sm:$0xff] %vm766_vm1, %v1841_v19  ;;  %4565 = vrcp.f32 %v1377_v13  ;;  %v6309_v40 = vpop.f32.mrb[77].mxu0  ;;  %v6826_v19 = vld [vmem:[#allocation45_spill] sm:$0xff] }
 0x61a   : > { %v4556_v21 = vpop.eup %4555  ;;  %1853 = vst.msk [vmem:[#allocation2 + $0x10] sm:$0xff] %vm766_vm1, %v1821_v16  ;;  %v6312_v14 = vpop.f32.mrb[78].mxu0  ;;  %v4393_v16 = vld [vmem:[#allocation8] sm:$0xff]  }
 0x61b   : > { %v4558_v15 = vpop.eup %4557  ;;  %v1842_v55 = vmul.f32 %v4556_v21, %v6813_v56  ;;  %v6315_v11 = vpop.f32.mrb[79].mxu0  ;;  %v6827_v21 = vld [vmem:[#allocation49_spill] sm:$0xff]  ;;  %4208 = vmatprep.subr.bf16.mxu0 %v4393_v16 }
 0x61c   : > { %v1434_v18 = vpop.xlane.xlu0 %1433  ;;  %v1823_v35 = vmul.f32 %v4558_v15, %v6814_v42  ;;  %v1383_v51 = vpop.xlane.xlu1 %1382  ;;  %4209 = vmatpush3.bf16.msra.mxu0 %v4393_v16  ;;  %v6828_v42 = vld [vmem:[#allocation53_spill] sm:$0xff] }
 0x61d   : > { %4567 = vrcp.f32 %v1434_v18  ;;  %1874 = vst.msk [vmem:[#allocation2 + $0xb8] sm:$0xff] %vm766_vm1, %v1842_v55  ;;  %v4394_v18 = vld [vmem:[#allocation8 + $0x8] sm:$0xff]  }
 0x61e   : > { %4569 = vrcp.f32 %v1383_v51  ;;  %v4560_v59 = vpop.eup %4559  ;;  %1855 = vst.msk [vmem:[#allocation2 + $0x20] sm:$0xff] %vm766_vm1, %v1823_v35  ;;  %4210 = vmatprep.subr.bf16.mxu0 %v4394_v18 }
 0x61f   : > { %v4562_v39 = vpop.eup %4561  ;;  %v1843_v10 = vmul.f32 %v4560_v59, %v6815_v41  ;;  %v4395_v59 = vld [vmem:[#allocation8 + $0x10] sm:$0xff]  }
 0x620   : > { %v1437_v61 = vpop.xlane.xlu0 %1436  ;;  %v1825_v36 = vmul.f32 %v4562_v39, %v6816_v44  ;;  %v1389_v46 = vpop.xlane.xlu1 %1388  ;;  %4211 = vmatpush3.bf16.msra.mxu0 %v4394_v18 }
 0x621   : > { %4571 = vrcp.f32 %v1437_v61  ;;  %1875 = vst.msk [vmem:[#allocation2 + $0xc0] sm:$0xff] %vm766_vm1, %v1843_v10  ;;  %4212 = vmatprep.subr.bf16.mxu0 %v4395_v59  ;;  %v4396_v61 = vld [vmem:[#allocation8 + $0x18] sm:$0xff]  }
 0x622   : > { %4573 = vrcp.f32 %v1389_v46  ;;  %v4564_v12 = vpop.eup %4563  ;;  %1857 = vst.msk [vmem:[#allocation2 + $0x30] sm:$0xff] %vm766_vm1, %v1825_v36 }
 0x623   : > { %v4566_v57 = vpop.eup %4565  ;;  %v1845_v33 = vmul.f32 %v4564_v12, %v6817_v26 }
 0x624   : > { %v1443_v3 = vpop.xlane.xlu0 %1442  ;;  %v1827_v4 = vmul.f32 %v4566_v57, %v6818_v50  ;;  %v1395_v58 = vpop.xlane.xlu1 %1394  ;;  %4213 = vmatpush3.bf16.msra.mxu0 %v4395_v59 }
 0x625   : > { %4575 = vrcp.f32 %v1443_v3  ;;  %1877 = vst.msk [vmem:[#allocation2 + $0xd0] sm:$0xff] %vm766_vm1, %v1845_v33  ;;  %4214 = vmatprep.subr.bf16.mxu0 %v4396_v61 }
 0x626   : > { %4577 = vrcp.f32 %v1395_v58  ;;  %1859 = vst.msk [vmem:[#allocation2 + $0x40] sm:$0xff] %vm766_vm1, %v1827_v4 }
 0x627   : > { %v4568_v17 = vpop.eup %4567 }
 0x628   : > { %v4570_v37 = vpop.eup %4569  ;;  %v1846_v27 = vmul.f32 %v4568_v17, %v6819_v23  ;;  %v2522_v45 = vpop.xlane.xlu0 %2521  ;;  %4215 = vmatpush3.bf16.msra.mxu0 %v4396_v61 }
 0x629   : > { %v1829_v49 = vmul.f32 %v4570_v37, %v6820_v43  ;;  %v1404_v6 = vpop.xlane.xlu1 %1403 }
 0x62a   : > { %1878 = vst.msk [vmem:[#allocation2 + $0xd8] sm:$0xff] %vm766_vm1, %v1846_v27  ;;  %4579 = vrcp.f32 %v1404_v6 }
 0x62b   : > { %v4572_v31 = vpop.eup %4571  ;;  %1861 = vst.msk [vmem:[#allocation2 + $0x50] sm:$0xff] %vm766_vm1, %v1829_v49 }
 0x62c   : > { %v4574_v62 = vpop.eup %4573  ;;  %v1847_v0 = vmul.f32 %v4572_v31, %v6821_v7  ;;  %v2516_v47 = vpop.xlane.xlu0 %2515 }
 0x62d   : > { %v1831_v30 = vmul.f32 %v4574_v62, %v6822_v34  ;;  %v1416_v1 = vpop.xlane.xlu1 %1415  ;;  %4581 = vrcp.f32 %v2516_v47 }
 0x62e   : > { %1879 = vst.msk [vmem:[#allocation2 + $0xe0] sm:$0xff] %vm766_vm1, %v1847_v0  ;;  %4583 = vrcp.f32 %v1416_v1 }
 0x62f   : > { %v4576_v25 = vpop.eup %4575  ;;  %1863 = vst.msk [vmem:[#allocation2 + $0x60] sm:$0xff] %vm766_vm1, %v1831_v30 }
 0x630   : > { %v4578_v2 = vpop.eup %4577  ;;  %v1849_v60 = vmul.f32 %v4576_v25, %v6823_v5  ;;  %v2534_v52 = vpop.xlane.xlu0 %2533 }
 0x631   : > { %v1833_v32 = vmul.f32 %v4578_v2, %v6824_v38  ;;  %v1428_v48 = vpop.xlane.xlu1 %1427 }
 0x632   : > { %1881 = vst.msk [vmem:[#allocation2 + $0xf0] sm:$0xff] %vm766_vm1, %v1849_v60  ;;  %4585 = vrcp.f32 %v1428_v48 }
 0x633   : > { %1865 = vst.msk [vmem:[#allocation2 + $0x70] sm:$0xff] %vm766_vm1, %v1833_v32 }
 0x634   : > { %v4580_v29 = vpop.eup %4579  ;;  %v2528_v55 = vpop.xlane.xlu0 %2527 }
 0x635   : > { %v1836_v53 = vmul.f32 %v4580_v29, %v6825_v9  ;;  %v1440_v24 = vpop.xlane.xlu1 %1439 }
 0x636   : > { %4587 = vrcp.f32 %v1440_v24 }
 0x637   : > { %v4582_v20 = vpop.eup %4581  ;;  %1868 = vst.msk [vmem:[#allocation2 + $0x88] sm:$0xff] %vm766_vm1, %v1836_v53 }
 0x638   : > { %v4584_v54 = vpop.eup %4583  ;;  %v3028_v28 = vmul.f32 %v4582_v20, %v6315_v11  ;;  %v2546_v44 = vpop.xlane.xlu0 %2545 }
 0x639   : > { %v1840_v22 = vmul.f32 %v4584_v54, %v6826_v19  ;;  %v2519_v63 = vpop.xlane.xlu1 %2518 }
 0x63a   : > { %4589 = vrcp.f32 %v2519_v63  ;;  %3093 = vrot.lane.b32.xlu0 %v3028_v28, %s4820_s13 }
 0x63b   : > { %1872 = vst.msk [vmem:[#allocation2 + $0xa8] sm:$0xff] %vm766_vm1, %v1840_v22 }
 0x63c   : > { %v4586_v13 = vpop.eup %4585  ;;  %v6354_v58 = vpop.xlane.xlu0 %2569 }
 0x63d   : > { %v1844_v15 = vmul.f32 %v4586_v13, %v6827_v21  ;;  %v2513_v56 = vpop.xlane.xlu1 %2512 }
 0x63e   : > { %4591 = vrcp.f32 %v2513_v56 }
 0x63f   : > { %1876 = vst.msk [vmem:[#allocation2 + $0xc8] sm:$0xff] %vm766_vm1, %v1844_v15  ;;  %4593 = vrcp.f32 %v2522_v45 }
 0x640   : > { %v4588_v11 = vpop.eup %4587  ;;  %4595 = vrcp.f32 %v2528_v55  ;;  %v2540_v45 = vpop.xlane.xlu0 %2539 }
 0x641   : > { %v1848_v35 = vmul.f32 %v4588_v11, %v6828_v42  ;;  %v2531_v51 = vpop.xlane.xlu1 %2530 }
 0x642   : > { %4597 = vrcp.f32 %v2531_v51 }
 0x643   : > { %1880 = vst.msk [vmem:[#allocation2 + $0xe8] sm:$0xff] %vm766_vm1, %v1848_v35 }
 0x644   : > { %v4590_v39 = vpop.eup %4589  ;;  %v2564_v31 = vpop.xlane.xlu0 %2563 }
 0x645   : > { %v2525_v41 = vpop.xlane.xlu1 %2524  ;;  %v3029_v10 = vmul.f32 %v4590_v39, %v6306_v8 }
 0x646   : > { %4599 = vrcp.f32 %v2525_v41 }
 0x647   : > { %3095 = vrot.lane.b32.xlu1 %v3029_v10, %s4820_s13  ;;  %v4158_v46 = vpop.f32.mrb[80].mxu0  ;;  %4601 = vrcp.f32 %v2534_v52 }
 0x648   : > { %v4592_v36 = vpop.eup %4591  ;;  %v2701_v12 = vpop.f32.mrb[81].mxu0  ;;  %4603 = vrcp.f32 %v2564_v31 }
 0x649   : > { %v3027_v57 = vmul.f32 %v4592_v36, %v6309_v40  ;;  %v4594_v26 = vpop.eup %4593  ;;  %v2543_v33 = vpop.xlane.xlu1 %2542 }
 0x64a   : > { %v4159_v3 = vpop.f32.mrb[82].mxu0  ;;  %v4596_v50 = vpop.eup %4595  ;;  %v3030_v17 = vmul.f32 %v4594_v26, %v6312_v14  ;;  %4605 = vrcp.f32 %v2543_v33 }
 0x64b   : > { %3091 = vrot.lane.b32.xlu1 %v3027_v57, %s4820_s13  ;;  %v2704_v8 = vpop.f32.mrb[83].mxu0  ;;  %4607 = vrcp.f32 %v2540_v45  ;;  %v2558_v2 = vpop.xlane.xlu0 %2557  ;;  %v6829_v45 = vld [vmem:[#allocation13_spill] sm:$0xff] }
 0x64c   : > { %v3032_v4 = vmul.f32 %v4596_v50, %v2704_v8  ;;  %v4598_v37 = vpop.eup %4597 }
 0x64d   : > { %v6359_v40 = vpop.xlane.xlu1 %2566  ;;  %v3033_v23 = vmul.f32 %v4598_v37, %v4158_v46 }
 0x64e   : > { %3101 = vrot.lane.b32.xlu0 %v3032_v4, %s4820_s13 }
 0x64f   : > { %3097 = vrot.lane.b32.xlu1 %v3030_v17, %s4820_s13  ;;  %v2582_v54 = vpop.xlane.xlu0 %2581 }
 0x650   : > { %v4600_v27 = vpop.eup %4599 }
 0x651   : > { %v3031_v43 = vmul.f32 %v4600_v27, %v2701_v12  ;;  %v2537_v49 = vpop.xlane.xlu1 %2536  ;;  %v4602_v6 = vpop.eup %4601 }
 0x652   : > { %v3034_v14 = vmul.f32 %v4602_v6, %v4159_v3  ;;  %4609 = vrcp.f32 %v2537_v49  ;;  %v4604_v30 = vpop.eup %4603 }
 0x653   : > { %3103 = vrot.lane.b32.xlu1 %v3033_v23, %s4820_s13  ;;  %4611 = vrcp.f32 %v2546_v44  ;;  %v2552_v22 = vpop.xlane.xlu0 %2551 }
 0x654   : > { %v4606_v60 = vpop.eup %4605 }
 0x655   : > { %v2561_v62 = vpop.xlane.xlu1 %2560  ;;  %v4608_v9 = vpop.eup %4607 }
 0x657   : > { %3099 = vrot.lane.b32.xlu1 %v3031_v43, %s4820_s13  ;;  %v2576_v46 = vpop.xlane.xlu0 %2575  ;;  %v1444_v43 = vsel %vm448_vm0, %v6829_v45, 0.0 }
 0x659   : > { %v2555_v7 = vpop.xlane.xlu1 %2554 }
 0x65b   : > { %3105 = vrot.lane.b32.xlu1 %v3034_v14, %s4820_s13 }
 0x65c   : > { %v4610_v24 = vpop.eup %4609 }
 0x65d   : > { %v2579_v5 = vpop.xlane.xlu1 %2578  ;;  %v4612_v28 = vpop.eup %4611 }
 0x65e   : > { %4613 = vrcp.f32 %v2579_v5 }
 0x65f   : > { %4615 = vrcp.f32 %v2555_v7 }
 0x660   : > { %4617 = vrcp.f32 %v2552_v22 }
 0x661   : > { %v2549_v16 = vpop.xlane.xlu1 %2548 }
 0x662   : > { %v6364_v0 = vpop.f32.mrb[84].mxu0  ;;  %4619 = vrcp.f32 %v2549_v16 }
 0x663   : > { %v2871_v47 = vpop.f32.mrb[85].mxu0  ;;  %4621 = vrcp.f32 %v2558_v2 }
 0x664   : > { %v6366_v34 = vpop.f32.mrb[86].mxu0  ;;  %4623 = vrcp.f32 %v2561_v62 }
 0x665   : > { %v2874_v1 = vpop.f32.mrb[87].mxu0  ;;  %4625 = vrcp.f32 %v6359_v40  ;;  %v2573_v40 = vpop.xlane.xlu1 %2572 }
 0x666   : > { %v6368_v25 = vmul.f32 %v4604_v30, %v2874_v1  ;;  %4627 = vrcp.f32 %v6354_v58  ;;  %v2594_v58 = vpop.xlane.xlu0 %2593 }
 0x667   : > { %4629 = vrcp.f32 %v2576_v46 }
 0x668   : > { %v4170_v38 = vpop.f32.mrb[84].mxu1  ;;  %v4614_v63 = vpop.eup %4613  ;;  %4631 = vrcp.f32 %v2582_v54 }
 0x669   : > { %v3037_v32 = vmul.f32 %v4606_v60, %v4170_v38  ;;  %v2778_v48 = vpop.f32.mrb[85].mxu1  ;;  %v4616_v18 = vpop.eup %4615 }
 0x66a   : > { %v4171_v29 = vpop.f32.mrb[86].mxu1  ;;  %v3035_v52 = vmul.f32 %v4610_v24, %v2778_v48  ;;  %v4618_v59 = vpop.eup %4617 }
 0x66b   : > { %v2781_v53 = vpop.f32.mrb[87].mxu1  ;;  %3111 = vrot.lane.b32.xlu1 %v3037_v32, %s4820_s13  ;;  %v3038_v19 = vmul.f32 %v4612_v28, %v4171_v29  ;;  %v2588_v23 = vpop.xlane.xlu0 %2587 }
 0x66c   : > { %v3036_v20 = vmul.f32 %v4608_v9, %v2781_v53  ;;  %v4620_v41 = vpop.eup %4619  ;;  %v2591_v49 = vpop.xlane.xlu1 %2590  ;;  %4633 = vrcp.f32 %v2588_v23 }
 0x66d   : > { %v4622_v44 = vpop.eup %4621  ;;  %4635 = vrcp.f32 %v2594_v58 }
 0x66e   : > { %3109 = vrot.lane.b32.xlu0 %v3036_v20, %s4820_s13  ;;  %v4624_v12 = vpop.eup %4623  ;;  %4637 = vrcp.f32 %v2573_v40 }
 0x66f   : > { %3107 = vrot.lane.b32.xlu1 %v3035_v52, %s4820_s13  ;;  %v3043_v57 = vmul.f32 %v4624_v12, %v2871_v47  ;;  %v4626_v26 = vpop.eup %4625  ;;  %v2606_v27 = vpop.xlane.xlu0 %2605 }
 0x670   : > { %v3045_v33 = vmul.f32 %v4626_v26, %v6364_v0  ;;  %v4628_v3 = vpop.eup %4627  ;;  %v2585_v31 = vpop.xlane.xlu1 %2584 }
 0x671   : > { %v3046_v50 = vmul.f32 %v4628_v3, %v6366_v34  ;;  %v4630_v8 = vpop.eup %4629 }
 0x672   : > { %v4632_v17 = vpop.eup %4631 }
 0x673   : > { %3113 = vrot.lane.b32.xlu1 %v3038_v19, %s4820_s13  ;;  %v2600_v6 = vpop.xlane.xlu0 %2599 }
 0x674   : > { %v4190_v13 = vpop.f32.mrb[88].mxu0  ;;  %v2603_v62 = vpop.xlane.xlu1 %2602  ;;  %4639 = vrcp.f32 %v2600_v6 }
 0x675   : > { %v6374_v21 = vmul.f32 %v4614_v63, %v4190_v13  ;;  %v6376_v15 = vpop.f32.mrb[89].mxu0  ;;  %4641 = vrcp.f32 %v2606_v27 }
 0x676   : > { %v4191_v56 = vpop.f32.mrb[90].mxu0  ;;  %v4634_v34 = vpop.eup %4633  ;;  %4643 = vrcp.f32 %v2585_v31 }
 0x677   : > { %v2890_v55 = vpop.f32.mrb[91].mxu0  ;;  %v3050_v37 = vmul.f32 %v4632_v17, %v4191_v56  ;;  %v4636_v5 = vpop.eup %4635  ;;  %4645 = vrcp.f32 %v2591_v49 }
 0x678   : > { %v3048_v4 = vmul.f32 %v4630_v8, %v2890_v55  ;;  %v2597_v2 = vpop.xlane.xlu1 %2596  ;;  %v4638_v32 = vpop.eup %4637 }
 0x679   : > { %v3047_v29 = vmul.f32 %v4638_v32, %v6376_v15  ;;  %4647 = vrcp.f32 %v2597_v2 }
 0x67a   : > { %4649 = vrcp.f32 %v2603_v62 }
 0x67c   : > { %v4174_v11 = vpop.f32.mrb[88].mxu1 }
 0x67d   : > { %v3041_v42 = vmul.f32 %v4616_v18, %v4174_v11  ;;  %v2794_v35 = vpop.f32.mrb[89].mxu1 }
 0x67e   : > { %v4175_v51 = vpop.f32.mrb[90].mxu1  ;;  %v3039_v61 = vmul.f32 %v4620_v41, %v2794_v35  ;;  %v4640_v24 = vpop.eup %4639 }
 0x67f   : > { %v2797_v39 = vpop.f32.mrb[91].mxu1  ;;  %3119 = vrot.lane.b32.xlu1 %v3041_v42, %s4820_s13  ;;  %v3042_v36 = vmul.f32 %v4622_v44, %v4175_v51  ;;  %v4642_v28 = vpop.eup %4641 }
 0x680   : > { %v3040_v10 = vmul.f32 %v4618_v59, %v2797_v39  ;;  %v4644_v22 = vpop.eup %4643 }
 0x681   : > { %v4646_v55 = vpop.eup %4645 }
 0x682   : > { %3117 = vrot.lane.b32.xlu0 %v3040_v10, %s4820_s13 }
 0x683   : > { %3115 = vrot.lane.b32.xlu1 %v3039_v61, %s4820_s13  ;;  %v4648_v51 = vpop.eup %4647 }
 0x684   : > { %v4650_v10 = vpop.eup %4649 }
 0x687   : > { %3121 = vrot.lane.b32.xlu1 %v3042_v36, %s4820_s13 }
 0x68b   : > { %3123 = vrot.lane.b32.xlu1 %v3043_v57, %s4820_s13 }
 0x68f   : > { %3127 = vrot.lane.b32.xlu1 %v3045_v33, %s4820_s13 }
 0x693   : > { %3129 = vrot.lane.b32.xlu1 %v3046_v50, %s4820_s13 }
 0x697   : > { %3133 = vrot.lane.b32.xlu1 %v3048_v4, %s4820_s13 }
 0x69b   : > { %3137 = vrot.lane.b32.xlu1 %v3050_v37, %s4820_s13 }
 0x6a1   : > { %1445 = vadd.xlane.f32.xlu0 %v1444_v43 }
 0x6ac   : > { %v3094_v14 = vpop.permute.xlu0 %3093 }
 0x6ad   : > { %3189 = vst.msk [vmem:[#allocation2 + $0x8] sm:$0xff] %vm3187_vm2, %v3094_v14 }
 0x6af   : > { %v4202_v7 = vpop.f32.mrb[92].mxu1 }
 0x6b0   : > { %v2964_v0 = vpop.f32.mrb[93].mxu1 }
 0x6b1   : > { %v4203_v47 = vpop.f32.mrb[94].mxu1  ;;  %v3051_v16 = vmul.f32 %v4644_v22, %v2964_v0 }
 0x6b2   : > { %v2967_v30 = vpop.f32.mrb[95].mxu1  ;;  %v3054_v60 = vmul.f32 %v4636_v5, %v4203_v47 }
 0x6b3   : > { %v3052_v1 = vmul.f32 %v4634_v34, %v2967_v30 }
 0x6b4   : > { %v3221_v56 = vld [vmem:[#allocation2 + $0x8] sm:$0xff] }
 0x6b5   : > { %3141 = vrot.lane.b32.xlu1 %v3052_v1, %s4820_s13 }
 0x6b7   : > { %3125 = vrot.lane.b32.xlu0 %v6368_v25, %s4820_s13 }
 0x6b9   : > { %v3096_v38 = vpop.permute.xlu1 %3095  ;;  %v4206_v48 = vpop.f32.mrb[96].mxu1  ;;  %3145 = vrot.lane.b32.xlu1 %v3054_v60, %s4820_s13 }
 0x6ba   : > { %3190 = vst.msk [vmem:[#allocation2 + $0x10] sm:$0xff] %vm3187_vm2, %v3096_v38  ;;  %v2980_v9 = vpop.f32.mrb[97].mxu1  ;;  %v3057_v61 = vmul.f32 %v4650_v10, %v4206_v48 }
 0x6bb   : > { %v4207_v53 = vpop.f32.mrb[98].mxu1  ;;  %3131 = vrot.lane.b32.xlu0 %v3047_v29, %s4820_s13  ;;  %v3055_v39 = vmul.f32 %v4648_v51, %v2980_v9 }
 0x6bc   : > { %v2983_v54 = vpop.f32.mrb[99].mxu1  ;;  %v3058_v63 = vmul.f32 %v4642_v28, %v4207_v53 }
 0x6bd   : > { %v3092_v20 = vpop.permute.xlu1 %3091  ;;  %v3056_v52 = vmul.f32 %v4640_v24, %v2983_v54  ;;  %v6830_v24 = vld [vmem:[#allocation52_spill] sm:$0xff] }
 0x6be   : > { %3188 = vst.msk [vmem:[#allocation2] sm:$0xff] %vm3187_vm2, %v3092_v20 }
 0x6bf   : > { %3149 = vrot.lane.b32.xlu1 %v3056_v52, %s4820_s13  ;;  %3135 = vrot.lane.b32.xlu0 %v6374_v21, %s4820_s13  ;;  %v3053_v21 = vmul.f32 %v4646_v55, %v4202_v7 }
 0x6c0   : > { %v3102_v25 = vpop.permute.xlu0 %3101 }
 0x6c1   : > { %v3098_v19 = vpop.permute.xlu1 %3097  ;;  %3193 = vst.msk [vmem:[#allocation2 + $0x28] sm:$0xff] %vm3187_vm2, %v3102_v25  ;;  %v3222_v42 = vld [vmem:[#allocation2 + $0x10] sm:$0xff] }
 0x6c2   : > { %3191 = vst.msk [vmem:[#allocation2 + $0x18] sm:$0xff] %vm3187_vm2, %v3098_v19 }
 0x6c3   : > { %3153 = vrot.lane.b32.xlu1 %v3058_v63, %s4820_s13  ;;  %3139 = vrot.lane.b32.xlu0 %v3051_v16, %s4820_s13 }
 0x6c5   : > { %v3104_v13 = vpop.permute.xlu1 %3103  ;;  %v3220_v15 = vld [vmem:[#allocation2] sm:$0xff] }
 0x6c6   : > { %3194 = vst.msk [vmem:[#allocation2 + $0x30] sm:$0xff] %vm3187_vm2, %v3104_v13  ;;  %v3252_v18 = vpack.c.bf16 %v3221_v56, %v3220_v15 }
 0x6c7   : > { %3143 = vrot.lane.b32.xlu0 %v3053_v21, %s4820_s13 }
 0x6c8   : > { %4216 = vmatprep.mubr.msk.bf16.mxu0 %vm448_vm0, %v3252_v18  ;;  %v3225_v36 = vld [vmem:[#allocation2 + $0x28] sm:$0xff] }
 0x6c9   : > { %v3100_v11 = vpop.permute.xlu1 %3099  ;;  %v3223_v35 = vld [vmem:[#allocation2 + $0x18] sm:$0xff] }
 0x6ca   : > { %3192 = vst.msk [vmem:[#allocation2 + $0x20] sm:$0xff] %vm3187_vm2, %v3100_v11  ;;  %v3253_v59 = vpack.c.bf16 %v3223_v35, %v3222_v42 }
 0x6cb   : > { %3147 = vrot.lane.b32.xlu0 %v3055_v39, %s4820_s13 }
 0x6cc   : > { %4217 = vmatmul.mubr.msk.bf16.vlgmr.msra.gmra.mrb[92].mxu0 %vm448_vm0, %v3253_v59 }
 0x6cd   : > { %v3106_v41 = vpop.permute.xlu1 %3105  ;;  %v3226_v12 = vld [vmem:[#allocation2 + $0x30] sm:$0xff] }
 0x6ce   : > { %3195 = vst.msk [vmem:[#allocation2 + $0x38] sm:$0xff] %vm3187_vm2, %v3106_v41 }
 0x6cf   : > { %3151 = vrot.lane.b32.xlu0 %v3057_v61, %s4820_s13 }
 0x6d1   : > { %v3224_v44 = vld [vmem:[#allocation2 + $0x20] sm:$0xff] }
 0x6d2   : > { %v3254_v46 = vpack.c.bf16 %v3225_v36, %v3224_v44 }
 0x6d4   : > { %4220 = vmatprep.mubr.msk.bf16.mxu0 %vm448_vm0, %v3254_v46 }
 0x6d5   : > { %v3227_v57 = vld [vmem:[#allocation2 + $0x38] sm:$0xff] }
 0x6d6   : > { %v3255_v26 = vpack.c.bf16 %v3227_v57, %v3226_v12 }
 0x6d8   : > { %4221 = vmatmul.mubr.msk.bf16.gmra.mrb[96].mxu0 %vm448_vm0, %v3255_v26 }
 0x6dd   : > { %v3112_v33 = vpop.permute.xlu1 %3111 }
 0x6de   : > { %3198 = vst.msk [vmem:[#allocation2 + $0x50] sm:$0xff] %vm3187_vm2, %v3112_v33  ;;  %v6461_v33 = vld [vmem:[%s6615_s4] ss:$0 sm:$0xff] }
 0x6e0   : > { %v3110_v3 = vpop.permute.xlu0 %3109 }
 0x6e1   : > { %3197 = vst.msk [vmem:[#allocation2 + $0x48] sm:$0xff] %vm3187_vm2, %v3110_v3  ;;  %v3108_v50 = vpop.permute.xlu1 %3107 }
 0x6e2   : > { %3196 = vst.msk [vmem:[#allocation2 + $0x40] sm:$0xff] %vm3187_vm2, %v3108_v50 }
 0x6e5   : > { %v3114_v8 = vpop.permute.xlu1 %3113  ;;  %v3230_v37 = vld [vmem:[#allocation2 + $0x50] sm:$0xff] }
 0x6e6   : > { %3199 = vst.msk [vmem:[#allocation2 + $0x58] sm:$0xff] %vm3187_vm2, %v3114_v8 }
 0x6e8   : > { %v3229_v4 = vld [vmem:[#allocation2 + $0x48] sm:$0xff] }
 0x6e9   : > { %v3228_v58 = vld [vmem:[#allocation2 + $0x40] sm:$0xff] }
 0x6ea   : > { %v3256_v17 = vpack.c.bf16 %v3229_v4, %v3228_v58 }
 0x6ec   : > { %4224 = vmatprep.mubr.msk.bf16.mxu0 %vm448_vm0, %v3256_v17 }
 0x6ed   : > { %v3231_v40 = vld [vmem:[#allocation2 + $0x58] sm:$0xff] }
 0x6ee   : > { %v3257_v23 = vpack.c.bf16 %v3231_v40, %v3230_v37 }
 0x6f0   : > { %4225 = vmatmul.mubr.msk.bf16.gmra.mrb[100].mxu0 %vm448_vm0, %v3257_v23 }
 0x6f1   : > { %v3120_v27 = vpop.permute.xlu1 %3119 }
 0x6f2   : > { %3202 = vst.msk [vmem:[#allocation2 + $0x70] sm:$0xff] %vm3187_vm2, %v3120_v27 }
 0x6f4   : > { %v3118_v45 = vpop.permute.xlu0 %3117 }
 0x6f5   : > { %3201 = vst.msk [vmem:[#allocation2 + $0x68] sm:$0xff] %vm3187_vm2, %v3118_v45  ;;  %v3116_v43 = vpop.permute.xlu1 %3115 }
 0x6f6   : > { %3200 = vst.msk [vmem:[#allocation2 + $0x60] sm:$0xff] %vm3187_vm2, %v3116_v43 }
 0x6f9   : > { %v3122_v49 = vpop.permute.xlu1 %3121  ;;  %v3234_v0 = vld [vmem:[#allocation2 + $0x70] sm:$0xff] }
 0x6fa   : > { %3203 = vst.msk [vmem:[#allocation2 + $0x78] sm:$0xff] %vm3187_vm2, %v3122_v49 }
 0x6fc   : > { %v3233_v6 = vld [vmem:[#allocation2 + $0x68] sm:$0xff] }
 0x6fd   : > { %v3124_v31 = vpop.permute.xlu1 %3123  ;;  %v3232_v14 = vld [vmem:[#allocation2 + $0x60] sm:$0xff] }
 0x6fe   : > { %3204 = vst.msk [vmem:[#allocation2 + $0x80] sm:$0xff] %vm3187_vm2, %v3124_v31  ;;  %v3258_v62 = vpack.c.bf16 %v3233_v6, %v3232_v14 }
 0x700   : > { %4228 = vmatprep.mubr.msk.bf16.mxu0 %vm448_vm0, %v3258_v62 }
 0x701   : > { %v3128_v7 = vpop.permute.xlu1 %3127  ;;  %v3235_v47 = vld [vmem:[#allocation2 + $0x78] sm:$0xff] }
 0x702   : > { %3206 = vst.msk [vmem:[#allocation2 + $0x90] sm:$0xff] %vm3187_vm2, %v3128_v7  ;;  %v3259_v34 = vpack.c.bf16 %v3235_v47, %v3234_v0 }
 0x704   : > { %4229 = vmatmul.mubr.msk.bf16.gmra.mrb[104].mxu0 %vm448_vm0, %v3259_v34 }
 0x705   : > { %v3130_v30 = vpop.permute.xlu1 %3129  ;;  %v3236_v52 = vld [vmem:[#allocation2 + $0x80] sm:$0xff] }
 0x706   : > { %3207 = vst.msk [vmem:[#allocation2 + $0x98] sm:$0xff] %vm3187_vm2, %v3130_v30 }
 0x709   : > { %v3134_v1 = vpop.permute.xlu1 %3133  ;;  %v3238_v19 = vld [vmem:[#allocation2 + $0x90] sm:$0xff] }
 0x70a   : > { %3209 = vst.msk [vmem:[#allocation2 + $0xa8] sm:$0xff] %vm3187_vm2, %v3134_v1 }
 0x70d   : > { %v3138_v2 = vpop.permute.xlu1 %3137  ;;  %v3239_v53 = vld [vmem:[#allocation2 + $0x98] sm:$0xff] }
 0x70e   : > { %3211 = vst.msk [vmem:[#allocation2 + $0xb8] sm:$0xff] %vm3187_vm2, %v3138_v2  ;;  %v3261_v63 = vpack.c.bf16 %v3239_v53, %v3238_v19 }
 0x711   : > { %v3241_v15 = vld [vmem:[#allocation2 + $0xa8] sm:$0xff] }
 0x715   : > { %v3243_v21 = vld [vmem:[#allocation2 + $0xb8] sm:$0xff] }
 0x727   : > { %v3142_v5 = vpop.permute.xlu1 %3141 }
 0x728   : > { %3213 = vst.msk [vmem:[#allocation2 + $0xc8] sm:$0xff] %vm3187_vm2, %v3142_v5 }
 0x72b   : > { %v3146_v60 = vpop.permute.xlu1 %3145 }
 0x72c   : > { %3215 = vst.msk [vmem:[#allocation2 + $0xd8] sm:$0xff] %vm3187_vm2, %v3146_v60 }
 0x72e   : > { %v1446_v38 = vpop.xlane.xlu0 %1445 }
 0x72f   : > { %4651 = vrcp.f32 %v1446_v38  ;;  %v3245_v51 = vld [vmem:[#allocation2 + $0xc8] sm:$0xff] }
 0x731   : > { %v3150_v32 = vpop.permute.xlu1 %3149 }
 0x732   : > { %3217 = vst.msk [vmem:[#allocation2 + $0xe8] sm:$0xff] %vm3187_vm2, %v3150_v32  ;;  %v3126_v48 = vpop.permute.xlu0 %3125 }
 0x733   : > { %3205 = vst.msk [vmem:[#allocation2 + $0x88] sm:$0xff] %vm3187_vm2, %v3126_v48  ;;  %v3247_v10 = vld [vmem:[#allocation2 + $0xd8] sm:$0xff] }
 0x735   : > { %v3154_v22 = vpop.permute.xlu1 %3153 }
 0x736   : > { %v3132_v29 = vpop.permute.xlu0 %3131 }
 0x737   : > { %3208 = vst.msk [vmem:[#allocation2 + $0xa0] sm:$0xff] %vm3187_vm2, %v3132_v29 }
 0x739   : > { %v4652_v9 = vpop.eup %4651  ;;  %v3249_v36 = vld [vmem:[#allocation2 + $0xe8] sm:$0xff] }
 0x73a   : > { %v1850_v20 = vmul.f32 %v4652_v9, %v6830_v24  ;;  %v3136_v54 = vpop.permute.xlu0 %3135  ;;  %v3237_v25 = vld [vmem:[#allocation2 + $0x88] sm:$0xff] }
 0x73b   : > { %3210 = vst.msk [vmem:[#allocation2 + $0xb0] sm:$0xff] %vm3187_vm2, %v3136_v54  ;;  %v3260_v28 = vpack.c.bf16 %v3237_v25, %v3236_v52 }
 0x73c   : > { %1882 = vst.msk [vmem:[#allocation2 + $0xf8] sm:$0xff] %vm766_vm1, %v1850_v20 }
 0x73d   : > { %3219 = vst.msk [vmem:[#allocation2 + $0xf8] sm:$0xff] %vm3187_vm2, %v3154_v22  ;;  %4232 = vmatprep.mubr.msk.bf16.mxu0 %vm448_vm0, %v3260_v28 }
 0x73e   : > { %4233 = vmatmul.mubr.msk.bf16.gmra.mrb[108].mxu0 %vm448_vm0, %v3261_v63  ;;  %v3140_v16 = vpop.permute.xlu0 %3139  ;;  %v3240_v13 = vld [vmem:[#allocation2 + $0xa0] sm:$0xff] }
 0x73f   : > { %3212 = vst.msk [vmem:[#allocation2 + $0xc0] sm:$0xff] %vm3187_vm2, %v3140_v16  ;;  %v3262_v56 = vpack.c.bf16 %v3241_v15, %v3240_v13 }
 0x741   : > { %4236 = vmatprep.mubr.msk.bf16.mxu0 %vm448_vm0, %v3262_v56 }
 0x742   : > { %v3144_v55 = vpop.permute.xlu0 %3143  ;;  %v3242_v18 = vld [vmem:[#allocation2 + $0xb0] sm:$0xff] }
 0x743   : > { %3214 = vst.msk [vmem:[#allocation2 + $0xd0] sm:$0xff] %vm3187_vm2, %v3144_v55  ;;  %v3263_v11 = vpack.c.bf16 %v3243_v21, %v3242_v18 }
 0x744   : > { %v3251_v57 = vld [vmem:[#allocation2 + $0xf8] sm:$0xff] }
 0x746   : > { %4237 = vmatmul.mubr.msk.bf16.gmra.mrb[112].mxu0 %vm448_vm0, %v3263_v11  ;;  %v3148_v42 = vpop.permute.xlu0 %3147  ;;  %v3244_v35 = vld [vmem:[#allocation2 + $0xc0] sm:$0xff] }
 0x747   : > { %3216 = vst.msk [vmem:[#allocation2 + $0xe0] sm:$0xff] %vm3187_vm2, %v3148_v42  ;;  %v3264_v59 = vpack.c.bf16 %v3245_v51, %v3244_v35 }
 0x749   : > { %4240 = vmatprep.mubr.msk.bf16.mxu0 %vm448_vm0, %v3264_v59 }
 0x74a   : > { %v3152_v39 = vpop.permute.xlu0 %3151  ;;  %v3246_v41 = vld [vmem:[#allocation2 + $0xd0] sm:$0xff] }
 0x74b   : > { %3218 = vst.msk [vmem:[#allocation2 + $0xf0] sm:$0xff] %vm3187_vm2, %v3152_v39  ;;  %v3265_v61 = vpack.c.bf16 %v3247_v10, %v3246_v41 }
 0x74e   : > { %4241 = vmatmul.mubr.msk.bf16.gmra.mrb[116].mxu0 %vm448_vm0, %v3265_v61  ;;  %v3248_v44 = vld [vmem:[#allocation2 + $0xe0] sm:$0xff] }
 0x74f   : > { %v3266_v46 = vpack.c.bf16 %v3249_v36, %v3248_v44 }
 0x751   : > { %4244 = vmatprep.mubr.msk.bf16.mxu0 %vm448_vm0, %v3266_v46 }
 0x752   : > { %v3250_v12 = vld [vmem:[#allocation2 + $0xf0] sm:$0xff] }
 0x753   : > { %v3267_v26 = vpack.c.bf16 %v3251_v57, %v3250_v12 }
 0x756   : > { %4245 = vmatmul.mubr.msk.bf16.gmra.mrb[120].mxu0 %vm448_vm0, %v3267_v26 }
 0x79f   : > { %v4218_v3 = vpop.f32.mrb[92].mxu0 }
 0x7a0   : > { %v3398_v50 = vadd.f32 %v4218_v3, %v6461_v33  ;;  %v3389_v8 = vpop.f32.mrb[93].mxu0 }
 0x7a1   : > { %v3390_v4 = vadd.f32 %v6461_v33, %v3389_v8  ;;  %v4219_v58 = vpop.f32.mrb[94].mxu0 }
 0x7a2   : > { %3518 = vst.msk [vmem:[%s6465_s30 + $0x10] sm:$0xff] %vm448_vm0, %v3398_v50  ;;  %v3401_v17 = vadd.f32 %v4219_v58, %v6461_v33  ;;  %v3392_v37 = vpop.f32.mrb[95].mxu0 }
 0x7a3   : > { %3516 = vst.msk [vmem:[%s6465_s30] sm:$0xff] %vm448_vm0, %v3390_v4  ;;  %v3393_v40 = vadd.f32 %v6461_v33, %v3392_v37 }
 0x7a4   : > { %3519 = vst.msk [vmem:[%s6465_s30 + $0x18] sm:$0xff] %vm448_vm0, %v3401_v17 }
 0x7a5   : > { %3517 = vst.msk [vmem:[%s6465_s30 + $0x8] sm:$0xff] %vm448_vm0, %v3393_v40 }
 0x7ab   : > { %v4222_v23 = vpop.f32.mrb[96].mxu0 }
 0x7ac   : > { %v3414_v27 = vadd.f32 %v4222_v23, %v6461_v33  ;;  %v3405_v45 = vpop.f32.mrb[97].mxu0 }
 0x7ad   : > { %v3406_v43 = vadd.f32 %v6461_v33, %v3405_v45  ;;  %v4223_v49 = vpop.f32.mrb[98].mxu0 }
 0x7ae   : > { %3522 = vst.msk [vmem:[%s6465_s30 + $0x30] sm:$0xff] %vm448_vm0, %v3414_v27  ;;  %v3417_v6 = vadd.f32 %v4223_v49, %v6461_v33  ;;  %v3408_v31 = vpop.f32.mrb[99].mxu0 }
 0x7af   : > { %3520 = vst.msk [vmem:[%s6465_s30 + $0x20] sm:$0xff] %vm448_vm0, %v3406_v43  ;;  %v3409_v14 = vadd.f32 %v6461_v33, %v3408_v31 }
 0x7b0   : > { %3523 = vst.msk [vmem:[%s6465_s30 + $0x38] sm:$0xff] %vm448_vm0, %v3417_v6 }
 0x7b1   : > { %3521 = vst.msk [vmem:[%s6465_s30 + $0x28] sm:$0xff] %vm448_vm0, %v3409_v14 }
 0x7c3   : > { %v4226_v62 = vpop.f32.mrb[100].mxu0 }
 0x7c4   : > { %v3430_v7 = vadd.f32 %v4226_v62, %v6461_v33  ;;  %v3421_v0 = vpop.f32.mrb[101].mxu0 }
 0x7c5   : > { %v3422_v47 = vadd.f32 %v6461_v33, %v3421_v0  ;;  %v4227_v34 = vpop.f32.mrb[102].mxu0 }
 0x7c6   : > { %3526 = vst.msk [vmem:[%s6465_s30 + $0x50] sm:$0xff] %vm448_vm0, %v3430_v7  ;;  %v3433_v30 = vadd.f32 %v4227_v34, %v6461_v33  ;;  %v3424_v1 = vpop.f32.mrb[103].mxu0 }
 0x7c7   : > { %3524 = vst.msk [vmem:[%s6465_s30 + $0x40] sm:$0xff] %vm448_vm0, %v3422_v47  ;;  %v3425_v2 = vadd.f32 %v6461_v33, %v3424_v1 }
 0x7c8   : > { %3527 = vst.msk [vmem:[%s6465_s30 + $0x58] sm:$0xff] %vm448_vm0, %v3433_v30 }
 0x7c9   : > { %3525 = vst.msk [vmem:[%s6465_s30 + $0x48] sm:$0xff] %vm448_vm0, %v3425_v2 }
 0x7d7   : > { %v4230_v5 = vpop.f32.mrb[104].mxu0 }
 0x7d8   : > { %v3446_v60 = vadd.f32 %v4230_v5, %v6461_v33  ;;  %v3437_v38 = vpop.f32.mrb[105].mxu0 }
 0x7d9   : > { %v3438_v32 = vadd.f32 %v6461_v33, %v3437_v38  ;;  %v4231_v48 = vpop.f32.mrb[106].mxu0 }
 0x7da   : > { %3530 = vst.msk [vmem:[%s6465_s30 + $0x70] sm:$0xff] %vm448_vm0, %v3446_v60  ;;  %v3449_v29 = vadd.f32 %v4231_v48, %v6461_v33  ;;  %v3440_v9 = vpop.f32.mrb[107].mxu0 }
 0x7db   : > { %3528 = vst.msk [vmem:[%s6465_s30 + $0x60] sm:$0xff] %vm448_vm0, %v3438_v32  ;;  %v3441_v53 = vadd.f32 %v6461_v33, %v3440_v9 }
 0x7dc   : > { %3531 = vst.msk [vmem:[%s6465_s30 + $0x78] sm:$0xff] %vm448_vm0, %v3449_v29 }
 0x7dd   : > { %3529 = vst.msk [vmem:[%s6465_s30 + $0x68] sm:$0xff] %vm448_vm0, %v3441_v53 }
 0x811   : > { %v4234_v24 = vpop.f32.mrb[108].mxu0 }
 0x812   : > { %v3462_v20 = vadd.f32 %v4234_v24, %v6461_v33  ;;  %v3453_v54 = vpop.f32.mrb[109].mxu0 }
 0x813   : > { %v3454_v52 = vadd.f32 %v6461_v33, %v3453_v54  ;;  %v4235_v25 = vpop.f32.mrb[110].mxu0 }
 0x814   : > { %3534 = vst.msk [vmem:[%s6465_s30 + $0x90] sm:$0xff] %vm448_vm0, %v3462_v20  ;;  %v3465_v28 = vadd.f32 %v4235_v25, %v6461_v33  ;;  %v3456_v19 = vpop.f32.mrb[111].mxu0 }
 0x815   : > { %3532 = vst.msk [vmem:[%s6465_s30 + $0x80] sm:$0xff] %vm448_vm0, %v3454_v52  ;;  %v3457_v22 = vadd.f32 %v6461_v33, %v3456_v19 }
 0x816   : > { %3535 = vst.msk [vmem:[%s6465_s30 + $0x98] sm:$0xff] %vm448_vm0, %v3465_v28 }
 0x817   : > { %3533 = vst.msk [vmem:[%s6465_s30 + $0x88] sm:$0xff] %vm448_vm0, %v3457_v22 }
 0x819   : > { %v4238_v63 = vpop.f32.mrb[112].mxu0 }
 0x81a   : > { %v3478_v16 = vadd.f32 %v4238_v63, %v6461_v33  ;;  %v3469_v13 = vpop.f32.mrb[113].mxu0 }
 0x81b   : > { %v3470_v15 = vadd.f32 %v6461_v33, %v3469_v13  ;;  %v4239_v56 = vpop.f32.mrb[114].mxu0 }
 0x81c   : > { %3538 = vst.msk [vmem:[%s6465_s30 + $0xb0] sm:$0xff] %vm448_vm0, %v3478_v16  ;;  %v3481_v55 = vadd.f32 %v4239_v56, %v6461_v33  ;;  %v3472_v18 = vpop.f32.mrb[115].mxu0 }
 0x81d   : > { %3536 = vst.msk [vmem:[%s6465_s30 + $0xa0] sm:$0xff] %vm448_vm0, %v3470_v15  ;;  %v3473_v21 = vadd.f32 %v6461_v33, %v3472_v18 }
 0x81e   : > { %3539 = vst.msk [vmem:[%s6465_s30 + $0xb8] sm:$0xff] %vm448_vm0, %v3481_v55 }
 0x81f   : > { %3537 = vst.msk [vmem:[%s6465_s30 + $0xa8] sm:$0xff] %vm448_vm0, %v3473_v21 }
 0x821   : > { %v4242_v11 = vpop.f32.mrb[116].mxu0 }
 0x822   : > { %v3494_v42 = vadd.f32 %v4242_v11, %v6461_v33  ;;  %v3485_v35 = vpop.f32.mrb[117].mxu0 }
 0x823   : > { %v3486_v51 = vadd.f32 %v6461_v33, %v3485_v35  ;;  %v4243_v59 = vpop.f32.mrb[118].mxu0 }
 0x824   : > { %3542 = vst.msk [vmem:[%s6465_s30 + $0xd0] sm:$0xff] %vm448_vm0, %v3494_v42  ;;  %v3497_v39 = vadd.f32 %v4243_v59, %v6461_v33  ;;  %v3488_v41 = vpop.f32.mrb[119].mxu0 }
 0x825   : > { %3540 = vst.msk [vmem:[%s6465_s30 + $0xc0] sm:$0xff] %vm448_vm0, %v3486_v51  ;;  %v3489_v10 = vadd.f32 %v6461_v33, %v3488_v41 }
 0x826   : > { %3543 = vst.msk [vmem:[%s6465_s30 + $0xd8] sm:$0xff] %vm448_vm0, %v3497_v39 }
 0x827   : > { %3541 = vst.msk [vmem:[%s6465_s30 + $0xc8] sm:$0xff] %vm448_vm0, %v3489_v10 }
 0x829   : > { %v4246_v61 = vpop.f32.mrb[120].mxu0 }
 0x82a   : > { %v3510_v44 = vadd.f32 %v4246_v61, %v6461_v33  ;;  %v3501_v36 = vpop.f32.mrb[121].mxu0 }
 0x82b   : > { %v3502_v46 = vadd.f32 %v6461_v33, %v3501_v36  ;;  %v4247_v12 = vpop.f32.mrb[122].mxu0 }
 0x82c   : > { %3546 = vst.msk [vmem:[%s6465_s30 + $0xf0] sm:$0xff] %vm448_vm0, %v3510_v44  ;;  %v3513_v57 = vadd.f32 %v4247_v12, %v6461_v33  ;;  %v3504_v26 = vpop.f32.mrb[123].mxu0 }
 0x82d   : > { %3544 = vst.msk [vmem:[%s6465_s30 + $0xe0] sm:$0xff] %vm448_vm0, %v3502_v46  ;;  %v3505_v3 = vadd.f32 %v6461_v33, %v3504_v26 }
 0x82e   : > { %3547 = vst.msk [vmem:[%s6465_s30 + $0xf8] sm:$0xff] %vm448_vm0, %v3513_v57 }
 0x82f   : > { %3545 = vst.msk [vmem:[%s6465_s30 + $0xe8] sm:$0xff] %vm448_vm0, %v3505_v3 }
 0x830   : > { %4752 = shalt.err (!%p4749_p7)
}
 0x831   : > { %s4753_s13 = scalar_lea.hbm %s6559_s8, 4096  ;;  %s4757_s14 = scalar_lea.hbm %s6616_s5, 32768 }
 0x832   : > { %p4754_p9 = scmp.ne.s32.totalorder %s6559_s8, %s4753_s13  ;;  %p4758_p5 = scmp.lt.u32.totalorder %s6559_s8, %s6616_s5 }
 0x833   : > { %p4759_p10 = scmp.lt.u32.totalorder %s4757_s14, %s4753_s13  ;;  %p4761_p1 = scmp.lt.u32.totalorder %s4753_s13, %s6559_s8 }
 0x834   : > { %p4755_p12 = pnand %p4754_p9, %p4973_p6 }
 0x835   : > { %p4760_p11 = por %p4759_p10, %p4758_p5 }
 0x836   : > { %p4756_p0 = pneg %p4755_p12 }
 0x837   : > { %p4762_p2 = por %p4761_p1, %p4760_p11 }
 0x839   : > { %p4763_p4 = pnand %p4762_p2, %p4756_p0 }
 0x83b   : > { %4766 = shalt.err (!%p4763_p4)
}
 0x83c   : > { %s4823_s11 = smov 128   ;;  %s4824_s7 = smov 8  }
 0x83d   : > { %4298 = dma.vmem_to_hbm [thread:$0]  (%p4973_p6), %s6561_s23, 4096, %s6559_s8, %s3549_s22, %s4823_s11, %s4823_s11, %s4824_s7  }
 0x83e PF: > { %p4320_p8 = scmp.ge.s32.totalorder %s4809_s21, 2  ;;  %s3578_s6 = sand.u32 1, %s4797_s18  }
 0x83f   : > { %p6831_p13 = scmp.ne.s32.totalorder %s6665_s25, 0  ;;  %s3579_s9 = scalar_lea.sflag [#allocation5], %s3578_s6 }
 0x841   : > { %p4312_p3 = pnand %p4320_p8, %p6831_p13 }
 0x843   : > { %4792 = dma.done.wait (!%p4312_p3), %s3579_s9, 4096  }
 0x844   : > { %4794 = vsyncadd (!%p4312_p3), %s3579_s9, 4294963200  ;;  %p19_p7 = scmp.ge.s32.totalorder %s4960_s16, 10   ;;  %s6832_s18 = smov %s4801_s19 }
 0x845   : > { %s6833_s19 = smov %s4805_s20  ;;  %s6834_s20 = smov %s4969_s27 }
 0x846   : > { %s6835_s21 = smov %s4960_s16  ;;  %21 = sbr.rel (!%p19_p7) target bundleno = 6 (0x6), region = 93 }
 0x84d   :  { %3584 = vsyncpa [#allocation4], 1 }
 0x84e   :  { %3586 = vsyncpa [#allocation4 + $0x1], 1 }
 0x84f   :  { %3587 = vsyncpa [#allocation7], 1 }
 0x850   :  { %3588 = vsyncpa [#allocation5], 1 }
 0x851   :  { %3590 = vsyncpa [#allocation5 + $0x1], 1 }

</bundles_post_ra>
